<compile_context>
chip_gen: v6e
topology: v6e:2x2x1
jax: 0.10.0
libtpu: 0.0.40
codegen_flags: <defaults>
</compile_context>

<pallas_src>
import jax
import jax.numpy as jnp
from jax.experimental import pallas as pl
from jax.experimental.pallas import tpu as pltpu

NZ = 20
NH3 = 28 * 28 * 5   # 3920
NIN = 28 * 28       # 784

# Padded sizes (lane = 128).
NZ_PAD = 32          # 20 -> 32   (padded entries are zero)
NH3_PAD = 4096       # 3920 -> 32*128
NIN_PAD = 1024       # 784  -> 8*128


def _select_tiling():
    """1-TC chips (v5e/v6e): one full-width output tile, 2 k-steps.
    v7x (2 TensorCores): 2-way 'parallel' output split, 1 k-step each."""
    try:
        kind = jax.devices()[0].device_kind.lower()
    except Exception:  # pragma: no cover - defensive, default to 1-TC tiling
        kind = ""
    if "v7" in kind:
        return 2, 4096
    return 1, 2048


N_TILES, TK = _select_tiling()
TN = NIN_PAD // N_TILES          # 1024 (1-TC) or 512 (v7x)
K_STEPS = NH3_PAD // TK          # 2 (1-TC) or 1 (v7x)


def decoder_kernel(z_ref, w1_ref, b1_ref, w2_ref, w2s_ref, b2_ref, o_ref):
    """Grid step (n, k):
       h_k = ReLU(z @ W1[:, k] + b1[k])            (f32)
       o  += h_k @ dequant(W2[k, n])               (f32, accumulated in o_ref)
       at last k: o = sigmoid(o * scale[n] + b2[n])
    """
    k = pl.program_id(1)

    @pl.when(k == 0)
    def _():
        o_ref[...] = jnp.zeros_like(o_ref)

    # Layer 1 tile on the MXU (bf16 inputs, f32 accumulate) + bias + ReLU.
    h = jnp.dot(z_ref[...], w1_ref[...], preferred_element_type=jnp.float32)
    h = jnp.maximum(h + b1_ref[...], 0.0)

    # Dequantize the int8 W2 tile (exact int8->f32 cast; per-channel scale is
    # applied once at the end) and accumulate the layer-2 partial product
    # directly into the resident f32 output block.
    w2 = w2_ref[...].astype(jnp.float32)
    o_ref[...] += jnp.dot(h, w2, preferred_element_type=jnp.float32)

    @pl.when(k == pl.num_programs(1) - 1)
    def _():
        y = o_ref[...] * w2s_ref[...] + b2_ref[...]
        o_ref[...] = jax.nn.sigmoid(y)


@jax.jit
def decoder_forward(z, w1p, b1p, w2q, w2s, b2p):
    """z: (B, NZ) float32; params from prepare_params()."""
    B = z.shape[0]
    b_pad = max(16, -(-B // 16) * 16)   # bf16 packs 16 rows per sublane tile

    zp = jnp.zeros((b_pad, NZ_PAD), jnp.bfloat16)
    zp = zp.at[:B, :NZ].set(z.astype(jnp.bfloat16))

    grid = (N_TILES, K_STEPS)   # ("parallel", "arbitrary"); reduction axis last

    bytes_accessed = (
        b_pad * NZ_PAD * 2                         # z (bf16)
        + N_TILES * (NZ_PAD * NH3_PAD * 2          # W1 (bf16, once per n-tile)
                     + NH3_PAD * 4)                # b1 (f32, once per n-tile)
        + NH3_PAD * NIN_PAD * 1                    # W2 (int8)
        + 2 * NIN_PAD * 4                          # scale + b2 (f32)
        + b_pad * NIN_PAD * 4)                     # output (f32)
    cost = pl.CostEstimate(
        flops=2 * b_pad * (N_TILES * NZ_PAD * NH3_PAD + NH3_PAD * NIN_PAD),
        transcendentals=b_pad * NIN_PAD,
        bytes_accessed=bytes_accessed)

    out_pad = pl.pallas_call(
        decoder_kernel,
        out_shape=jax.ShapeDtypeStruct((b_pad, NIN_PAD), jnp.float32),
        grid_spec=pltpu.PrefetchScalarGridSpec(
            num_scalar_prefetch=0,
            grid=grid,
            in_specs=[
                pl.BlockSpec((b_pad, NZ_PAD), lambda n, k: (0, 0)),   # z (resident)
                pl.BlockSpec((NZ_PAD, TK), lambda n, k: (0, k)),      # W1[:, ktile]
                pl.BlockSpec((1, TK), lambda n, k: (0, k)),           # b1[ktile]
                pl.BlockSpec((None, TK, TN), lambda n, k: (n, k, 0)), # W2 slab (pre-blocked per n-tile)
                pl.BlockSpec((1, TN), lambda n, k: (0, n)),           # per-channel scale
                pl.BlockSpec((1, TN), lambda n, k: (0, n)),           # b2[ntile]
            ],
            out_specs=pl.BlockSpec((b_pad, TN), lambda n, k: (0, n)),
        ),
        compiler_params=pltpu.CompilerParams(
            dimension_semantics=("parallel", "arbitrary"),
            vmem_limit_bytes=16 << 20,   # footprint is ~5 MiB; plenty of headroom
        ),
        cost_estimate=cost,
    )(zp, w1p, b1p, w2q, w2s, b2p)

    return out_pad[:B, :NIN].astype(z.dtype)


def init_params(key, nz=NZ, nh3=NH3, nin=NIN, dtype=jnp.float32):
    """Deterministic init mimicking PyTorch nn.Linear default U[-1/sqrt(fan_in), +]."""
    k1, k2, k3, k4 = jax.random.split(key, 4)
    bound1 = 1.0 / (nz ** 0.5)
    bound2 = 1.0 / (nh3 ** 0.5)
    w1 = jax.random.uniform(k1, (nz, nh3), dtype, -bound1, bound1)
    b1 = jax.random.uniform(k2, (1, nh3), dtype, -bound1, bound1)
    w2 = jax.random.uniform(k3, (nh3, nin), dtype, -bound2, bound2)
    b2 = jax.random.uniform(k4, (1, nin), dtype, -bound2, bound2)
    return w1, b1, w2, b2


def prepare_params(w1, b1, w2, b2):
    """Zero-pad to lane-aligned shapes, cast W1 to bf16, quantize W2 to int8
    with per-output-channel f32 scales, and pre-block W2 per output tile."""
    w1p = jnp.zeros((NZ_PAD, NH3_PAD), jnp.bfloat16)
    w1p = w1p.at[:NZ, :NH3].set(w1.astype(jnp.bfloat16))
    b1p = jnp.zeros((1, NH3_PAD), jnp.float32).at[:, :NH3].set(b1.astype(jnp.float32))
    b2p = jnp.zeros((1, NIN_PAD), jnp.float32).at[:, :NIN].set(b2.astype(jnp.float32))

    w2f = jnp.zeros((NH3_PAD, NIN_PAD), jnp.float32).at[:NH3, :NIN].set(w2.astype(jnp.float32))
    col_max = jnp.max(jnp.abs(w2f), axis=0)
    scale = jnp.where(col_max > 0, col_max / 127.0, 1.0)
    w2q = jnp.clip(jnp.round(w2f / scale), -127.0, 127.0).astype(jnp.int8)
    # Pre-block so each n-tile's W2 is one contiguous slab in HBM:
    # (NH3_PAD, NIN_PAD) -> (N_TILES, NH3_PAD, TN)
    w2q = w2q.reshape(NH3_PAD, N_TILES, TN).transpose(1, 0, 2)
    w2s = scale.reshape(1, NIN_PAD).astype(jnp.float32)
    return w1p, b1p, w2q, w2s, b2p


def reference_forward(z, w1, b1, w2, b2):
    h = jnp.maximum(z @ w1 + b1, 0.0)
    return jax.nn.sigmoid(h @ w2 + b2)


if __name__ == "__main__":
    key = jax.random.PRNGKey(0)
    kz, kp = jax.random.split(key)

    batch = 8
    z = jax.random.normal(kz, (batch, NZ), jnp.float32)
    w1, b1, w2, b2 = init_params(kp)
    w1p, b1p, w2q, w2s, b2p = prepare_params(w1, b1, w2, b2)

    out = decoder_forward(z, w1p, b1p, w2q, w2s, b2p)
    out = jax.block_until_ready(out)

    # Sanity check against a pure-JAX f32 reference.  Tolerance accounts for
    # bf16 z/W1 rounding and int8 per-channel W2 quantization (h and all
    # accumulation stay f32).
    ref = reference_forward(z, w1, b1, w2, b2)
    assert out.shape == (batch, NIN), out.shape
    err = float(jnp.max(jnp.abs(out - ref)))
    assert err < 2e-2, err

    print("KERNEL_OK")
</pallas_src>

<mosaic_0001>
module attributes {stable_mosaic.version = 11 : i64} {
  func.func @decoder_kernel(%arg0: i32, %arg1: i32, %arg2: memref<16x32xbf16, #tpu.memory_space<vmem>>, %arg3: memref<32x2048xbf16, #tpu.memory_space<vmem>>, %arg4: memref<1x2048xf32, #tpu.memory_space<vmem>>, %arg5: memref<1x2048x1024xi8, #tpu.memory_space<vmem>>, %arg6: memref<1x1024xf32, #tpu.memory_space<vmem>>, %arg7: memref<1x1024xf32, #tpu.memory_space<vmem>>, %arg8: memref<16x1024xf32, #tpu.memory_space<vmem>>) attributes {dimension_semantics = [#tpu.dimension_semantics<parallel>, #tpu.dimension_semantics<arbitrary>], iteration_bounds = array<i64: 1, 2>, scalar_prefetch = 0 : i64, scratch_operands = 0 : i64, tpu.core_type = #tpu.core_type<tc>, window_params = [{pipeline_mode = #tpu.pipeline_mode<synchronous>, transform_indices = @transform_0, window_bounds = array<i64: 16, 32>}, {transform_indices = @transform_1, window_bounds = array<i64: 32, 2048>}, {transform_indices = @transform_2, window_bounds = array<i64: 1, 2048>}, {transform_indices = @transform_3, window_bounds = array<i64: 1, 2048, 1024>}, {transform_indices = @transform_4, window_bounds = array<i64: 1, 1024>}, {transform_indices = @transform_5, window_bounds = array<i64: 1, 1024>}, {transform_indices = @transform_6, window_bounds = array<i64: 16, 1024>}]} {
    %c0_i32 = arith.constant 0 : i32
    %0 = arith.cmpi eq, %arg1, %c0_i32 : i32
    %1 = arith.extui %0 : i1 to i32
    %c0_i32_0 = arith.constant 0 : i32
    %2 = arith.cmpi ne, %1, %c0_i32_0 : i32
    scf.if %2 {
      %cst_16 = arith.constant 0.000000e+00 : f32
      %21 = vector.broadcast %cst_16 : f32 to vector<16x1024xf32>
      %c0_17 = arith.constant 0 : index
      %c0_18 = arith.constant 0 : index
      %22 = vector.load %arg8[%c0_17, %c0_18] : memref<16x1024xf32, #tpu.memory_space<vmem>>, vector<16x1024xf32>
      tpu.vector_store %arg8[%c0_17, %c0_18], %21 {strides = array<i32>} : memref<16x1024xf32, #tpu.memory_space<vmem>>, vector<16x1024xf32>,
    } else {
    }
    %c0 = arith.constant 0 : index
    %c0_1 = arith.constant 0 : index
    %3 = vector.load %arg2[%c0, %c0_1] : memref<16x32xbf16, #tpu.memory_space<vmem>>, vector<16x32xbf16>
    %c0_2 = arith.constant 0 : index
    %c0_3 = arith.constant 0 : index
    %4 = vector.load %arg3[%c0_2, %c0_3] : memref<32x2048xbf16, #tpu.memory_space<vmem>>, vector<32x2048xbf16>
    %cst = arith.constant dense<0.000000e+00> : vector<16x2048xf32>
    %5 = tpu.matmul %3, %4, %cst {dimension_numbers = #tpu.dot_dimension_numbers<[1], [0], [0], [1], [0, 0, 1, 1], [], []>} : vector<16x32xbf16>, vector<32x2048xbf16>, vector<16x2048xf32> -> vector<16x2048xf32>
    %c0_4 = arith.constant 0 : index
    %c0_5 = arith.constant 0 : index
    %6 = vector.load %arg4[%c0_4, %c0_5] : memref<1x2048xf32, #tpu.memory_space<vmem>>, vector<1x2048xf32>
    %7 = vector.broadcast %6 : vector<1x2048xf32> to vector<16x2048xf32>
    %8 = arith.addf %5, %7 : vector<16x2048xf32>
    %cst_6 = arith.constant 0.000000e+00 : f32
    %9 = vector.broadcast %cst_6 : f32 to vector<16x2048xf32>
    %10 = arith.maximumf %8, %9 : vector<16x2048xf32>
    %c0_7 = arith.constant 0 : index
    %c0_8 = arith.constant 0 : index
    %c0_9 = arith.constant 0 : index
    %11 = vector.load %arg5[%c0_7, %c0_8, %c0_9] : memref<1x2048x1024xi8, #tpu.memory_space<vmem>>, vector<1x2048x1024xi8>
    %12 = vector.shape_cast %11 : vector<1x2048x1024xi8> to vector<2048x1024xi8>
    %13 = arith.sitofp %12 : vector<2048x1024xi8> to vector<2048x1024xf32>
    %c0_10 = arith.constant 0 : index
    %c0_11 = arith.constant 0 : index
    %14 = vector.load %arg8[%c0_10, %c0_11] : memref<16x1024xf32, #tpu.memory_space<vmem>>, vector<16x1024xf32>
    %cst_12 = arith.constant dense<0.000000e+00> : vector<16x1024xf32>
    %15 = tpu.matmul %10, %13, %cst_12 {dimension_numbers = #tpu.dot_dimension_numbers<[1], [0], [0], [1], [0, 0, 1, 1], [], []>} : vector<16x2048xf32>, vector<2048x1024xf32>, vector<16x1024xf32> -> vector<16x1024xf32>
    %16 = arith.addf %14, %15 : vector<16x1024xf32>
    %c0_13 = arith.constant 0 : index
    %c0_14 = arith.constant 0 : index
    %17 = vector.load %arg8[%c0_13, %c0_14] : memref<16x1024xf32, #tpu.memory_space<vmem>>, vector<16x1024xf32>
    tpu.vector_store %arg8[%c0_13, %c0_14], %16 {strides = array<i32>} : memref<16x1024xf32, #tpu.memory_space<vmem>>, vector<16x1024xf32>,
    %c1_i32 = arith.constant 1 : i32
    %18 = arith.cmpi eq, %arg1, %c1_i32 : i32
    %19 = arith.extui %18 : i1 to i32
    %c0_i32_15 = arith.constant 0 : i32
    %20 = arith.cmpi ne, %19, %c0_i32_15 : i32
    scf.if %20 {
      %c0_16 = arith.constant 0 : index
      %c0_17 = arith.constant 0 : index
      %21 = vector.load %arg8[%c0_16, %c0_17] : memref<16x1024xf32, #tpu.memory_space<vmem>>, vector<16x1024xf32>
      %c0_18 = arith.constant 0 : index
      %c0_19 = arith.constant 0 : index
      %22 = vector.load %arg6[%c0_18, %c0_19] : memref<1x1024xf32, #tpu.memory_space<vmem>>, vector<1x1024xf32>
      %23 = vector.broadcast %22 : vector<1x1024xf32> to vector<16x1024xf32>
      %24 = arith.mulf %21, %23 : vector<16x1024xf32>
      %c0_20 = arith.constant 0 : index
      %c0_21 = arith.constant 0 : index
      %25 = vector.load %arg7[%c0_20, %c0_21] : memref<1x1024xf32, #tpu.memory_space<vmem>>, vector<1x1024xf32>
      %26 = vector.broadcast %25 : vector<1x1024xf32> to vector<16x1024xf32>
      %27 = arith.addf %24, %26 : vector<16x1024xf32>
      %28 = arith.negf %27 : vector<16x1024xf32>
      %29 = math.exp %28 : vector<16x1024xf32>
      %cst_22 = arith.constant 1.000000e+00 : f32
      %30 = vector.broadcast %cst_22 : f32 to vector<16x1024xf32>
      %31 = arith.addf %30, %29 : vector<16x1024xf32>
      %32 = arith.divf %30, %31 : vector<16x1024xf32>
      %c0_23 = arith.constant 0 : index
      %c0_24 = arith.constant 0 : index
      %33 = vector.load %arg8[%c0_23, %c0_24] : memref<16x1024xf32, #tpu.memory_space<vmem>>, vector<16x1024xf32>
      tpu.vector_store %arg8[%c0_23, %c0_24], %32 {strides = array<i32>} : memref<16x1024xf32, #tpu.memory_space<vmem>>, vector<16x1024xf32>,
    } else {
    }
    return
  }
  func.func @transform_0(%arg0: i32, %arg1: i32) -> (i32, i32) {
    %c0_i32 = arith.constant 0 : i32
    %c0_i32_0 = arith.constant 0 : i32
    %c0_i32_1 = arith.constant 0 : i32
    return %c0_i32, %c0_i32_0 : i32, i32
  }
  func.func @transform_1(%arg0: i32, %arg1: i32) -> (i32, i32) {
    %c0_i32 = arith.constant 0 : i32
    %c0_i32_0 = arith.constant 0 : i32
    return %c0_i32, %arg1 : i32, i32
  }
  func.func @transform_2(%arg0: i32, %arg1: i32) -> (i32, i32) {
    %c0_i32 = arith.constant 0 : i32
    %c0_i32_0 = arith.constant 0 : i32
    return %c0_i32, %arg1 : i32, i32
  }
  func.func @transform_3(%arg0: i32, %arg1: i32) -> (i32, i32, i32) {
    %c0_i32 = arith.constant 0 : i32
    %c0_i32_0 = arith.constant 0 : i32
    return %arg0, %arg1, %c0_i32 : i32, i32, i32
  }
  func.func @transform_4(%arg0: i32, %arg1: i32) -> (i32, i32) {
    %c0_i32 = arith.constant 0 : i32
    %c0_i32_0 = arith.constant 0 : i32
    return %c0_i32, %arg0 : i32, i32
  }
  func.func @transform_5(%arg0: i32, %arg1: i32) -> (i32, i32) {
    %c0_i32 = arith.constant 0 : i32
    %c0_i32_0 = arith.constant 0 : i32
    return %c0_i32, %arg0 : i32, i32
  }
  func.func @transform_6(%arg0: i32, %arg1: i32) -> (i32, i32) {
    %c0_i32 = arith.constant 0 : i32
    %c0_i32_0 = arith.constant 0 : i32
    return %c0_i32, %arg0 : i32, i32
  }
}

</mosaic_0001>

<bundles_post_ra>
// kernel: decoder_forward.1
= control target key start
LH: loop header
LB: loop body
LE: loop exit
PB: predicated region body
PF: predicated region fallthrough
CT: control target
= control target key end

     0   :  { %s12558_s0 = inlined_call_operand.vmem [shape: bf16[16,32], index: 0, kind: input, shape index: {}]   ;;  %s12559_s1 = inlined_call_operand.hbm [shape: bf16[32,4096], index: 1, kind: input, shape index: {}]   ;;  %s12560_s2 = inlined_call_operand.hbm [shape: f32[1,4096], index: 2, kind: input, shape index: {}]   ;;  %s12561_s3 = inlined_call_operand.hbm [shape: s8[1,4096,1024], index: 3, kind: input, shape index: {}]   ;;  %s12562_s4 = inlined_call_operand.hbm [shape: f32[1,1024], index: 4, kind: input, shape index: {}]   ;;  %s12563_s5 = inlined_call_operand.hbm [shape: f32[1,1024], index: 5, kind: input, shape index: {}]   ;;  %s12564_s6 = inlined_call_operand.vmem [shape: f32[16,1024], index: 6, kind: output, shape index: {}]  }
   0x1   :  { %12594 = sst [smem:[#allocation27_spill]] %s12559_s1 }
   0x2   :  { %12595 = sst [smem:[#allocation28_spill]] %s12560_s2 }
   0x3   :  { %12596 = sst [smem:[#allocation29_spill]] %s12562_s4 }
   0x4   :  { %12597 = sst [smem:[#allocation30_spill]] %s12563_s5 }
   0x5   :  { %11 = vsyncpa [#allocation3], 0 }
   0x6   :  { %13 = vsyncpa [#allocation3 + $0x1], 0 }
   0x7   :  { %14 = vsyncpa [#allocation5], 0 }
   0x8   :  { %16 = vsyncpa [#allocation5 + $0x1], 0 }
   0x9   :  { %17 = vsyncpa [#allocation8], 0  ;;  %s11138_s21 = smov 0   ;;  %s11140_s22 = smov 0  }
   0xa   :  { %s11142_s23 = smov 0   ;;  %s11144_s24 = smov 0  }
   0xb   :  { %s11146_s25 = smov 0   ;;  %s11148_s26 = smov 0  }
   0xc LB: > { %s12565_s27 = sadd.s32 4294967295, %s11091_s26   ;;  %p76_p0 = scmp.ne.s32.totalorder %s11075_s22, %s11071_s21  ;;  %s11091_s26 = sphi %s11148_s26, %s23_s26   ;;  %s11087_s25 = sphi %s11146_s25, %s12649_s25   ;;  %s11083_s24 = sphi %s11144_s24, %s12648_s24   ;;  %s11079_s23 = sphi %s11142_s23, %s12647_s23   ;;  %s11075_s22 = sphi %s11140_s22, %s12646_s22   ;;  %s11071_s21 = sphi %s11138_s21, %s12645_s21  }
   0xd   : > { %p11170_p1 = scmp.eq.s32.totalorder %s12565_s27, 0  ;;  %p8606_p2 = scmp.ge.s32.totalorder %s11091_s26, 1 }
   0xe   : > { %p219_p3 = scmp.lt.s32.totalorder %s11091_s26, 3  ;;  %s11093_s7 = smov [#allocation7]  }
   0xf   : > { %s12598_s28 = scalar_select %p11170_p1, 1, 0 }
  0x10   : > { %p11178_p4 = por %p11170_p1, %p76_p0  ;;  %p11182_p5 = pnand %p8606_p2, %p219_p3 }
  0x11   : > { %s238_s8 = sshll.u32 %s11093_s7, 4  ;;  %s32_s10 = sadd.s32 1, %s11087_s25  ;;  %s239_s8 = int_to_ptr.vmem [resolvable:$true] %s238_s8 }
  0x12   : > { %p10755_p6 = pneg %p11182_p5  ;;  %s63_s11 = sadd.s32 1, %s11079_s23 }
  0x13   : > { %p33_p8 = scmp.ge.s32.totalorder %s32_s10, 2  ;;  %s10908_s12 = scalar_lea.vmem %s239_s8, 128 }
  0x14   : > { %p11190_p7 = pnand %p10755_p6, %p11170_p1  ;;  %p10909_p10 = scmp.ne.s32.totalorder %s239_s8, %s10908_s12 }
  0x15   : > { %p10916_p13 = scmp.lt.s32.totalorder %s239_s8, %s239_s8  ;;  %p10917_p0 = scmp.lt.s32.totalorder %s10908_s12, %s10908_s12 }
  0x16   : > { %p10899_p9 = pneg %p11190_p7 }
  0x17   : > { %p10918_p2 = por %p10917_p0, %p10916_p13 }
  0x18   : > { %p10911_p11 = pnand %p10909_p10, %p10899_p9 }
  0x1a   : > { %p10912_p12 = pneg %p10911_p11 }
  0x1c   : > { %p10919_p3 = pnand %p10918_p2, %p10912_p12 }
  0x1e   : > { %10922 = shalt.err (!%p10919_p3)
}
  0x1f   : > { %s12602_s4 = sld [smem:[#allocation29_spill]]  ;;  %s12651_s10 = smov (%p33_p8, %s32_s10), 0 }
  0x20   : > { %12603 = sst [smem:[#allocation13_spill]] %s12651_s10  ;;  %p70_p6 = scmp.ne.s32.totalorder %s11079_s23, %s11075_s22 }
  0x21   : > { %p71_p10 = scmp.eq.s32.totalorder %s11091_s26, 0  ;;  %s60_s15 = ssub.s32 %s11087_s25, %s12651_s10 }
  0x22   : > { %p10774_p11 = scmp.lt.s32.totalorder %s11091_s26, 2  ;;  %p61_p12 = scmp.eq.s32.totalorder %s60_s15, 0 }
  0x23   : > { %p72_p13 = por %p71_p10, %p70_p6  ;;  %s11215_s16 = sand.u32 1, %s11079_s23  }
  0x24   : > { %s284_s17 = sand.u32 1, %s11091_s26   ;;  %s8613_s21 = sshll.u32 %s11215_s16, 4 }
  0x25   : > { %10758 = dma.hbm_to_vmem [thread:$0]  (!%p11190_p7), %s12602_s4, 128, %s239_s8, [#allocation8]  }
  0x26   : > { %s11219_s18 = scalar_select %p61_p12, %s11079_s23, %s63_s11  }
  0x27   : > { %p11222_p0 = pnand %p10774_p11, %p72_p13  ;;  %s8690_s7 = sshll.u32 %s11087_s25, 8 }
  0x28   : > { %12604 = sst [smem:[#allocation14_spill]] %s11219_s18  ;;  %s288_s8 = scalar_lea.vmem [#allocation4], %s8613_s21 }
  0x29   : > { %s296_s12 = sshll.u32 %s288_s8, 4  ;;  %s12606_s2 = sld [smem:[#allocation28_spill]]  ;;  %s297_s12 = int_to_ptr.vmem [resolvable:$true] %s296_s12 }
  0x2a   : > { %s11231_s27 = scalar_lea.sflag [#allocation5], %s284_s17  ;;  %p12566_p8 = pneg %p11222_p0 }
  0x2b   : > { %s10936_s11 = scalar_lea.vmem %s297_s12, 256  ;;  %s11094_s19 = smov [#allocation4]  }
  0x2c   : > { %p10937_p2 = scmp.ne.s32.totalorder %s297_s12, %s10936_s11  ;;  %s10941_s4 = sshll.u32 %s11094_s19, 4  ;;  %s10942_s4 = int_to_ptr.vmem [resolvable:$false] %s10941_s4 }
  0x2d   : > { %s10943_s21 = scalar_lea.vmem %s10942_s4, 512  ;;  %p10944_p10 = scmp.lt.s32.totalorder %s297_s12, %s10942_s4 }
  0x2e   : > { %p10939_p3 = pnand %p10937_p2, %p12566_p8  ;;  %p10945_p11 = scmp.lt.s32.totalorder %s10943_s21, %s10936_s11 }
  0x2f   : > { %s294_s15 = scalar_lea.hbm %s12606_s2, %s8690_s7 }
  0x30   : > { %p10940_p6 = pneg %p10939_p3  ;;  %p10946_p12 = por %p10945_p11, %p10944_p10 }
  0x32   : > { %p10947_p13 = pnand %p10946_p12, %p10940_p6 }
  0x34   : > { %10950 = shalt.err (!%p10947_p13)
}
  0x35   : > { %10768 = dma.hbm_to_vmem [thread:$0]  (!%p11222_p0), %s294_s15, 256, %s297_s12, %s11231_s27  }
  0x36   : > { %s11095_s7 = smov [#allocation9]  }
  0x37   : > { %s252_s8 = sshll.u32 %s11095_s7, 4  ;;  %s253_s8 = int_to_ptr.vmem [resolvable:$true] %s252_s8 }
  0x38   : > { %s10962_s13 = scalar_lea.vmem %s253_s8, 128  ;;  %p10970_p1 = scmp.lt.s32.totalorder %s253_s8, %s253_s8 }
  0x39   : > { %p10963_p2 = scmp.ne.s32.totalorder %s253_s8, %s10962_s13  ;;  %p10971_p10 = scmp.lt.s32.totalorder %s10962_s13, %s10962_s13 }
  0x3b   : > { %p10965_p3 = pnand %p10963_p2, %p10899_p9  ;;  %p10972_p6 = por %p10971_p10, %p10970_p1 }
  0x3d   : > { %p10966_p8 = pneg %p10965_p3 }
  0x3f   : > { %p10973_p11 = pnand %p10972_p6, %p10966_p8 }
  0x41   : > { %10976 = shalt.err (!%p10973_p11)
}
  0x42   : > { %s12607_s5 = sld [smem:[#allocation30_spill]]  ;;  %s8689_s12 = sshll.u32 %s11087_s25, 10 }
  0x43   : > { %s12608_s14 = sshll.u32 %s11215_s16, 8  ;;  %s12609_s1 = sld [smem:[#allocation27_spill]] }
  0x44   : > { %s267_s15 = scalar_lea.vmem [#allocation2], %s12608_s14  ;;  %s264_s17 = scalar_lea.sflag [#allocation3], %s11215_s16 }
  0x45   : > { %s274_s11 = sshll.u32 %s267_s15, 4  ;;  %p12610_p9 = pneg %p11222_p0  ;;  %s275_s11 = int_to_ptr.vmem [resolvable:$true] %s274_s11 }
  0x46   : > { %s10990_s2 = scalar_lea.vmem %s275_s11, 4096  ;;  %s11096_s9 = smov [#allocation2]  }
  0x47   : > { %p10991_p1 = scmp.ne.s32.totalorder %s275_s11, %s10990_s2  ;;  %s10995_s4 = sshll.u32 %s11096_s9, 4  ;;  %s10996_s4 = int_to_ptr.vmem [resolvable:$false] %s10995_s4 }
  0x48   : > { %10761 = dma.hbm_to_vmem [thread:$0]  (!%p11190_p7), %s12607_s5, 128, %s253_s8, [#allocation8]  }
  0x49   : > { %s273_s13 = scalar_lea.hbm %s12609_s1, %s8689_s12  ;;  %p10993_p8 = pnand %p10991_p1, %p12610_p9 }
  0x4a   : > { %s10997_s8 = scalar_lea.vmem %s10996_s4, 8192  ;;  %p10998_p7 = scmp.lt.s32.totalorder %s275_s11, %s10996_s4 }
  0x4b   : > { %p10994_p12 = pneg %p10993_p8  ;;  %p10999_p13 = scmp.lt.s32.totalorder %s10997_s8, %s10990_s2 }
  0x4d   : > { %p11000_p2 = por %p10999_p13, %p10998_p7 }
  0x4f   : > { %p11001_p3 = pnand %p11000_p2, %p10994_p12 }
  0x51   : > { %11004 = shalt.err (!%p11001_p3)
}
  0x52   : > { %s11097_s19 = smov 2048   ;;  %s11098_s12 = smov 1024  }
  0x53   : > { %s11099_s14 = smov 64   ;;  %s8692_s15 = sshll.u32 %s11087_s25, 16 }
  0x54   : > { %10765 = dma.hbm_to_vmem [thread:$0]  (!%p11222_p0), %s273_s13, 4096, %s275_s11, %s264_s17, %s11097_s19, %s11098_s12, %s11099_s14  }
  0x55   : > { %s12611_s21 = sshll.u32 %s11215_s16, 12  ;;  %s316_s2 = scalar_lea.hbm %s12561_s3, %s8692_s15 }
  0x56   : > { %s307_s7 = scalar_lea.vmem [#allocation6], %s12611_s21  ;;  %p12612_p6 = pmov %p12610_p9 }
  0x57   : > { %s317_s9 = sshll.u32 %s307_s7, 4  ;;  %s11100_s8 = smov [#allocation6]   ;;  %s318_s9 = int_to_ptr.vmem [resolvable:$true] %s317_s9 }
  0x58   : > { %s11018_s4 = scalar_lea.vmem %s318_s9, 65536  ;;  %s11023_s10 = sshll.u32 %s11100_s8, 4  ;;  %s11024_s10 = int_to_ptr.vmem [resolvable:$false] %s11023_s10 }
  0x59   : > { %p11019_p10 = scmp.ne.s32.totalorder %s318_s9, %s11018_s4  ;;  %s11025_s18 = scalar_lea.vmem %s11024_s10, 131072 }
  0x5a   : > { %p11026_p9 = scmp.lt.s32.totalorder %s318_s9, %s11024_s10  ;;  %p11027_p8 = scmp.lt.s32.totalorder %s11025_s18, %s11018_s4 }
  0x5b   : > { %p11021_p11 = pnand %p11019_p10, %p12612_p6 }
  0x5c   : > { %p11028_p12 = por %p11027_p8, %p11026_p9 }
  0x5d   : > { %p11022_p1 = pneg %p11021_p11 }
  0x5f   : > { %p11029_p7 = pnand %p11028_p12, %p11022_p1 }
  0x61   : > { %11032 = shalt.err (!%p11029_p7)
}
  0x62   : > { %10771 = dma.hbm_to_vmem [thread:$0]  (!%p11222_p0), %s316_s2, 65536, %s318_s9, %s11231_s27, %s11098_s12, %s11098_s12, %s11099_s14  }
  0x63   : > { %329 = sbr.rel (%p11182_p5) target bundleno = 1580 (0x62c), region = 44 }
  0x68   : > { %s331_s1 = sand.u32 1, %s11075_s22  }
  0x69   : > { %s8621_s5 = sshll.u32 %s331_s1, 8  ;;  %s332_s16 = scalar_lea.sflag [#allocation3], %s331_s1 }
  0x6a   : > { %s11277_s17 = scalar_lea.vmem [#allocation2], %s8621_s5 }
  0x6b   : > { %11058 = dma.done.wait (%p11178_p4), %s332_s16, 4096  }
  0x6c   : > { %11060 = vsyncadd (%p11178_p4), %s332_s16, 4294963200  ;;  %s12613_s10 = sadd.s32 4294967295, %s11091_s26   ;;  %s8622_s27 = sshll.u32 %s331_s1, 4 }
  0x6d   : > { %s340_s18 = sand.u32 1, %s12613_s10   ;;  %s11285_s30 = scalar_lea.vmem [#allocation4], %s8622_s27 }
  0x6e   : > { %s341_s20 = scalar_lea.sflag [#allocation5], %s340_s18 }
  0x6f   : > { %11062 = dma.done.wait (%p11178_p4), %s341_s20, 65792  }
  0x70   : > { %11064 = vsyncadd (%p11178_p4), %s341_s20, 4294901504  ;;  %s8623_s11 = sshll.u32 %s331_s1, 12  ;;  %p12614_p5 = scmp.ne.s32.totalorder %s12598_s28, 0 }
  0x71   : > { %s11291_s13 = scalar_lea.vmem [#allocation6], %s8623_s11 }
  0x72   : > { %11066 = dma.done.wait (%p12614_p5), [#allocation8], 256  }
  0x73   : > { %11068 = vsyncadd (%p12614_p5), [#allocation8], 4294967040  ;;  %p8626_p0 = scmp.ne.s32.totalorder %s11083_s24, 0 }
  0x75   : > { %415 = sbr.rel (%p8626_p0) target bundleno = 131 (0x83), region = 68 }
  0x7a   : > { %v11101_v0 = vmov 0.0  }
  0x7b   : > { %416 = vst [vmem:[%s12564_s6] sm:$0xff] %v11101_v0  ;;  %417 = vst [vmem:[%s12564_s6 + $0x8] sm:$0xff] %v11101_v0 }
  0x7c   : > { %418 = vst [vmem:[%s12564_s6 + $0x10] sm:$0xff] %v11101_v0  ;;  %419 = vst [vmem:[%s12564_s6 + $0x18] sm:$0xff] %v11101_v0 }
  0x7d   : > { %420 = vst [vmem:[%s12564_s6 + $0x20] sm:$0xff] %v11101_v0  ;;  %421 = vst [vmem:[%s12564_s6 + $0x28] sm:$0xff] %v11101_v0 }
  0x7e   : > { %422 = vst [vmem:[%s12564_s6 + $0x30] sm:$0xff] %v11101_v0  ;;  %423 = vst [vmem:[%s12564_s6 + $0x38] sm:$0xff] %v11101_v0 }
  0x7f   : > { %424 = vst [vmem:[%s12564_s6 + $0x40] sm:$0xff] %v11101_v0  ;;  %425 = vst [vmem:[%s12564_s6 + $0x48] sm:$0xff] %v11101_v0 }
  0x80   : > { %426 = vst [vmem:[%s12564_s6 + $0x50] sm:$0xff] %v11101_v0  ;;  %427 = vst [vmem:[%s12564_s6 + $0x58] sm:$0xff] %v11101_v0 }
  0x81   : > { %428 = vst [vmem:[%s12564_s6 + $0x60] sm:$0xff] %v11101_v0  ;;  %429 = vst [vmem:[%s12564_s6 + $0x68] sm:$0xff] %v11101_v0 }
  0x82   : > { %430 = vst [vmem:[%s12564_s6 + $0x70] sm:$0xff] %v11101_v0  ;;  %431 = vst [vmem:[%s12564_s6 + $0x78] sm:$0xff] %v11101_v0 }
  0x83 PF: > { %v450_v1 = vld [vmem:[%s11277_s17 + $0x80] sm:$0xff]  ;;  %v451_v3 = vld [vmem:[%s11277_s17 + $0x88] sm:$0xff]  ;;  %v11102_v9 = vmov 0   ;;  %v452_v16 = vld [vmem:[%s11277_s17 + $0x90] sm:$0xff]  ;;  %vm715_vm0 = vcmask 261120   ;;  %p8668_p4 = scmp.ne.s32.totalorder %s11083_s24, 1 }
  0x84   : > { %v458_v2 = vld [vmem:[%s11277_s17 + $0xc0] sm:$0xff]  ;;  %v459_v5 = vld [vmem:[%s11277_s17 + $0xc8] sm:$0xff]  ;;  %751 = vmatprep.mubr.bf16.mxu0 %v11102_v9  ;;  %794 = vmatprep.mubr.bf16.mxu1 %v11102_v9  ;;  %v460_v18 = vld [vmem:[%s11277_s17 + $0xd0] sm:$0xff] }
  0x85   : > { %v8645_v4 = vcombine.high %v450_v1, %v458_v2  ;;  %v8644_v6 = vcombine.low %v450_v1, %v458_v2  ;;  %v434_v7 = vld [vmem:[%s11277_s17] sm:$0xff]  ;;  %v8647_v10 = vcombine.high %v451_v3, %v459_v5  ;;  %v8646_v11 = vcombine.low %v451_v3, %v459_v5  ;;  %v435_v13 = vld [vmem:[%s11277_s17 + $0x8] sm:$0xff]  ;;  %v453_v19 = vld [vmem:[%s11277_s17 + $0x98] sm:$0xff] }
  0x86   : > { %v442_v8 = vld [vmem:[%s11277_s17 + $0x40] sm:$0xff]  ;;  %v443_v14 = vld [vmem:[%s11277_s17 + $0x48] sm:$0xff]  ;;  %v461_v20 = vld [vmem:[%s11277_s17 + $0xd8] sm:$0xff]  ;;  %v8649_v22 = vcombine.high %v452_v16, %v460_v18  ;;  %v8648_v29 = vcombine.low %v452_v16, %v460_v18 }
  0x87   : > { %v8629_v12 = vcombine.high %v434_v7, %v442_v8  ;;  %731 = vmatprep.subr.bf16.mxu0 %v8645_v4  ;;  %v8631_v15 = vcombine.high %v435_v13, %v443_v14  ;;  %774 = vmatprep.subr.bf16.mxu1 %v8647_v10  ;;  %v8628_v17 = vcombine.low %v434_v7, %v442_v8  ;;  %v436_v24 = vld [vmem:[%s11277_s17 + $0x10] sm:$0xff]  ;;  %v11365_v26 = vld [vmem:[%s12558_s0] sm:$0xff]   ;;  %v437_v27 = vld [vmem:[%s11277_s17 + $0x18] sm:$0xff] }
  0x88   : > { %732 = vmatpush1.bf16.msra.mxu0 %v8644_v6  ;;  %775 = vmatpush1.bf16.msra.mxu1 %v8646_v11  ;;  %v8630_v21 = vcombine.low %v435_v13, %v443_v14  ;;  %v8651_v23 = vcombine.high %v453_v19, %v461_v20  ;;  %v444_v25 = vld [vmem:[%s11277_s17 + $0x50] sm:$0xff]  ;;  %v445_v28 = vld [vmem:[%s11277_s17 + $0x58] sm:$0xff]  ;;  %v8650_v30 = vcombine.low %v453_v19, %v461_v20  ;;  %v454_v33 = vld [vmem:[%s11277_s17 + $0xa0] sm:$0xff] }
  0x89   : > { %733 = vmatprep.subr.bf16.mxu0 %v8629_v12  ;;  %776 = vmatprep.subr.bf16.mxu1 %v8631_v15  ;;  %v8633_v31 = vcombine.high %v436_v24, %v444_v25  ;;  %v8635_v32 = vcombine.high %v437_v27, %v445_v28  ;;  %v462_v34 = vld [vmem:[%s11277_s17 + $0xe0] sm:$0xff]  ;;  %v455_v35 = vld [vmem:[%s11277_s17 + $0xa8] sm:$0xff]  ;;  %v8632_v37 = vcombine.low %v436_v24, %v444_v25  ;;  %v456_v49 = vld [vmem:[%s11277_s17 + $0xb0] sm:$0xff] }
  0x8a   : > { %v463_v36 = vld [vmem:[%s11277_s17 + $0xe8] sm:$0xff]  ;;  %v8634_v38 = vcombine.low %v437_v27, %v445_v28  ;;  %v8653_v39 = vcombine.high %v454_v33, %v462_v34  ;;  %v438_v41 = vld [vmem:[%s11277_s17 + $0x20] sm:$0xff]  ;;  %v8652_v45 = vcombine.low %v454_v33, %v462_v34  ;;  %v464_v50 = vld [vmem:[%s11277_s17 + $0xf0] sm:$0xff] }
  0x8b   : > { %v8655_v40 = vcombine.high %v455_v35, %v463_v36  ;;  %v446_v42 = vld [vmem:[%s11277_s17 + $0x60] sm:$0xff]  ;;  %v439_v43 = vld [vmem:[%s11277_s17 + $0x28] sm:$0xff]  ;;  %v8654_v46 = vcombine.low %v455_v35, %v463_v36  ;;  %v457_v51 = vld [vmem:[%s11277_s17 + $0xb8] sm:$0xff]  ;;  %v8657_v55 = vcombine.high %v456_v49, %v464_v50  ;;  %v8656_v61 = vcombine.low %v456_v49, %v464_v50 }
  0x8c   : > { %734 = vmatpush1.bf16.msra.mxu0 %v8628_v17  ;;  %777 = vmatpush1.bf16.msra.mxu1 %v8630_v21  ;;  %v447_v44 = vld [vmem:[%s11277_s17 + $0x68] sm:$0xff]  ;;  %v8637_v47 = vcombine.high %v438_v41, %v446_v42  ;;  %v465_v52 = vld [vmem:[%s11277_s17 + $0xf8] sm:$0xff]  ;;  %v8636_v53 = vcombine.low %v438_v41, %v446_v42  ;;  %v440_v57 = vld [vmem:[%s11277_s17 + $0x30] sm:$0xff] }
  0x8d   : > { %817 = vmatprep.subr.bf16.mxu0 %v8649_v22  ;;  %860 = vmatprep.subr.bf16.mxu1 %v8651_v23  ;;  %v8639_v48 = vcombine.high %v439_v43, %v447_v44  ;;  %v8638_v54 = vcombine.low %v439_v43, %v447_v44  ;;  %v8659_v56 = vcombine.high %v457_v51, %v465_v52  ;;  %v448_v58 = vld [vmem:[%s11277_s17 + $0x70] sm:$0xff]  ;;  %v441_v59 = vld [vmem:[%s11277_s17 + $0x38] sm:$0xff]  ;;  %v1120_v1 = vld [vmem:[%s11291_s13 + $0xc8] sm:$0xff] }
  0x8e   : > { %v449_v60 = vld [vmem:[%s11277_s17 + $0x78] sm:$0xff]  ;;  %v8658_v62 = vcombine.low %v457_v51, %v465_v52  ;;  %v8641_v63 = vcombine.high %v440_v57, %v448_v58  ;;  %v1184_v2 = vld [vmem:[%s11291_s13 + $0x2c8] sm:$0xff]  ;;  %v8640_v3 = vcombine.low %v440_v57, %v448_v58  ;;  %v8693_v5 = vunpack.c.h.s8.bf16 %v1120_v1  ;;  %v1119_v6 = vld [vmem:[%s11291_s13 + $0xc0] sm:$0xff] }
  0x8f   : > { %8660 = vmatmul.mubr.msk.bf16.vlgmr.msra.gmra.mxu0 %vm715_vm0, %v11365_v26  ;;  %8661 = vmatmul.mubr.msk.bf16.vlgmr.msra.gmra.mxu1 %vm715_vm0, %v11365_v26  ;;  %v8643_v0 = vcombine.high %v441_v59, %v449_v60  ;;  %v8642_v4 = vcombine.low %v441_v59, %v449_v60  ;;  %v8757_v7 = vunpack.c.h.s8.bf16 %v1184_v2  ;;  %v1183_v8 = vld [vmem:[%s11291_s13 + $0x2c0] sm:$0xff]  ;;  %v8695_v10 = vunpack.c.h.s8.bf16 %v1119_v6  ;;  %v1112_v14 = vld [vmem:[%s11291_s13 + $0x88] sm:$0xff] }
  0x90   : > { %818 = vmatpush1.bf16.msra.mxu0 %v8648_v29  ;;  %861 = vmatpush1.bf16.msra.mxu1 %v8650_v30  ;;  %v8759_v11 = vunpack.c.h.s8.bf16 %v1183_v8  ;;  %v8697_v12 = vunpack.c.l.s8.bf16 %v1120_v1  ;;  %v8761_v13 = vunpack.c.l.s8.bf16 %v1184_v2  ;;  %v1176_v15 = vld [vmem:[%s11291_s13 + $0x288] sm:$0xff]  ;;  %v8763_v16 = vunpack.c.l.s8.bf16 %v1183_v8  ;;  %v1111_v18 = vld [vmem:[%s11291_s13 + $0x80] sm:$0xff] }
  0x91   : > { %819 = vmatprep.subr.bf16.mxu0 %v8633_v31  ;;  %862 = vmatprep.subr.bf16.mxu1 %v8635_v32  ;;  %v8701_v17 = vunpack.c.h.s8.bf16 %v1112_v14  ;;  %v8765_v19 = vunpack.c.h.s8.bf16 %v1176_v15  ;;  %v1175_v20 = vld [vmem:[%s11291_s13 + $0x280] sm:$0xff]  ;;  %v8703_v21 = vunpack.c.h.s8.bf16 %v1111_v18  ;;  %v8705_v23 = vunpack.c.l.s8.bf16 %v1112_v14  ;;  %v1104_v25 = vld [vmem:[%s11291_s13 + $0x48] sm:$0xff] }
  0x92   : > { %837 = vmatprep.mubr.bf16.mxu0 %v11102_v9  ;;  %880 = vmatprep.mubr.bf16.mxu1 %v11102_v9  ;;  %v8767_v22 = vunpack.c.h.s8.bf16 %v1175_v20  ;;  %v8769_v24 = vunpack.c.l.s8.bf16 %v1176_v15  ;;  %v8707_v27 = vunpack.c.l.s8.bf16 %v1111_v18  ;;  %v8771_v28 = vunpack.c.l.s8.bf16 %v1175_v20  ;;  %v1103_v30 = vld [vmem:[%s11291_s13 + $0x40] sm:$0xff]  ;;  %v1152_v49 = vld [vmem:[%s11291_s13 + $0x1c8] sm:$0xff] }
  0x93   : > { %v8709_v29 = vunpack.c.h.s8.bf16 %v1104_v25  ;;  %v1167_v32 = vld [vmem:[%s11291_s13 + $0x240] sm:$0xff]  ;;  %v8711_v33 = vunpack.c.h.s8.bf16 %v1103_v30  ;;  %v8713_v35 = vunpack.c.l.s8.bf16 %v1104_v25  ;;  %v1216_v50 = vld [vmem:[%s11291_s13 + $0x3c8] sm:$0xff]  ;;  %v8729_v59 = vunpack.c.l.s8.bf16 %v1152_v49 }
  0x94   : > { %820 = vmatpush1.bf16.msra.mxu0 %v8632_v37  ;;  %863 = vmatpush1.bf16.msra.mxu1 %v8634_v38  ;;  %v8775_v34 = vunpack.c.h.s8.bf16 %v1167_v32  ;;  %v1096_v37 = vld [vmem:[%s11291_s13 + $0x8] sm:$0xff]  ;;  %v1095_v42 = vld [vmem:[%s11291_s13] sm:$0xff]  ;;  %v8793_v60 = vunpack.c.l.s8.bf16 %v1216_v50 }
  0x95   : > { %903 = vmatprep.subr.bf16.mxu0 %v8653_v39  ;;  %946 = vmatprep.subr.bf16.mxu1 %v8655_v40  ;;  %v1160_v38 = vld [vmem:[%s11291_s13 + $0x208] sm:$0xff]  ;;  %v8715_v39 = vunpack.c.l.s8.bf16 %v1103_v30  ;;  %v8779_v40 = vunpack.c.l.s8.bf16 %v1167_v32  ;;  %v8717_v41 = vunpack.c.h.s8.bf16 %v1096_v37  ;;  %v1159_v44 = vld [vmem:[%s11291_s13 + $0x200] sm:$0xff]  ;;  %v8723_v51 = vunpack.c.l.s8.bf16 %v1095_v42 }
  0x96   : > { %v8781_v43 = vunpack.c.h.s8.bf16 %v1160_v38  ;;  %v8787_v52 = vunpack.c.l.s8.bf16 %v1159_v44  ;;  %v1143_v2 = vld [vmem:[%s11291_s13 + $0x180] sm:$0xff] }
  0x97   : > { %8662 = vmatmul.mubr.msk.bf16.vlgmr.msra.gmra.mxu0 %vm715_vm0, %v11365_v26  ;;  %8663 = vmatmul.mubr.msk.bf16.vlgmr.msra.gmra.mxu1 %vm715_vm0, %v11365_v26  ;;  %v1135_v15 = vld [vmem:[%s11291_s13 + $0x140] sm:$0xff] }
  0x98   : > { %904 = vmatpush1.bf16.msra.mxu0 %v8652_v45  ;;  %947 = vmatpush1.bf16.msra.mxu1 %v8654_v46  ;;  %v8719_v45 = vunpack.c.h.s8.bf16 %v1095_v42  ;;  %v8783_v46 = vunpack.c.h.s8.bf16 %v1159_v44 }
  0x99   : > { %905 = vmatprep.subr.bf16.mxu0 %v8637_v47  ;;  %948 = vmatprep.subr.bf16.mxu1 %v8639_v48  ;;  %v8721_v47 = vunpack.c.l.s8.bf16 %v1096_v37  ;;  %v8785_v48 = vunpack.c.l.s8.bf16 %v1160_v38 }
  0x9a   : > { %923 = vmatprep.mubr.bf16.mxu0 %v11102_v9  ;;  %966 = vmatprep.mubr.bf16.mxu1 %v11102_v9 }
  0x9c   : > { %906 = vmatpush1.bf16.msra.mxu0 %v8636_v53  ;;  %949 = vmatpush1.bf16.msra.mxu1 %v8638_v54  ;;  %v8725_v53 = vunpack.c.h.s8.bf16 %v1152_v49  ;;  %v1151_v54 = vld [vmem:[%s11291_s13 + $0x1c0] sm:$0xff] }
  0x9d   : > { %989 = vmatprep.subr.bf16.mxu0 %v8657_v55  ;;  %1032 = vmatprep.subr.bf16.mxu1 %v8659_v56  ;;  %v8789_v55 = vunpack.c.h.s8.bf16 %v1216_v50  ;;  %v1215_v56 = vld [vmem:[%s11291_s13 + $0x3c0] sm:$0xff]  ;;  %v8727_v57 = vunpack.c.h.s8.bf16 %v1151_v54 }
  0x9e   : > { %v8791_v58 = vunpack.c.h.s8.bf16 %v1215_v56 }
  0x9f   : > { %8664 = vmatmul.mubr.msk.bf16.vlgmr.msra.gmra.mxu0 %vm715_vm0, %v11365_v26  ;;  %8665 = vmatmul.mubr.msk.bf16.vlgmr.msra.gmra.mxu1 %vm715_vm0, %v11365_v26 }
  0xa0   : > { %990 = vmatpush1.bf16.msra.mxu0 %v8656_v61  ;;  %1033 = vmatpush1.bf16.msra.mxu1 %v8658_v62  ;;  %v1144_v61 = vld [vmem:[%s11291_s13 + $0x188] sm:$0xff] }
  0xa1   : > { %991 = vmatprep.subr.bf16.mxu0 %v8641_v63  ;;  %1034 = vmatprep.subr.bf16.mxu1 %v8643_v0  ;;  %v1208_v62 = vld [vmem:[%s11291_s13 + $0x388] sm:$0xff]  ;;  %v8731_v63 = vunpack.c.l.s8.bf16 %v1151_v54  ;;  %v8795_v0 = vunpack.c.l.s8.bf16 %v1215_v56  ;;  %v8733_v1 = vunpack.c.h.s8.bf16 %v1144_v61  ;;  %v1311_v56 = vld [vmem:[%s11291_s13 + $0x6c0] sm:$0xff] }
  0xa2   : > { %1009 = vmatprep.mubr.bf16.mxu0 %v11102_v9  ;;  %1052 = vmatprep.mubr.bf16.mxu1 %v11102_v9  ;;  %v8699_v9 = vunpack.c.l.s8.bf16 %v1119_v6  ;;  %v8801_v8 = vunpack.c.l.s8.bf16 %v1208_v62 }
  0xa4   : > { %992 = vmatpush1.bf16.msra.mxu0 %v8640_v3  ;;  %1035 = vmatpush1.bf16.msra.mxu1 %v8642_v4  ;;  %v8797_v3 = vunpack.c.h.s8.bf16 %v1208_v62  ;;  %v1207_v4 = vld [vmem:[%s11291_s13 + $0x380] sm:$0xff] }
  0xa5   : > { %8694 = vmatprep.subr.bf16.mxu0 %v8693_v5  ;;  %8758 = vmatprep.subr.bf16.mxu1 %v8757_v7  ;;  %v8735_v5 = vunpack.c.h.s8.bf16 %v1143_v2  ;;  %v8799_v6 = vunpack.c.h.s8.bf16 %v1207_v4  ;;  %v8737_v7 = vunpack.c.l.s8.bf16 %v1144_v61 }
  0xa7   : > { %8666 = vmatmul.mubr.msk.bf16.vlgmr.msra.gmra.mxu0 %vm715_vm0, %v11365_v26  ;;  %8667 = vmatmul.mubr.msk.bf16.vlgmr.msra.gmra.mxu1 %vm715_vm0, %v11365_v26  ;;  %v1168_v26 = vld [vmem:[%s11291_s13 + $0x248] sm:$0xff] }
  0xa8   : > { %8696 = vmatpush1.bf16.msra.mxu0 %v8695_v10  ;;  %8760 = vmatpush1.bf16.msra.mxu1 %v8759_v11  ;;  %v8773_v31 = vunpack.c.h.s8.bf16 %v1168_v26  ;;  %v8777_v36 = vunpack.c.l.s8.bf16 %v1168_v26  ;;  %v1136_v10 = vld [vmem:[%s11291_s13 + $0x148] sm:$0xff]  ;;  %v1127_v26 = vld [vmem:[%s11291_s13 + $0x100] sm:$0xff] }
  0xa9   : > { %8698 = vmatprep.subr.bf16.mxu0 %v8697_v12  ;;  %8762 = vmatprep.subr.bf16.mxu1 %v8761_v13  ;;  %v1200_v11 = vld [vmem:[%s11291_s13 + $0x348] sm:$0xff]  ;;  %v8739_v12 = vunpack.c.l.s8.bf16 %v1143_v2  ;;  %v8803_v13 = vunpack.c.l.s8.bf16 %v1207_v4  ;;  %v8741_v14 = vunpack.c.h.s8.bf16 %v1136_v10 }
  0xaa   : > { %v8809_v20 = vunpack.c.l.s8.bf16 %v1200_v11 }
  0xac   : > { %8700 = vmatpush1.bf16.msra.mxu0 %v8699_v9  ;;  %8764 = vmatpush1.bf16.msra.mxu1 %v8763_v16  ;;  %v8805_v9 = vunpack.c.h.s8.bf16 %v1200_v11  ;;  %v1199_v16 = vld [vmem:[%s11291_s13 + $0x340] sm:$0xff] }
  0xad   : > { %8702 = vmatprep.subr.bf16.mxu0 %v8701_v17  ;;  %8766 = vmatprep.subr.bf16.mxu1 %v8765_v19  ;;  %v8743_v17 = vunpack.c.h.s8.bf16 %v1135_v15  ;;  %v8807_v18 = vunpack.c.h.s8.bf16 %v1199_v16  ;;  %v8745_v19 = vunpack.c.l.s8.bf16 %v1136_v10 }
  0xb0   : > { %8704 = vmatpush1.bf16.msra.mxu0 %v8703_v21  ;;  %8768 = vmatpush1.bf16.msra.mxu1 %v8767_v22  ;;  %v1128_v21 = vld [vmem:[%s11291_s13 + $0x108] sm:$0xff] }
  0xb1   : > { %8706 = vmatprep.subr.bf16.mxu0 %v8705_v23  ;;  %8770 = vmatprep.subr.bf16.mxu1 %v8769_v24  ;;  %v1192_v22 = vld [vmem:[%s11291_s13 + $0x308] sm:$0xff]  ;;  %v8747_v23 = vunpack.c.l.s8.bf16 %v1135_v15  ;;  %v8811_v24 = vunpack.c.l.s8.bf16 %v1199_v16  ;;  %v8749_v25 = vunpack.c.h.s8.bf16 %v1128_v21 }
  0xb2   : > { %v8817_v32 = vunpack.c.l.s8.bf16 %v1192_v22  ;;  %v1304_v16 = vld [vmem:[%s11291_s13 + $0x688] sm:$0xff] }
  0xb4   : > { %8708 = vmatpush1.bf16.msra.mxu0 %v8707_v27  ;;  %8772 = vmatpush1.bf16.msra.mxu1 %v8771_v28  ;;  %v8813_v27 = vunpack.c.h.s8.bf16 %v1192_v22  ;;  %v1191_v28 = vld [vmem:[%s11291_s13 + $0x300] sm:$0xff] }
  0xb5   : > { %8710 = vmatprep.subr.bf16.mxu0 %v8709_v29  ;;  %8774 = vmatprep.subr.bf16.mxu1 %v8773_v31  ;;  %v8751_v29 = vunpack.c.h.s8.bf16 %v1127_v26  ;;  %v8815_v30 = vunpack.c.h.s8.bf16 %v1191_v28  ;;  %v8753_v31 = vunpack.c.l.s8.bf16 %v1128_v21 }
  0xb8   : > { %8712 = vmatpush1.bf16.msra.mxu0 %v8711_v33  ;;  %8776 = vmatpush1.bf16.msra.mxu1 %v8775_v34  ;;  %v11440_v33 = vld [vmem:[%s11291_s13 + $0x4c8] sm:$0xff] }
  0xb9   : > { %8714 = vmatprep.subr.bf16.mxu0 %v8713_v35  ;;  %8778 = vmatprep.subr.bf16.mxu1 %v8777_v36  ;;  %v11443_v34 = vld [vmem:[%s11291_s13 + $0x6c8] sm:$0xff]  ;;  %v8755_v35 = vunpack.c.l.s8.bf16 %v1127_v26  ;;  %v8819_v36 = vunpack.c.l.s8.bf16 %v1191_v28  ;;  %v8821_v37 = vunpack.c.h.s8.bf16 %v11440_v33  ;;  %v1239_v26 = vld [vmem:[%s11291_s13 + $0x480] sm:$0xff] }
  0xba   : > { %v8885_v38 = vunpack.c.h.s8.bf16 %v11443_v34 }
  0xbc   : > { %8716 = vmatpush1.bf16.msra.mxu0 %v8715_v39  ;;  %8780 = vmatpush1.bf16.msra.mxu1 %v8779_v40  ;;  %v470_v39 = vlaneseq }
  0xbd   : > { %8718 = vmatprep.subr.bf16.mxu0 %v8717_v41  ;;  %8782 = vmatprep.subr.bf16.mxu1 %v8781_v43  ;;  %v11456_v43 = vld [vmem:[%s11285_s30] sm:$0xff] }
  0xbe   : > { %v11447_v40 = vshrl.u32 %v470_v39, 7  ;;  %v8897_v39 = vunpack.c.l.s8.bf16 %v1304_v16 }
  0xc0   : > { %8720 = vmatpush1.bf16.msra.mxu0 %v8719_v45  ;;  %8784 = vmatpush1.bf16.msra.mxu1 %v8783_v46  ;;  %v11450_v41 = vsub.s32 0, %v11447_v40  ;;  %v11453_v42 = vsub.s32 2, %v11447_v40  ;;  %v11459_v44 = vsub.s32 1, %v11447_v40  ;;  %v11462_v45 = vsub.s32 3, %v11447_v40 }
  0xc1   : > { %8722 = vmatprep.subr.bf16.mxu0 %v8721_v47  ;;  %8786 = vmatprep.subr.bf16.mxu1 %v8785_v48  ;;  %v11478_v62 = vsub.s32 7, %v11447_v40 }
  0xc2   : > { %12615 = vst [vmem:[#allocation15_spill] sm:$0xff] %v11450_v41  ;;  %12616 = vst [vmem:[#allocation16_spill] sm:$0xff] %v11453_v42  ;;  %v473_v46 = vrot.slane %v11456_v43, %v11450_v41  ;;  %v481_v47 = vrot.slane %v11456_v43, %v11453_v42  ;;  %v477_v48 = vrot.slane %v11456_v43, %v11459_v44 }
  0xc3   : > { %12617 = vst [vmem:[#allocation17_spill] sm:$0xff] %v11459_v44  ;;  %12618 = vst [vmem:[#allocation18_spill] sm:$0xff] %v11462_v45  ;;  %v485_v50 = vrot.slane %v11456_v43, %v11462_v45 }
  0xc4   : > { %8724 = vmatpush1.bf16.msra.mxu0 %v8723_v51  ;;  %8788 = vmatpush1.bf16.msra.mxu1 %v8787_v52  ;;  %12620 = vst [vmem:[#allocation20_spill] sm:$0xff] %v11478_v62 }
  0xc5   : > { %8726 = vmatprep.subr.bf16.mxu0 %v8725_v53  ;;  %8790 = vmatprep.subr.bf16.mxu1 %v8789_v55  ;;  %v1247_v55 = vld [vmem:[%s11291_s13 + $0x4c0] sm:$0xff] }
  0xc6   : > { %v8823_v2 = vunpack.c.h.s8.bf16 %v1247_v55 }
  0xc8   : > { %8728 = vmatpush2.bf16.msra.mxu0 %v8727_v57  ;;  %8792 = vmatpush2.bf16.msra.mxu1 %v8791_v58 }
  0xc9   : > { %8730 = vmatprep.subr.bf16.mxu0 %v8729_v59  ;;  %8794 = vmatprep.subr.bf16.mxu1 %v8793_v60  ;;  %v11475_v59 = vsub.s32 5, %v11447_v40 }
  0xcb   : > { %12619 = vst [vmem:[#allocation19_spill] sm:$0xff] %v11475_v59  ;;  %v11494_v15 = vrot.slane %v11456_v43, %v11475_v59 }
  0xcc   : > { %8732 = vmatpush2.bf16.msra.mxu0 %v8731_v63  ;;  %8796 = vmatpush2.bf16.msra.mxu1 %v8795_v0 }
  0xcd   : > { %8734 = vmatprep.subr.bf16.mxu0 %v8733_v1  ;;  %8798 = vmatprep.subr.bf16.mxu1 %v8797_v3  ;;  %v8887_v3 = vunpack.c.h.s8.bf16 %v1311_v56 }
  0xd0   : > { %8736 = vmatpush2.bf16.msra.mxu0 %v8735_v5  ;;  %8800 = vmatpush2.bf16.msra.mxu1 %v8799_v6 }
  0xd1   : > { %8738 = vmatprep.subr.bf16.mxu0 %v8737_v7  ;;  %8802 = vmatprep.subr.bf16.mxu1 %v8801_v8  ;;  %v8825_v8 = vunpack.c.l.s8.bf16 %v11440_v33 }
  0xd4   : > { %8740 = vmatpush2.bf16.msra.mxu0 %v8739_v12  ;;  %8804 = vmatpush2.bf16.msra.mxu1 %v8803_v13  ;;  %v8889_v13 = vunpack.c.l.s8.bf16 %v11443_v34  ;;  %v8831_v34 = vunpack.c.h.s8.bf16 %v1239_v26 }
  0xd5   : > { %8742 = vmatprep.subr.bf16.mxu0 %v8741_v14  ;;  %8806 = vmatprep.subr.bf16.mxu1 %v8805_v9  ;;  %v1240_v14 = vld [vmem:[%s11291_s13 + $0x488] sm:$0xff] }
  0xd8   : > { %8744 = vmatpush2.bf16.msra.mxu0 %v8743_v17  ;;  %8808 = vmatpush2.bf16.msra.mxu1 %v8807_v18  ;;  %v11503_v18 = vrot.slane %v11456_v43, %v11478_v62 }
  0xd9   : > { %8746 = vmatprep.subr.bf16.mxu0 %v8745_v19  ;;  %8810 = vmatprep.subr.bf16.mxu1 %v8809_v20  ;;  %v8827_v20 = vunpack.c.l.s8.bf16 %v1247_v55 }
  0xdc   : > { %8748 = vmatpush2.bf16.msra.mxu0 %v8747_v23  ;;  %8812 = vmatpush2.bf16.msra.mxu1 %v8811_v24  ;;  %v8891_v24 = vunpack.c.l.s8.bf16 %v1311_v56 }
  0xdd   : > { %8750 = vmatprep.subr.bf16.mxu0 %v8749_v25  ;;  %8814 = vmatprep.subr.bf16.mxu1 %v8813_v27  ;;  %v8829_v25 = vunpack.c.h.s8.bf16 %v1240_v14 }
  0xe0   : > { %8752 = vmatpush2.bf16.msra.mxu0 %v8751_v29  ;;  %8816 = vmatpush2.bf16.msra.mxu1 %v8815_v30  ;;  %v8893_v29 = vunpack.c.h.s8.bf16 %v1304_v16  ;;  %v1303_v30 = vld [vmem:[%s11291_s13 + $0x680] sm:$0xff] }
  0xe1   : > { %8754 = vmatprep.subr.bf16.mxu0 %v8753_v31  ;;  %8818 = vmatprep.subr.bf16.mxu1 %v8817_v32 }
  0xe4   : > { %8756 = vmatpush2.bf16.msra.mxu0 %v8755_v35  ;;  %8820 = vmatpush2.bf16.msra.mxu1 %v8819_v36  ;;  %v8895_v36 = vunpack.c.h.s8.bf16 %v1303_v30 }
  0xe5   : > { %8822 = vmatprep.subr.bf16.mxu0 %v8821_v37  ;;  %8886 = vmatprep.subr.bf16.mxu1 %v8885_v38  ;;  %v8833_v37 = vunpack.c.l.s8.bf16 %v1240_v14  ;;  %v1344_v14 = vld [vmem:[%s11291_s13 + $0x7c8] sm:$0xff] }
 0x14f   : > { %v753_v49 = vpop.f32.mrf.mxu0  ;;  %v796_v51 = vpop.f32.mrf.mxu1 }
 0x150   : > { %v754_v52 = vadd.f32 %v753_v49, %v473_v46  ;;  %v797_v53 = vadd.f32 %v796_v51, %v481_v47  ;;  %v8899_v49 = vunpack.c.l.s8.bf16 %v1303_v30  ;;  %v1231_v51 = vld [vmem:[%s11291_s13 + $0x440] sm:$0xff] }
 0x151   : > { %v755_v54 = vpop.f32.mrf.mxu0  ;;  %v798_v58 = vpop.f32.mrf.mxu1 }
 0x152   : > { %v756_v57 = vadd.f32 %v755_v54, %v477_v48  ;;  %v799_v60 = vadd.f32 %v798_v58, %v485_v50  ;;  %v11480_v63 = vmax.f32 %v797_v53, 0.0  ;;  %v11484_v4 = vmax.f32 %v754_v52, 0.0  ;;  %v1295_v53 = vld [vmem:[%s11291_s13 + $0x640] sm:$0xff]  ;;  %v1224_v58 = vld [vmem:[%s11291_s13 + $0x408] sm:$0xff] }
 0x153   : > { %v757_v61 = vpop.f32.mrf.mxu0  ;;  %v800_v1 = vpop.f32.mrf.mxu1  ;;  %v8839_v54 = vunpack.c.h.s8.bf16 %v1231_v51  ;;  %v8903_v55 = vunpack.c.h.s8.bf16 %v1295_v53 }
 0x154   : > { %v11482_v0 = vmax.f32 %v756_v57, 0.0  ;;  %v11486_v5 = vmax.f32 %v799_v60, 0.0  ;;  %v758_v6 = vadd.f32 %v757_v61, %v473_v46  ;;  %v801_v10 = vadd.f32 %v800_v1, %v481_v47  ;;  %v1232_v46 = vld [vmem:[%s11291_s13 + $0x448] sm:$0xff] }
 0x155   : > { %v759_v7 = vpop.f32.mrf.mxu0  ;;  %v802_v12 = vpop.f32.mrf.mxu1  ;;  %v1296_v47 = vld [vmem:[%s11291_s13 + $0x648] sm:$0xff]  ;;  %v8841_v56 = vunpack.c.l.s8.bf16 %v1232_v46  ;;  %v8843_v61 = vunpack.c.l.s8.bf16 %v1231_v51  ;;  %v8907_v1 = vunpack.c.l.s8.bf16 %v1295_v53 }
 0x156   : > { %v760_v11 = vadd.f32 %v759_v7, %v477_v48  ;;  %5783 = vmatprep.mubr.f32.mxu0 %v11482_v0  ;;  %v803_v9 = vadd.f32 %v802_v12, %v485_v50  ;;  %5860 = vmatprep.mubr.f32.mxu1 %v11486_v5  ;;  %v11510_v22 = vmax.f32 %v758_v6, 0.0  ;;  %v11515_v28 = vmax.f32 %v801_v10, 0.0  ;;  %v1288_v60 = vld [vmem:[%s11291_s13 + $0x608] sm:$0xff]  ;;  %v1287_v7 = vld [vmem:[%s11291_s13 + $0x600] sm:$0xff] }
 0x157   : > { %5784 = vmatmul.mubr.f32.vlgmr.msra.gmra.mxu0 %v11484_v4  ;;  %v11499_v17 = vpop.f32.mrf.mxu0  ;;  %5861 = vmatmul.mubr.f32.vlgmr.msra.gmra.mxu1 %v11480_v63  ;;  %v11508_v21 = vpop.f32.mrf.mxu1  ;;  %v8835_v48 = vunpack.c.l.s8.bf16 %v1239_v26  ;;  %v8837_v50 = vunpack.c.h.s8.bf16 %v1232_v46  ;;  %v8901_v52 = vunpack.c.h.s8.bf16 %v1296_v47  ;;  %v8905_v57 = vunpack.c.l.s8.bf16 %v1296_v47  ;;  %v1343_v26 = vld [vmem:[%s11291_s13 + $0x7c0] sm:$0xff]  ;;  %v1328_v53 = vld [vmem:[%s11291_s13 + $0x748] sm:$0xff] }
 0x158   : > { %v11505_v19 = vmax.f32 %v760_v11, 0.0  ;;  %8824 = vmatpush1.bf16.msra.mxu0 %v8823_v2  ;;  %v11512_v23 = vmax.f32 %v803_v9, 0.0  ;;  %8888 = vmatpush1.bf16.msra.mxu1 %v8887_v3  ;;  %v8845_v2 = vunpack.c.h.s8.bf16 %v1224_v58  ;;  %v1223_v3 = vld [vmem:[%s11291_s13 + $0x400] sm:$0xff]  ;;  %v8909_v6 = vunpack.c.h.s8.bf16 %v1288_v60 }
 0x159   : > { %8826 = vmatprep.subr.bf16.mxu0 %v8825_v8  ;;  %v841_v27 = vpop.f32.mrf.mxu0  ;;  %8890 = vmatprep.subr.bf16.mxu1 %v8889_v13  ;;  %v884_v32 = vpop.f32.mrf.mxu1  ;;  %v8847_v8 = vunpack.c.h.s8.bf16 %v1223_v3  ;;  %v8911_v10 = vunpack.c.h.s8.bf16 %v1287_v7  ;;  %v8849_v11 = vunpack.c.l.s8.bf16 %v1224_v58  ;;  %v8913_v12 = vunpack.c.l.s8.bf16 %v1288_v60  ;;  %v1280_v13 = vld [vmem:[%s11291_s13 + $0x5c8] sm:$0xff]  ;;  %v1335_v47 = vld [vmem:[%s11291_s13 + $0x780] sm:$0xff] }
 0x15a   : > { %5789 = vmatprep.mubr.f32.mxu0 %v11505_v19  ;;  %v842_v31 = vadd.f32 %v841_v27, %v11494_v15  ;;  %5866 = vmatprep.mubr.f32.mxu1 %v11512_v23  ;;  %v885_v33 = vadd.f32 %v884_v32, %v11503_v18  ;;  %v8851_v9 = vunpack.c.l.s8.bf16 %v1223_v3  ;;  %v8915_v16 = vunpack.c.l.s8.bf16 %v1287_v7  ;;  %v1272_v32 = vld [vmem:[%s11291_s13 + $0x588] sm:$0xff]  ;;  %v1327_v60 = vld [vmem:[%s11291_s13 + $0x740] sm:$0xff] }
 0x15b   : > { %5790 = vmatmul.mubr.f32.gmra.mxu0 %v11510_v22  ;;  %5867 = vmatmul.mubr.f32.gmra.mxu1 %v11515_v28  ;;  %v8857_v30 = vunpack.c.l.s8.bf16 %v1280_v13  ;;  %v8933_v58 = vunpack.c.h.s8.bf16 %v1328_v53  ;;  %v8937_v3 = vunpack.c.l.s8.bf16 %v1328_v53  ;;  %v1320_v7 = vld [vmem:[%s11291_s13 + $0x708] sm:$0xff] }
 0x15c   : > { %8828 = vmatpush1.bf16.msra.mxu0 %v8827_v20  ;;  %v11524_v35 = vmax.f32 %v842_v31, 0.0  ;;  %8892 = vmatpush1.bf16.msra.mxu1 %v8891_v24  ;;  %v11526_v38 = vmax.f32 %v885_v33, 0.0  ;;  %v8853_v20 = vunpack.c.h.s8.bf16 %v1280_v13  ;;  %v1279_v24 = vld [vmem:[%s11291_s13 + $0x5c0] sm:$0xff]  ;;  %v8921_v31 = vunpack.c.l.s8.bf16 %v1344_v14  ;;  %v1336_v33 = vld [vmem:[%s11291_s13 + $0x788] sm:$0xff]  ;;  %v843_v13 = vpop.f32.mrf.mxu0 }
 0x15d   : > { %8830 = vmatprep.subr.bf16.mxu0 %v8829_v25  ;;  %8894 = vmatprep.subr.bf16.mxu1 %v8893_v29  ;;  %v8917_v25 = vunpack.c.h.s8.bf16 %v1344_v14  ;;  %v8855_v27 = vunpack.c.h.s8.bf16 %v1279_v24  ;;  %v8919_v29 = vunpack.c.h.s8.bf16 %v1343_v26  ;;  %v8925_v46 = vunpack.c.h.s8.bf16 %v1336_v33 }
 0x15e   : > { %5937 = vmatprep.mubr.f32.mxu0 %v11524_v35  ;;  %6014 = vmatprep.mubr.f32.mxu1 %v11526_v38  ;;  %v8929_v51 = vunpack.c.l.s8.bf16 %v1336_v33  ;;  %v8945_v33 = vunpack.c.l.s8.bf16 %v1320_v7 }
 0x160   : > { %8832 = vmatpush1.bf16.msra.mxu0 %v8831_v34  ;;  %8896 = vmatpush1.bf16.msra.mxu1 %v8895_v36  ;;  %v8859_v34 = vunpack.c.l.s8.bf16 %v1279_v24  ;;  %v8923_v36 = vunpack.c.l.s8.bf16 %v1343_v26  ;;  %v1319_v24 = vld [vmem:[%s11291_s13 + $0x700] sm:$0xff] }
 0x161   : > { %8834 = vmatprep.subr.bf16.mxu0 %v8833_v37  ;;  %8898 = vmatprep.subr.bf16.mxu1 %v8897_v39  ;;  %v8861_v37 = vunpack.c.h.s8.bf16 %v1272_v32  ;;  %v1271_v39 = vld [vmem:[%s11291_s13 + $0x580] sm:$0xff] }
 0x164   : > { %8836 = vmatpush1.bf16.msra.mxu0 %v8835_v48  ;;  %8900 = vmatpush1.bf16.msra.mxu1 %v8899_v49  ;;  %v8863_v48 = vunpack.c.h.s8.bf16 %v1271_v39  ;;  %v8927_v49 = vunpack.c.h.s8.bf16 %v1335_v47 }
 0x165   : > { %8838 = vmatprep.subr.bf16.mxu0 %v8837_v50  ;;  %8902 = vmatprep.subr.bf16.mxu1 %v8901_v52  ;;  %v8865_v50 = vunpack.c.l.s8.bf16 %v1272_v32  ;;  %v1264_v52 = vld [vmem:[%s11291_s13 + $0x548] sm:$0xff] }
 0x168   : > { %8840 = vmatpush1.bf16.msra.mxu0 %v8839_v54  ;;  %8904 = vmatpush1.bf16.msra.mxu1 %v8903_v55  ;;  %v8867_v54 = vunpack.c.l.s8.bf16 %v1271_v39  ;;  %v8931_v55 = vunpack.c.l.s8.bf16 %v1335_v47 }
 0x169   : > { %8842 = vmatprep.subr.bf16.mxu0 %v8841_v56  ;;  %8906 = vmatprep.subr.bf16.mxu1 %v8905_v57  ;;  %v8869_v56 = vunpack.c.h.s8.bf16 %v1264_v52  ;;  %v1263_v57 = vld [vmem:[%s11291_s13 + $0x540] sm:$0xff] }
 0x16c   : > { %8844 = vmatpush1.bf16.msra.mxu0 %v8843_v61  ;;  %8908 = vmatpush1.bf16.msra.mxu1 %v8907_v1  ;;  %v8871_v61 = vunpack.c.h.s8.bf16 %v1263_v57  ;;  %v8935_v1 = vunpack.c.h.s8.bf16 %v1327_v60 }
 0x16d   : > { %8846 = vmatprep.subr.bf16.mxu0 %v8845_v2  ;;  %8910 = vmatprep.subr.bf16.mxu1 %v8909_v6  ;;  %v8873_v2 = vunpack.c.l.s8.bf16 %v1264_v52  ;;  %v1256_v6 = vld [vmem:[%s11291_s13 + $0x508] sm:$0xff]  ;;  %v1375_v52 = vld [vmem:[%s11291_s13 + $0x8c0] sm:$0xff] }
 0x16e   : > { %v8877_v14 = vunpack.c.h.s8.bf16 %v1256_v6 }
 0x170   : > { %8848 = vmatpush1.bf16.msra.mxu0 %v8847_v8  ;;  %8912 = vmatpush1.bf16.msra.mxu1 %v8911_v10  ;;  %v11553_v8 = vsub.s32 6, %v11447_v40  ;;  %v8875_v10 = vunpack.c.l.s8.bf16 %v1263_v57 }
 0x171   : > { %8850 = vmatprep.subr.bf16.mxu0 %v8849_v11  ;;  %8914 = vmatprep.subr.bf16.mxu1 %v8913_v12  ;;  %v11556_v11 = vsub.s32 4, %v11447_v40  ;;  %v8939_v12 = vunpack.c.l.s8.bf16 %v1327_v60 }
 0x172   : > { %12621 = vst [vmem:[#allocation21_spill] sm:$0xff] %v11553_v8 }
 0x173   : > { %12622 = vst [vmem:[#allocation22_spill] sm:$0xff] %v11556_v11  ;;  %v489_v40 = vrot.slane %v11456_v43, %v11556_v11 }
 0x174   : > { %8852 = vmatpush1.bf16.msra.mxu0 %v8851_v9  ;;  %8916 = vmatpush1.bf16.msra.mxu1 %v8915_v16  ;;  %v1255_v9 = vld [vmem:[%s11291_s13 + $0x500] sm:$0xff]  ;;  %v8941_v16 = vunpack.c.h.s8.bf16 %v1320_v7 }
 0x175   : > { %8854 = vmatprep.subr.bf16.mxu0 %v8853_v20  ;;  %8918 = vmatprep.subr.bf16.mxu1 %v8917_v25  ;;  %v886_v20 = vpop.f32.mrf.mxu1  ;;  %v497_v25 = vrot.slane %v11456_v43, %v11553_v8  ;;  %v8879_v26 = vunpack.c.h.s8.bf16 %v1255_v9  ;;  %v8883_v43 = vunpack.c.l.s8.bf16 %v1255_v9 }
 0x177   : > { %v888_v32 = vpop.f32.mrf.mxu1  ;;  %v883_v39 = vadd.f32 %v11508_v21, %v497_v25 }
 0x178   : > { %8856 = vmatpush2.bf16.msra.mxu0 %v8855_v27  ;;  %8920 = vmatpush2.bf16.msra.mxu1 %v8919_v29  ;;  %v845_v27 = vpop.f32.mrf.mxu0  ;;  %v8943_v29 = vunpack.c.h.s8.bf16 %v1319_v24 }
 0x179   : > { %8858 = vmatprep.subr.bf16.mxu0 %v8857_v30  ;;  %8922 = vmatprep.subr.bf16.mxu1 %v8921_v31  ;;  %v8881_v30 = vunpack.c.l.s8.bf16 %v1256_v6  ;;  %v11565_v31 = vld [vmem:[%s11285_s30 + $0x8] sm:$0xff]  ;;  %v846_v53 = vadd.f32 %v845_v27, %v11494_v15  ;;  %v11587_v57 = vmax.f32 %v883_v39, 0.0 }
 0x17a   : > { %v11574_v47 = vrot.slane %v11565_v31, %v11459_v44  ;;  %v11583_v21 = vrot.slane %v11565_v31, %v11462_v45  ;;  %v1424_v39 = vld [vmem:[%s11291_s13 + $0xa48] sm:$0xff]  ;;  %v1393_v44 = vld [vmem:[%s11291_s13 + $0x950] sm:$0xff] }
 0x17c   : > { %8860 = vmatpush2.bf16.msra.mxu0 %v8859_v34  ;;  %8924 = vmatpush2.bf16.msra.mxu1 %v8923_v36  ;;  %v1376_v34 = vld [vmem:[%s11291_s13 + $0x8c8] sm:$0xff] }
 0x17d   : > { %8862 = vmatprep.subr.bf16.mxu0 %v8861_v37  ;;  %8926 = vmatprep.subr.bf16.mxu1 %v8925_v46  ;;  %v1440_v36 = vld [vmem:[%s11291_s13 + $0xac8] sm:$0xff]  ;;  %v11569_v37 = vpop.f32.mrf.mxu0  ;;  %v8947_v46 = vunpack.c.l.s8.bf16 %v1319_v24  ;;  %v8953_v7 = vunpack.c.l.s8.bf16 %v1376_v34 }
 0x180   : > { %8864 = vmatpush2.bf16.msra.mxu0 %v8863_v48  ;;  %8928 = vmatpush2.bf16.msra.mxu1 %v8927_v49  ;;  %v11576_v48 = vpop.f32.mrf.mxu1  ;;  %v840_v49 = vadd.f32 %v11499_v17, %v489_v40  ;;  %v8951_v17 = vunpack.c.h.s8.bf16 %v1375_v52 }
 0x181   : > { %8866 = vmatprep.subr.bf16.mxu0 %v8865_v50  ;;  %8930 = vmatprep.subr.bf16.mxu1 %v8929_v51  ;;  %v889_v50 = vadd.f32 %v888_v32, %v11503_v18  ;;  %v8949_v51 = vunpack.c.h.s8.bf16 %v1376_v34 }
 0x182   : > { %v11590_v60 = vmax.f32 %v840_v49, 0.0 }
 0x184   : > { %8868 = vmatpush2.bf16.msra.mxu0 %v8867_v54  ;;  %8932 = vmatpush2.bf16.msra.mxu1 %v8931_v55  ;;  %v9013_v54 = vunpack.c.h.s8.bf16 %v1440_v36  ;;  %v1439_v55 = vld [vmem:[%s11291_s13 + $0xac0] sm:$0xff] }
 0x185   : > { %8870 = vmatprep.subr.bf16.mxu0 %v8869_v56  ;;  %8934 = vmatprep.subr.bf16.mxu1 %v8933_v58  ;;  %v927_v56 = vpop.f32.mrf.mxu0  ;;  %v970_v58 = vpop.f32.mrf.mxu1  ;;  %v9015_v6 = vunpack.c.h.s8.bf16 %v1439_v55 }
 0x186   : > { %v928_v18 = vadd.f32 %v927_v56, %v11574_v47  ;;  %v971_v15 = vadd.f32 %v970_v58, %v11583_v21  ;;  %v9033_v56 = vunpack.c.l.s8.bf16 %v1424_v39 }
 0x188   : > { %8872 = vmatpush2.bf16.msra.mxu0 %v8871_v61  ;;  %8936 = vmatpush2.bf16.msra.mxu1 %v8935_v1  ;;  %v844_v61 = vadd.f32 %v843_v13, %v489_v40  ;;  %v11592_v1 = vmax.f32 %v889_v50, 0.0  ;;  %v1432_v13 = vld [vmem:[%s11291_s13 + $0xa88] sm:$0xff]  ;;  %v1367_v40 = vld [vmem:[%s11291_s13 + $0x880] sm:$0xff] }
 0x189   : > { %8874 = vmatprep.subr.bf16.mxu0 %v8873_v2  ;;  %8938 = vmatprep.subr.bf16.mxu1 %v8937_v3  ;;  %v11595_v2 = vmax.f32 %v846_v53, 0.0  ;;  %v887_v3 = vadd.f32 %v886_v20, %v497_v25  ;;  %v11607_v20 = vmax.f32 %v971_v15, 0.0  ;;  %v9019_v25 = vunpack.c.l.s8.bf16 %v1439_v55  ;;  %v1359_v50 = vld [vmem:[%s11291_s13 + $0x840] sm:$0xff] }
 0x18a   : > { %v11604_v9 = vmax.f32 %v844_v61, 0.0  ;;  %v9021_v27 = vunpack.c.h.s8.bf16 %v1432_v13  ;;  %v9025_v34 = vunpack.c.l.s8.bf16 %v1432_v13  ;;  %v8967_v53 = vunpack.c.h.s8.bf16 %v1359_v50 }
 0x18b   : > { %12625 = vst [vmem:[#allocation25_spill] sm:$0xff] %v11607_v20  ;;  %v11609_v24 = vmax.f32 %v887_v3, 0.0  ;;  %v8971_v58 = vunpack.c.l.s8.bf16 %v1359_v50  ;;  %v1351_v3 = vld [vmem:[%s11291_s13 + $0x800] sm:$0xff] }
 0x18c   : > { %8876 = vmatpush2.bf16.msra.mxu0 %v8875_v10  ;;  %8940 = vmatpush2.bf16.msra.mxu1 %v8939_v12  ;;  %v9017_v10 = vunpack.c.l.s8.bf16 %v1440_v36  ;;  %v1368_v12 = vld [vmem:[%s11291_s13 + $0x888] sm:$0xff]  ;;  %12624 = vst [vmem:[#allocation24_spill] sm:$0xff] %v11604_v9 }
 0x18d   : > { %8878 = vmatprep.subr.bf16.mxu0 %v8877_v14  ;;  %8942 = vmatprep.subr.bf16.mxu1 %v8941_v16  ;;  %v11602_v14 = vmax.f32 %v928_v18, 0.0  ;;  %v8955_v16 = vunpack.c.l.s8.bf16 %v1375_v52  ;;  %12626 = vst [vmem:[#allocation26_spill] sm:$0xff] %v11609_v24  ;;  %v1360_v36 = vld [vmem:[%s11291_s13 + $0x848] sm:$0xff]  ;;  %v1423_v52 = vld [vmem:[%s11291_s13 + $0xa40] sm:$0xff] }
 0x18e   : > { %v8965_v49 = vunpack.c.h.s8.bf16 %v1360_v36  ;;  %v8969_v55 = vunpack.c.l.s8.bf16 %v1360_v36  ;;  %v1416_v18 = vld [vmem:[%s11291_s13 + $0xa08] sm:$0xff]  ;;  %v9035_v61 = vunpack.c.l.s8.bf16 %v1423_v52 }
 0x18f   : > { %12623 = vst [vmem:[#allocation23_spill] sm:$0xff] %v11602_v14 }
 0x190   : > { %8880 = vmatpush2.bf16.msra.mxu0 %v8879_v26  ;;  %8944 = vmatpush2.bf16.msra.mxu1 %v8943_v29  ;;  %v8957_v26 = vunpack.c.h.s8.bf16 %v1368_v12  ;;  %v1431_v29 = vld [vmem:[%s11291_s13 + $0xa80] sm:$0xff] }
 0x191   : > { %8882 = vmatprep.subr.bf16.mxu0 %v8881_v30  ;;  %8946 = vmatprep.subr.bf16.mxu1 %v8945_v33  ;;  %v8959_v30 = vunpack.c.h.s8.bf16 %v1367_v40  ;;  %v9023_v32 = vunpack.c.h.s8.bf16 %v1431_v29  ;;  %v8961_v33 = vunpack.c.l.s8.bf16 %v1368_v12 }
 0x194   : > { %8884 = vmatpush2.bf16.msra.mxu0 %v8883_v43  ;;  %8948 = vmatpush2.bf16.msra.mxu1 %v8947_v46  ;;  %v8963_v43 = vunpack.c.l.s8.bf16 %v1367_v40  ;;  %v9027_v46 = vunpack.c.l.s8.bf16 %v1431_v29  ;;  %v8979_v40 = vunpack.c.l.s8.bf16 %v1351_v3 }
 0x195   : > { %8950 = vmatprep.subr.bf16.mxu0 %v8949_v51  ;;  %9014 = vmatprep.subr.bf16.mxu1 %v9013_v54  ;;  %v9029_v51 = vunpack.c.h.s8.bf16 %v1424_v39  ;;  %v9031_v54 = vunpack.c.h.s8.bf16 %v1423_v52 }
 0x197   : > { %5938 = vmatmul.mubr.f32.vlgmr.msra.gmra.mxu0 %v11590_v60  ;;  %6015 = vmatmul.mubr.f32.vlgmr.msra.gmra.mxu1 %v11587_v57 }
 0x198   : > { %5943 = vmatprep.mubr.f32.mxu0 %v11595_v2  ;;  %6020 = vmatprep.mubr.f32.mxu1 %v11592_v1 }
 0x199   : > { %8952 = vmatpush1.bf16.msra.mxu0 %v8951_v17  ;;  %9016 = vmatpush1.bf16.msra.mxu1 %v9015_v6  ;;  %v1352_v17 = vld [vmem:[%s11291_s13 + $0x808] sm:$0xff]  ;;  %v9037_v6 = vunpack.c.h.s8.bf16 %v1416_v18 }
 0x19a   : > { %8954 = vmatprep.subr.bf16.mxu0 %v8953_v7  ;;  %9018 = vmatprep.subr.bf16.mxu1 %v9017_v10  ;;  %v8973_v15 = vunpack.c.h.s8.bf16 %v1352_v17  ;;  %v1415_v7 = vld [vmem:[%s11291_s13 + $0xa00] sm:$0xff]  ;;  %v8975_v10 = vunpack.c.h.s8.bf16 %v1351_v3  ;;  %v8977_v13 = vunpack.c.l.s8.bf16 %v1352_v17 }
 0x19b   : > { %5944 = vmatmul.mubr.f32.gmra.mxu0 %v11604_v9  ;;  %6021 = vmatmul.mubr.f32.gmra.mxu1 %v11609_v24  ;;  %v9039_v12 = vunpack.c.h.s8.bf16 %v1415_v7 }
 0x19c   : > { %6091 = vmatprep.mubr.f32.mxu0 %v11602_v14  ;;  %6168 = vmatprep.mubr.f32.mxu1 %v11607_v20 }
 0x19d   : > { %8956 = vmatpush1.bf16.msra.mxu0 %v8955_v16  ;;  %9020 = vmatpush1.bf16.msra.mxu1 %v9019_v25  ;;  %v9041_v16 = vunpack.c.l.s8.bf16 %v1416_v18  ;;  %v1408_v25 = vld [vmem:[%s11291_s13 + $0x9c8] sm:$0xff] }
 0x19e   : > { %8958 = vmatprep.subr.bf16.mxu0 %v8957_v26  ;;  %9022 = vmatprep.subr.bf16.mxu1 %v9021_v27  ;;  %v1472_v26 = vld [vmem:[%s11291_s13 + $0xbc8] sm:$0xff]  ;;  %v9043_v27 = vunpack.c.l.s8.bf16 %v1415_v7  ;;  %v8981_v29 = vunpack.c.h.s8.bf16 %v1408_v25  ;;  %v8985_v39 = vunpack.c.l.s8.bf16 %v1408_v25 }
 0x1a1   : > { %8960 = vmatpush1.bf16.msra.mxu0 %v8959_v30  ;;  %9024 = vmatpush1.bf16.msra.mxu1 %v9023_v32  ;;  %v1407_v30 = vld [vmem:[%s11291_s13 + $0x9c0] sm:$0xff]  ;;  %v9045_v32 = vunpack.c.h.s8.bf16 %v1472_v26 }
 0x1a2   : > { %8962 = vmatprep.subr.bf16.mxu0 %v8961_v33  ;;  %9026 = vmatprep.subr.bf16.mxu1 %v9025_v34  ;;  %v1471_v33 = vld [vmem:[%s11291_s13 + $0xbc0] sm:$0xff]  ;;  %v8983_v34 = vunpack.c.h.s8.bf16 %v1407_v30  ;;  %v8987_v50 = vunpack.c.l.s8.bf16 %v1407_v30  ;;  %v1448_v30 = vld [vmem:[%s11291_s13 + $0xb08] sm:$0xff] }
 0x1a3   : > { %v9047_v36 = vunpack.c.h.s8.bf16 %v1471_v33 }
 0x1a5   : > { %8964 = vmatpush1.bf16.msra.mxu0 %v8963_v43  ;;  %9028 = vmatpush1.bf16.msra.mxu1 %v9027_v46  ;;  %v9049_v43 = vunpack.c.l.s8.bf16 %v1472_v26  ;;  %v1400_v46 = vld [vmem:[%s11291_s13 + $0x988] sm:$0xff] }
 0x1a6   : > { %8966 = vmatprep.subr.bf16.mxu0 %v8965_v49  ;;  %9030 = vmatprep.subr.bf16.mxu1 %v9029_v51  ;;  %v1464_v49 = vld [vmem:[%s11291_s13 + $0xb88] sm:$0xff]  ;;  %v9051_v51 = vunpack.c.l.s8.bf16 %v1471_v33  ;;  %v8989_v52 = vunpack.c.h.s8.bf16 %v1400_v46  ;;  %v8993_v18 = vunpack.c.l.s8.bf16 %v1400_v46  ;;  %v972_v33 = vpop.f32.mrf.mxu1  ;;  %v1447_v46 = vld [vmem:[%s11291_s13 + $0xb00] sm:$0xff] }
 0x1a9   : > { %8968 = vmatpush1.bf16.msra.mxu0 %v8967_v53  ;;  %9032 = vmatpush1.bf16.msra.mxu1 %v9031_v54  ;;  %v1399_v53 = vld [vmem:[%s11291_s13 + $0x980] sm:$0xff]  ;;  %v9053_v54 = vunpack.c.h.s8.bf16 %v1464_v49 }
 0x1aa   : > { %8970 = vmatprep.subr.bf16.mxu0 %v8969_v55  ;;  %9034 = vmatprep.subr.bf16.mxu1 %v9033_v56  ;;  %v1463_v55 = vld [vmem:[%s11291_s13 + $0xb80] sm:$0xff]  ;;  %v8991_v56 = vunpack.c.h.s8.bf16 %v1399_v53  ;;  %v8995_v3 = vunpack.c.l.s8.bf16 %v1399_v53  ;;  %v505_v53 = vrot.slane %v11565_v31, %v11450_v41 }
 0x1ab   : > { %v9055_v17 = vunpack.c.h.s8.bf16 %v1463_v55 }
 0x1ad   : > { %8972 = vmatpush1.bf16.msra.mxu0 %v8971_v58  ;;  %9036 = vmatpush1.bf16.msra.mxu1 %v9035_v61  ;;  %v9057_v58 = vunpack.c.l.s8.bf16 %v1464_v49  ;;  %v1392_v61 = vld [vmem:[%s11291_s13 + $0x948] sm:$0xff] }
 0x1ae   : > { %8974 = vmatprep.subr.bf16.mxu0 %v8973_v15  ;;  %9038 = vmatprep.subr.bf16.mxu1 %v9037_v6  ;;  %v1456_v15 = vld [vmem:[%s11291_s13 + $0xb48] sm:$0xff]  ;;  %v9059_v6 = vunpack.c.l.s8.bf16 %v1463_v55  ;;  %v8997_v7 = vunpack.c.h.s8.bf16 %v1392_v61  ;;  %v9001_v26 = vunpack.c.l.s8.bf16 %v1392_v61 }
 0x1b1   : > { %8976 = vmatpush1.bf16.msra.mxu0 %v8975_v10  ;;  %9040 = vmatpush1.bf16.msra.mxu1 %v9039_v12  ;;  %v1391_v10 = vld [vmem:[%s11291_s13 + $0x940] sm:$0xff]  ;;  %v9061_v12 = vunpack.c.h.s8.bf16 %v1456_v15 }
 0x1b2   : > { %8978 = vmatprep.subr.bf16.mxu0 %v8977_v13  ;;  %9042 = vmatprep.subr.bf16.mxu1 %v9041_v16  ;;  %v1455_v13 = vld [vmem:[%s11291_s13 + $0xb40] sm:$0xff]  ;;  %v8999_v16 = vunpack.c.h.s8.bf16 %v1391_v10 }
 0x1b3   : > { %v9063_v25 = vunpack.c.h.s8.bf16 %v1455_v13 }
 0x1b5   : > { %8980 = vmatpush1.bf16.msra.mxu0 %v8979_v40  ;;  %9044 = vmatpush1.bf16.msra.mxu1 %v9043_v27  ;;  %v9065_v40 = vunpack.c.l.s8.bf16 %v1456_v15  ;;  %v1384_v27 = vld [vmem:[%s11291_s13 + $0x908] sm:$0xff]  ;;  %v11652_v15 = vrot.slane %v11565_v31, %v11475_v59 }
 0x1b6   : > { %8982 = vmatprep.subr.bf16.mxu0 %v8981_v29  ;;  %9046 = vmatprep.subr.bf16.mxu1 %v9045_v32  ;;  %v929_v29 = vpop.f32.mrf.mxu0  ;;  %v9003_v32 = vunpack.c.l.s8.bf16 %v1391_v10  ;;  %v9009_v55 = vunpack.c.l.s8.bf16 %v1384_v27  ;;  %v926_v10 = vadd.f32 %v11569_v37, %v505_v53 }
 0x1b8   : > { %v931_v49 = vpop.f32.mrf.mxu0 }
 0x1b9   : > { %8984 = vmatpush2.bf16.msra.mxu0 %v8983_v34  ;;  %9048 = vmatpush2.bf16.msra.mxu1 %v9047_v36  ;;  %v9067_v34 = vunpack.c.l.s8.bf16 %v1455_v13  ;;  %v9005_v36 = vunpack.c.h.s8.bf16 %v1384_v27  ;;  %v11660_v13 = vrot.slane %v11565_v31, %v11478_v62  ;;  %v1567_v27 = vld [vmem:[%s11291_s13 + $0xec0] sm:$0xff] }
 0x1ba   : > { %8986 = vmatprep.subr.bf16.mxu0 %v8985_v39  ;;  %9050 = vmatprep.subr.bf16.mxu1 %v9049_v43  ;;  %v1383_v39 = vld [vmem:[%s11291_s13 + $0x900] sm:$0xff]  ;;  %v9069_v43 = vunpack.c.h.s8.bf16 %v1448_v30 }
 0x1bd   : > { %8988 = vmatpush2.bf16.msra.mxu0 %v8987_v50  ;;  %9052 = vmatpush2.bf16.msra.mxu1 %v9051_v51  ;;  %v513_v50 = vrot.slane %v11565_v31, %v11453_v42  ;;  %v9007_v51 = vunpack.c.h.s8.bf16 %v1383_v39 }
 0x1be   : > { %8990 = vmatprep.subr.bf16.mxu0 %v8989_v52  ;;  %9054 = vmatprep.subr.bf16.mxu1 %v9053_v54  ;;  %v974_v52 = vpop.f32.mrf.mxu1  ;;  %v9071_v54 = vunpack.c.h.s8.bf16 %v1447_v46 }
 0x1bf   : > { %v969_v61 = vadd.f32 %v11576_v48, %v513_v50 }
 0x1c1   : > { %8992 = vmatpush2.bf16.msra.mxu0 %v8991_v56  ;;  %9056 = vmatpush2.bf16.msra.mxu1 %v9055_v17  ;;  %v9073_v56 = vunpack.c.l.s8.bf16 %v1448_v30  ;;  %v1504_v17 = vld [vmem:[%s11291_s13 + $0xcc8] sm:$0xff]  ;;  %v11665_v30 = vmax.f32 %v969_v61, 0.0  ;;  %v1495_v61 = vld [vmem:[%s11291_s13 + $0xc80] sm:$0xff] }
 0x1c2   : > { %8994 = vmatprep.subr.bf16.mxu0 %v8993_v18  ;;  %9058 = vmatprep.subr.bf16.mxu1 %v9057_v58  ;;  %v11646_v18 = vpop.f32.mrf.mxu0  ;;  %v1568_v58 = vld [vmem:[%s11291_s13 + $0xec8] sm:$0xff]  ;;  %v9077_v48 = vunpack.c.h.s8.bf16 %v1504_v17 }
 0x1c5   : > { %8996 = vmatpush2.bf16.msra.mxu0 %v8995_v3  ;;  %9060 = vmatpush2.bf16.msra.mxu1 %v9059_v6  ;;  %v11654_v3 = vpop.f32.mrf.mxu1  ;;  %v9011_v6 = vunpack.c.l.s8.bf16 %v1383_v39 }
 0x1c6   : > { %8998 = vmatprep.subr.bf16.mxu0 %v8997_v7  ;;  %9062 = vmatprep.subr.bf16.mxu1 %v9061_v12  ;;  %v9075_v7 = vunpack.c.l.s8.bf16 %v1447_v46  ;;  %v975_v12 = vadd.f32 %v974_v52, %v11583_v21  ;;  %v973_v46 = vadd.f32 %v972_v33, %v513_v50  ;;  %v9145_v52 = vunpack.c.l.s8.bf16 %v1568_v58 }
 0x1c7   : > { %v1056_v21 = vpop.f32.mrf.mxu1 }
 0x1c8   : > { %v11670_v39 = vmax.f32 %v975_v12, 0.0  ;;  %v11687_v50 = vmax.f32 %v973_v46, 0.0 }
 0x1c9   : > { %9000 = vmatpush2.bf16.msra.mxu0 %v8999_v16  ;;  %9064 = vmatpush2.bf16.msra.mxu1 %v9063_v25  ;;  %v1503_v16 = vld [vmem:[%s11291_s13 + $0xcc0] sm:$0xff]  ;;  %v932_v25 = vadd.f32 %v931_v49, %v11574_v47  ;;  %v1057_v47 = vadd.f32 %v1056_v21, %v11660_v13  ;;  %v9143_v49 = vunpack.c.h.s8.bf16 %v1567_v27 }
 0x1ca   : > { %9002 = vmatprep.subr.bf16.mxu0 %v9001_v26  ;;  %9066 = vmatprep.subr.bf16.mxu1 %v9065_v40  ;;  %v9141_v26 = vunpack.c.h.s8.bf16 %v1568_v58  ;;  %v1013_v40 = vpop.f32.mrf.mxu0  ;;  %v9083_v33 = vunpack.c.l.s8.bf16 %v1503_v16  ;;  %v1487_v21 = vld [vmem:[%s11291_s13 + $0xc40] sm:$0xff] }
 0x1cb   : > { %v1014_v37 = vadd.f32 %v1013_v40, %v11652_v15  ;;  %v9091_v40 = vunpack.c.l.s8.bf16 %v1495_v61 }
 0x1cd   : > { %9004 = vmatpush2.bf16.msra.mxu0 %v9003_v32  ;;  %9068 = vmatpush2.bf16.msra.mxu1 %v9067_v34  ;;  %v9079_v32 = vunpack.c.h.s8.bf16 %v1503_v16  ;;  %v11668_v34 = vmax.f32 %v926_v10, 0.0  ;;  %v9087_v10 = vunpack.c.h.s8.bf16 %v1495_v61 }
 0x1ce   : > { %9006 = vmatprep.subr.bf16.mxu0 %v9005_v36  ;;  %9070 = vmatprep.subr.bf16.mxu1 %v9069_v43  ;;  %v930_v36 = vadd.f32 %v929_v29, %v505_v53  ;;  %v11673_v43 = vmax.f32 %v932_v25, 0.0  ;;  %v1560_v29 = vld [vmem:[%s11291_s13 + $0xe88] sm:$0xff] }
 0x1cf   : > { %v9153_v16 = vunpack.c.l.s8.bf16 %v1560_v29  ;;  %v1488_v25 = vld [vmem:[%s11291_s13 + $0xc48] sm:$0xff] }
 0x1d0   : > { %v11682_v53 = vmax.f32 %v930_v36, 0.0  ;;  %v1551_v36 = vld [vmem:[%s11291_s13 + $0xe40] sm:$0xff] }
 0x1d1   : > { %9008 = vmatpush2.bf16.msra.mxu0 %v9007_v51  ;;  %9072 = vmatpush2.bf16.msra.mxu1 %v9071_v54  ;;  %v9081_v51 = vunpack.c.l.s8.bf16 %v1504_v17  ;;  %v1496_v54 = vld [vmem:[%s11291_s13 + $0xc88] sm:$0xff]  ;;  %v9147_v17 = vunpack.c.l.s8.bf16 %v1567_v27  ;;  %v9159_v46 = vunpack.c.h.s8.bf16 %v1551_v36 }
 0x1d2   : > { %9010 = vmatprep.subr.bf16.mxu0 %v9009_v55  ;;  %9074 = vmatprep.subr.bf16.mxu1 %v9073_v56  ;;  %v11677_v55 = vmax.f32 %v1014_v37, 0.0  ;;  %v11684_v56 = vmax.f32 %v1057_v47, 0.0  ;;  %v9085_v58 = vunpack.c.h.s8.bf16 %v1496_v54  ;;  %v9093_v37 = vunpack.c.h.s8.bf16 %v1488_v25 }
 0x1d3   : > { %v9095_v47 = vunpack.c.h.s8.bf16 %v1487_v21 }
 0x1d5   : > { %9012 = vmatpush2.bf16.msra.mxu0 %v9011_v6  ;;  %9076 = vmatpush2.bf16.msra.mxu1 %v9075_v7  ;;  %v9149_v6 = vunpack.c.h.s8.bf16 %v1560_v29  ;;  %v1559_v7 = vld [vmem:[%s11291_s13 + $0xe80] sm:$0xff]  ;;  %v9099_v29 = vunpack.c.l.s8.bf16 %v1487_v21 }
 0x1d6   : > { %9078 = vmatprep.subr.bf16.mxu0 %v9077_v48  ;;  %9142 = vmatprep.subr.bf16.mxu1 %v9141_v26  ;;  %v9151_v12 = vunpack.c.h.s8.bf16 %v1559_v7  ;;  %v9089_v48 = vunpack.c.l.s8.bf16 %v1496_v54  ;;  %v1552_v26 = vld [vmem:[%s11291_s13 + $0xe48] sm:$0xff]  ;;  %v9155_v27 = vunpack.c.l.s8.bf16 %v1559_v7 }
 0x1d7   : > { %v1544_v54 = vld [vmem:[%s11291_s13 + $0xe08] sm:$0xff] }
 0x1d8   : > { %6092 = vmatmul.mubr.f32.vlgmr.msra.gmra.mxu0 %v11668_v34  ;;  %6169 = vmatmul.mubr.f32.vlgmr.msra.gmra.mxu1 %v11665_v30  ;;  %v9165_v61 = vunpack.c.h.s8.bf16 %v1544_v54 }
 0x1d9   : > { %6097 = vmatprep.mubr.f32.mxu0 %v11673_v43  ;;  %6174 = vmatprep.mubr.f32.mxu1 %v11670_v39 }
 0x1da   : > { %9080 = vmatpush1.bf16.msra.mxu0 %v9079_v32  ;;  %9144 = vmatpush1.bf16.msra.mxu1 %v9143_v49  ;;  %v9157_v32 = vunpack.c.h.s8.bf16 %v1552_v26  ;;  %v9097_v49 = vunpack.c.l.s8.bf16 %v1488_v25  ;;  %v1600_v25 = vld [vmem:[%s11291_s13 + $0xfc8] sm:$0xff] }
 0x1db   : > { %9082 = vmatprep.subr.bf16.mxu0 %v9081_v51  ;;  %9146 = vmatprep.subr.bf16.mxu1 %v9145_v52  ;;  %v9161_v51 = vunpack.c.l.s8.bf16 %v1552_v26  ;;  %v1480_v52 = vld [vmem:[%s11291_s13 + $0xc08] sm:$0xff]  ;;  %v9173_v21 = vunpack.c.h.s8.bf16 %v1600_v25 }
 0x1dc   : > { %6098 = vmatmul.mubr.f32.gmra.mxu0 %v11682_v53  ;;  %6175 = vmatmul.mubr.f32.gmra.mxu1 %v11687_v50 }
 0x1dd   : > { %6245 = vmatprep.mubr.f32.mxu0 %v11677_v55  ;;  %6322 = vmatprep.mubr.f32.mxu1 %v11684_v56 }
 0x1de   : > { %9084 = vmatpush1.bf16.msra.mxu0 %v9083_v33  ;;  %9148 = vmatpush1.bf16.msra.mxu1 %v9147_v17  ;;  %v9163_v33 = vunpack.c.l.s8.bf16 %v1551_v36  ;;  %v9101_v17 = vunpack.c.h.s8.bf16 %v1480_v52 }
 0x1df   : > { %9086 = vmatprep.subr.bf16.mxu0 %v9085_v58  ;;  %9150 = vmatprep.subr.bf16.mxu1 %v9149_v6  ;;  %v1479_v58 = vld [vmem:[%s11291_s13 + $0xc00] sm:$0xff] }
 0x1e0   : > { %v1543_v6 = vld [vmem:[%s11291_s13 + $0xe00] sm:$0xff]  ;;  %v9103_v7 = vunpack.c.h.s8.bf16 %v1479_v58  ;;  %v9107_v26 = vunpack.c.l.s8.bf16 %v1479_v58 }
 0x1e2   : > { %9088 = vmatpush1.bf16.msra.mxu0 %v9087_v10  ;;  %9152 = vmatpush1.bf16.msra.mxu1 %v9151_v12  ;;  %v9167_v10 = vunpack.c.h.s8.bf16 %v1543_v6  ;;  %v9105_v12 = vunpack.c.l.s8.bf16 %v1480_v52  ;;  %v1592_v52 = vld [vmem:[%s11291_s13 + $0xf88] sm:$0xff] }
 0x1e3   : > { %9090 = vmatprep.subr.bf16.mxu0 %v9089_v48  ;;  %9154 = vmatprep.subr.bf16.mxu1 %v9153_v16  ;;  %v9169_v48 = vunpack.c.l.s8.bf16 %v1544_v54  ;;  %v1536_v16 = vld [vmem:[%s11291_s13 + $0xdc8] sm:$0xff]  ;;  %v9181_v58 = vunpack.c.h.s8.bf16 %v1592_v52 }
 0x1e6   : > { %9092 = vmatpush1.bf16.msra.mxu0 %v9091_v40  ;;  %9156 = vmatpush1.bf16.msra.mxu1 %v9155_v27  ;;  %v9171_v40 = vunpack.c.l.s8.bf16 %v1543_v6  ;;  %v9109_v27 = vunpack.c.h.s8.bf16 %v1536_v16 }
 0x1e7   : > { %9094 = vmatprep.subr.bf16.mxu0 %v9093_v37  ;;  %9158 = vmatprep.subr.bf16.mxu1 %v9157_v32  ;;  %v1535_v37 = vld [vmem:[%s11291_s13 + $0xdc0] sm:$0xff] }
 0x1e8   : > { %v1599_v32 = vld [vmem:[%s11291_s13 + $0xfc0] sm:$0xff]  ;;  %v9111_v36 = vunpack.c.h.s8.bf16 %v1535_v37  ;;  %v9115_v54 = vunpack.c.l.s8.bf16 %v1535_v37 }
 0x1ea   : > { %9096 = vmatpush1.bf16.msra.mxu0 %v9095_v47  ;;  %9160 = vmatpush1.bf16.msra.mxu1 %v9159_v46  ;;  %v9175_v47 = vunpack.c.h.s8.bf16 %v1599_v32  ;;  %v9113_v46 = vunpack.c.l.s8.bf16 %v1536_v16  ;;  %v1584_v16 = vld [vmem:[%s11291_s13 + $0xf48] sm:$0xff] }
 0x1eb   : > { %9098 = vmatprep.subr.bf16.mxu0 %v9097_v49  ;;  %9162 = vmatprep.subr.bf16.mxu1 %v9161_v51  ;;  %v9177_v49 = vunpack.c.l.s8.bf16 %v1600_v25  ;;  %v1528_v51 = vld [vmem:[%s11291_s13 + $0xd88] sm:$0xff]  ;;  %v9189_v37 = vunpack.c.h.s8.bf16 %v1584_v16 }
 0x1ee   : > { %9100 = vmatpush1.bf16.msra.mxu0 %v9099_v29  ;;  %9164 = vmatpush1.bf16.msra.mxu1 %v9163_v33  ;;  %v9179_v29 = vunpack.c.l.s8.bf16 %v1599_v32  ;;  %v9117_v33 = vunpack.c.h.s8.bf16 %v1528_v51 }
 0x1ef   : > { %9102 = vmatprep.subr.bf16.mxu0 %v9101_v17  ;;  %9166 = vmatprep.subr.bf16.mxu1 %v9165_v61  ;;  %v1527_v17 = vld [vmem:[%s11291_s13 + $0xd80] sm:$0xff] }
 0x1f0   : > { %v1591_v61 = vld [vmem:[%s11291_s13 + $0xf80] sm:$0xff]  ;;  %v9119_v6 = vunpack.c.h.s8.bf16 %v1527_v17  ;;  %v9123_v25 = vunpack.c.l.s8.bf16 %v1527_v17 }
 0x1f2   : > { %9104 = vmatpush1.bf16.msra.mxu0 %v9103_v7  ;;  %9168 = vmatpush1.bf16.msra.mxu1 %v9167_v10  ;;  %v9183_v7 = vunpack.c.h.s8.bf16 %v1591_v61  ;;  %v9121_v10 = vunpack.c.l.s8.bf16 %v1528_v51  ;;  %v1576_v51 = vld [vmem:[%s11291_s13 + $0xf08] sm:$0xff] }
 0x1f3   : > { %9106 = vmatprep.subr.bf16.mxu0 %v9105_v12  ;;  %9170 = vmatprep.subr.bf16.mxu1 %v9169_v48  ;;  %v9185_v12 = vunpack.c.l.s8.bf16 %v1592_v52  ;;  %v1520_v48 = vld [vmem:[%s11291_s13 + $0xd48] sm:$0xff]  ;;  %v9197_v17 = vunpack.c.h.s8.bf16 %v1576_v51 }
 0x1f6   : > { %9108 = vmatpush1.bf16.msra.mxu0 %v9107_v26  ;;  %9172 = vmatpush1.bf16.msra.mxu1 %v9171_v40  ;;  %v9187_v26 = vunpack.c.l.s8.bf16 %v1591_v61  ;;  %v9125_v40 = vunpack.c.h.s8.bf16 %v1520_v48  ;;  %v1015_v61 = vpop.f32.mrf.mxu0 }
 0x1f7   : > { %9110 = vmatprep.subr.bf16.mxu0 %v9109_v27  ;;  %9174 = vmatprep.subr.bf16.mxu1 %v9173_v21  ;;  %v1519_v27 = vld [vmem:[%s11291_s13 + $0xd40] sm:$0xff] }
 0x1f8   : > { %v1583_v21 = vld [vmem:[%s11291_s13 + $0xf40] sm:$0xff]  ;;  %v9127_v32 = vunpack.c.h.s8.bf16 %v1519_v27  ;;  %v9131_v52 = vunpack.c.l.s8.bf16 %v1519_v27  ;;  %v1186_v27 = vld [vmem:[%s11291_s13 + $0x2d8] sm:$0xff] }
 0x1fa   : > { %9112 = vmatpush2.bf16.msra.mxu0 %v9111_v36  ;;  %9176 = vmatpush2.bf16.msra.mxu1 %v9175_v47  ;;  %v9191_v36 = vunpack.c.h.s8.bf16 %v1583_v21  ;;  %v9129_v47 = vunpack.c.l.s8.bf16 %v1520_v48 }
 0x1fb   : > { %9114 = vmatprep.subr.bf16.mxu0 %v9113_v46  ;;  %9178 = vmatprep.subr.bf16.mxu1 %v9177_v49  ;;  %v9193_v46 = vunpack.c.l.s8.bf16 %v1584_v16  ;;  %v1512_v49 = vld [vmem:[%s11291_s13 + $0xd08] sm:$0xff] }
 0x1fc   : > { %v9137_v16 = vunpack.c.l.s8.bf16 %v1512_v49 }
 0x1fe   : > { %9116 = vmatpush2.bf16.msra.mxu0 %v9115_v54  ;;  %9180 = vmatpush2.bf16.msra.mxu1 %v9179_v29  ;;  %v9195_v54 = vunpack.c.l.s8.bf16 %v1583_v21  ;;  %v9133_v29 = vunpack.c.h.s8.bf16 %v1512_v49  ;;  %v9269_v49 = vunpack.c.h.s8.bf16 %v1186_v27 }
 0x1ff   : > { %9118 = vmatprep.subr.bf16.mxu0 %v9117_v33  ;;  %9182 = vmatprep.subr.bf16.mxu1 %v9181_v58  ;;  %v1511_v33 = vld [vmem:[%s11291_s13 + $0xd00] sm:$0xff] }
 0x200   : > { %v1575_v58 = vld [vmem:[%s11291_s13 + $0xf00] sm:$0xff]  ;;  %v9139_v21 = vunpack.c.l.s8.bf16 %v1511_v33 }
 0x201   : > { %v9199_v48 = vunpack.c.h.s8.bf16 %v1575_v58 }
 0x202   : > { %9120 = vmatpush2.bf16.msra.mxu0 %v9119_v6  ;;  %9184 = vmatpush2.bf16.msra.mxu1 %v9183_v7  ;;  %v1058_v6 = vpop.f32.mrf.mxu1  ;;  %v9135_v7 = vunpack.c.h.s8.bf16 %v1511_v33 }
 0x203   : > { %9122 = vmatprep.subr.bf16.mxu0 %v9121_v10  ;;  %9186 = vmatprep.subr.bf16.mxu1 %v9185_v12  ;;  %v521_v10 = vrot.slane %v11565_v31, %v11556_v11  ;;  %v529_v12 = vrot.slane %v11565_v31, %v11553_v8  ;;  %v9203_v31 = vunpack.c.l.s8.bf16 %v1575_v58  ;;  %v1458_v11 = vld [vmem:[%s11291_s13 + $0xb58] sm:$0xff] }
 0x206   : > { %9124 = vmatpush2.bf16.msra.mxu0 %v9123_v25  ;;  %9188 = vmatpush2.bf16.msra.mxu1 %v9187_v26  ;;  %v9201_v25 = vunpack.c.l.s8.bf16 %v1576_v51  ;;  %v1122_v26 = vld [vmem:[%s11291_s13 + $0xd8] sm:$0xff]  ;;  %v1121_v51 = vld [vmem:[%s11291_s13 + $0xd0] sm:$0xff] }
 0x207   : > { %9126 = vmatprep.subr.bf16.mxu0 %v9125_v40  ;;  %9190 = vmatprep.subr.bf16.mxu1 %v9189_v37  ;;  %v1017_v40 = vpop.f32.mrf.mxu0  ;;  %v1060_v37 = vpop.f32.mrf.mxu1 }
 0x20a   : > { %9128 = vmatpush2.bf16.msra.mxu0 %v9127_v32  ;;  %9192 = vmatpush2.bf16.msra.mxu1 %v9191_v36  ;;  %v1012_v32 = vadd.f32 %v11646_v18, %v521_v10  ;;  %v1055_v36 = vadd.f32 %v11654_v3, %v529_v12  ;;  %v1016_v18 = vadd.f32 %v1015_v61, %v521_v10  ;;  %v9207_v3 = vunpack.c.h.s8.bf16 %v1121_v51  ;;  %v1178_v61 = vld [vmem:[%s11291_s13 + $0x298] sm:$0xff] }
 0x20b   : > { %9130 = vmatprep.subr.bf16.mxu0 %v9129_v47  ;;  %9194 = vmatprep.subr.bf16.mxu1 %v9193_v46  ;;  %v9205_v47 = vunpack.c.h.s8.bf16 %v1122_v26  ;;  %v1018_v46 = vadd.f32 %v1017_v40, %v11652_v15  ;;  %v1059_v15 = vadd.f32 %v1058_v6, %v529_v12  ;;  %v9211_v6 = vunpack.c.l.s8.bf16 %v1121_v51  ;;  %v1113_v40 = vld [vmem:[%s11291_s13 + $0x90] sm:$0xff] }
 0x20c   : > { %v11733_v33 = vmax.f32 %v1055_v36, 0.0  ;;  %v11744_v10 = vmax.f32 %v1016_v18, 0.0 }
 0x20d   : > { %v11747_v12 = vmax.f32 %v1059_v15, 0.0 }
 0x20e   : > { %9132 = vmatpush2.bf16.msra.mxu0 %v9131_v52  ;;  %9196 = vmatpush2.bf16.msra.mxu1 %v9195_v54  ;;  %v1061_v52 = vadd.f32 %v1060_v37, %v11660_v13  ;;  %v1185_v54 = vld [vmem:[%s11291_s13 + $0x2d0] sm:$0xff]  ;;  %v9273_v13 = vunpack.c.l.s8.bf16 %v1186_v27  ;;  %v9277_v27 = vunpack.c.h.s8.bf16 %v1178_v61 }
 0x20f   : > { %9134 = vmatprep.subr.bf16.mxu0 %v9133_v29  ;;  %9198 = vmatprep.subr.bf16.mxu1 %v9197_v17  ;;  %v11731_v29 = vmax.f32 %v1012_v32, 0.0  ;;  %v11735_v17 = vmax.f32 %v1018_v46, 0.0  ;;  %v9271_v58 = vunpack.c.h.s8.bf16 %v1185_v54  ;;  %v1177_v37 = vld [vmem:[%s11291_s13 + $0x290] sm:$0xff]  ;;  %v1170_v46 = vld [vmem:[%s11291_s13 + $0x258] sm:$0xff] }
 0x210   : > { %v9279_v32 = vunpack.c.h.s8.bf16 %v1177_v37  ;;  %v9283_v51 = vunpack.c.l.s8.bf16 %v1177_v37  ;;  %v9285_v18 = vunpack.c.h.s8.bf16 %v1170_v46  ;;  %v1161_v37 = vld [vmem:[%s11291_s13 + $0x210] sm:$0xff] }
 0x212   : > { %9136 = vmatpush2.bf16.msra.mxu0 %v9135_v7  ;;  %9200 = vmatpush2.bf16.msra.mxu1 %v9199_v48  ;;  %v9209_v7 = vunpack.c.l.s8.bf16 %v1122_v26  ;;  %v11737_v48 = vmax.f32 %v1061_v52, 0.0 }
 0x213   : > { %9138 = vmatprep.subr.bf16.mxu0 %v9137_v16  ;;  %9202 = vmatprep.subr.bf16.mxu1 %v9201_v25  ;;  %v1114_v16 = vld [vmem:[%s11291_s13 + $0x98] sm:$0xff]  ;;  %v9275_v25 = vunpack.c.l.s8.bf16 %v1185_v54  ;;  %v1105_v54 = vld [vmem:[%s11291_s13 + $0x50] sm:$0xff] }
 0x214   : > { %v9213_v26 = vunpack.c.h.s8.bf16 %v1114_v16  ;;  %v9217_v36 = vunpack.c.l.s8.bf16 %v1114_v16  ;;  %v9223_v15 = vunpack.c.h.s8.bf16 %v1105_v54  ;;  %v1098_v16 = vld [vmem:[%s11291_s13 + $0x18] sm:$0xff] }
 0x216   : > { %9140 = vmatpush2.bf16.msra.mxu0 %v9139_v21  ;;  %9204 = vmatpush2.bf16.msra.mxu1 %v9203_v31  ;;  %v9215_v21 = vunpack.c.h.s8.bf16 %v1113_v40  ;;  %v9281_v31 = vunpack.c.l.s8.bf16 %v1178_v61  ;;  %v1162_v61 = vld [vmem:[%s11291_s13 + $0x218] sm:$0xff] }
 0x217   : > { %9206 = vmatprep.subr.bf16.mxu0 %v9205_v47  ;;  %9270 = vmatprep.subr.bf16.mxu1 %v9269_v49  ;;  %v1106_v47 = vld [vmem:[%s11291_s13 + $0x58] sm:$0xff]  ;;  %v9219_v49 = vunpack.c.l.s8.bf16 %v1113_v40  ;;  %v1097_v40 = vld [vmem:[%s11291_s13 + $0x10] sm:$0xff] }
 0x218   : > { %v9221_v52 = vunpack.c.h.s8.bf16 %v1106_v47 }
 0x219   : > { %6246 = vmatmul.mubr.f32.vlgmr.msra.gmra.mxu0 %v11731_v29  ;;  %6323 = vmatmul.mubr.f32.vlgmr.msra.gmra.mxu1 %v11733_v33 }
 0x21a   : > { %6251 = vmatprep.mubr.f32.mxu0 %v11735_v17  ;;  %6328 = vmatprep.mubr.f32.mxu1 %v11737_v48 }
 0x21b   : > { %9208 = vmatpush1.bf16.msra.mxu0 %v9207_v3  ;;  %9272 = vmatpush1.bf16.msra.mxu1 %v9271_v58  ;;  %v1169_v3 = vld [vmem:[%s11291_s13 + $0x250] sm:$0xff] }
 0x21c   : > { %9210 = vmatprep.subr.bf16.mxu0 %v9209_v7  ;;  %9274 = vmatprep.subr.bf16.mxu1 %v9273_v13  ;;  %v9287_v58 = vunpack.c.h.s8.bf16 %v1169_v3  ;;  %v9225_v7 = vunpack.c.l.s8.bf16 %v1106_v47  ;;  %v9289_v13 = vunpack.c.l.s8.bf16 %v1170_v46  ;;  %v1154_v47 = vld [vmem:[%s11291_s13 + $0x1d8] sm:$0xff] }
 0x21d   : > { %6252 = vmatmul.mubr.f32.gmra.mxu0 %v11744_v10  ;;  %6329 = vmatmul.mubr.f32.gmra.mxu1 %v11747_v12  ;;  %v1218_v46 = vld [vmem:[%s11291_s13 + $0x3d8] sm:$0xff] }
 0x21e   : > { %6399 = vmatprep.mubr.f32.mxu0 %v11482_v0  ;;  %6476 = vmatprep.mubr.f32.mxu1 %v11486_v5 }
 0x21f   : > { %9212 = vmatpush1.bf16.msra.mxu0 %v9211_v6  ;;  %9276 = vmatpush1.bf16.msra.mxu1 %v9275_v25  ;;  %v9227_v6 = vunpack.c.l.s8.bf16 %v1105_v54  ;;  %v9291_v25 = vunpack.c.l.s8.bf16 %v1169_v3  ;;  %v1153_v54 = vld [vmem:[%s11291_s13 + $0x1d0] sm:$0xff] }
 0x220   : > { %9214 = vmatprep.subr.bf16.mxu0 %v9213_v26  ;;  %9278 = vmatprep.subr.bf16.mxu1 %v9277_v27  ;;  %v9229_v26 = vunpack.c.h.s8.bf16 %v1098_v16  ;;  %v9293_v27 = vunpack.c.h.s8.bf16 %v1162_v61  ;;  %v1217_v3 = vld [vmem:[%s11291_s13 + $0x3d0] sm:$0xff] }
 0x223   : > { %9216 = vmatpush1.bf16.msra.mxu0 %v9215_v21  ;;  %9280 = vmatpush1.bf16.msra.mxu1 %v9279_v32  ;;  %v9231_v21 = vunpack.c.h.s8.bf16 %v1097_v40  ;;  %v9295_v32 = vunpack.c.h.s8.bf16 %v1161_v37 }
 0x224   : > { %9218 = vmatprep.subr.bf16.mxu0 %v9217_v36  ;;  %9282 = vmatprep.subr.bf16.mxu1 %v9281_v31  ;;  %v9233_v36 = vunpack.c.l.s8.bf16 %v1098_v16  ;;  %v9297_v31 = vunpack.c.l.s8.bf16 %v1162_v61  ;;  %v1146_v16 = vld [vmem:[%s11291_s13 + $0x198] sm:$0xff] }
 0x225   : > { %v1210_v61 = vld [vmem:[%s11291_s13 + $0x398] sm:$0xff] }
 0x227   : > { %9220 = vmatpush1.bf16.msra.mxu0 %v9219_v49  ;;  %9284 = vmatpush1.bf16.msra.mxu1 %v9283_v51  ;;  %v9235_v49 = vunpack.c.l.s8.bf16 %v1097_v40  ;;  %v9299_v51 = vunpack.c.l.s8.bf16 %v1161_v37  ;;  %v1145_v40 = vld [vmem:[%s11291_s13 + $0x190] sm:$0xff] }
 0x228   : > { %9222 = vmatprep.subr.bf16.mxu0 %v9221_v52  ;;  %9286 = vmatprep.subr.bf16.mxu1 %v9285_v18  ;;  %v9237_v52 = vunpack.c.h.s8.bf16 %v1154_v47  ;;  %v9301_v18 = vunpack.c.h.s8.bf16 %v1218_v46  ;;  %v1209_v37 = vld [vmem:[%s11291_s13 + $0x390] sm:$0xff] }
 0x22b   : > { %9224 = vmatpush1.bf16.msra.mxu0 %v9223_v15  ;;  %9288 = vmatpush1.bf16.msra.mxu1 %v9287_v58  ;;  %v9239_v15 = vunpack.c.h.s8.bf16 %v1153_v54  ;;  %v9303_v58 = vunpack.c.h.s8.bf16 %v1217_v3 }
 0x22c   : > { %9226 = vmatprep.subr.bf16.mxu0 %v9225_v7  ;;  %9290 = vmatprep.subr.bf16.mxu1 %v9289_v13  ;;  %v9241_v7 = vunpack.c.l.s8.bf16 %v1154_v47  ;;  %v9305_v13 = vunpack.c.l.s8.bf16 %v1218_v46  ;;  %v1138_v47 = vld [vmem:[%s11291_s13 + $0x158] sm:$0xff] }
 0x22d   : > { %v1202_v46 = vld [vmem:[%s11291_s13 + $0x358] sm:$0xff] }
 0x22f   : > { %9228 = vmatpush1.bf16.msra.mxu0 %v9227_v6  ;;  %9292 = vmatpush1.bf16.msra.mxu1 %v9291_v25  ;;  %v9243_v6 = vunpack.c.l.s8.bf16 %v1153_v54  ;;  %v9307_v25 = vunpack.c.l.s8.bf16 %v1217_v3  ;;  %v1137_v54 = vld [vmem:[%s11291_s13 + $0x150] sm:$0xff] }
 0x230   : > { %9230 = vmatprep.subr.bf16.mxu0 %v9229_v26  ;;  %9294 = vmatprep.subr.bf16.mxu1 %v9293_v27  ;;  %v9245_v26 = vunpack.c.h.s8.bf16 %v1146_v16  ;;  %v9309_v27 = vunpack.c.h.s8.bf16 %v1210_v61  ;;  %v1201_v3 = vld [vmem:[%s11291_s13 + $0x350] sm:$0xff] }
 0x233   : > { %9232 = vmatpush1.bf16.msra.mxu0 %v9231_v21  ;;  %9296 = vmatpush1.bf16.msra.mxu1 %v9295_v32  ;;  %v9247_v21 = vunpack.c.h.s8.bf16 %v1145_v40  ;;  %v9311_v32 = vunpack.c.h.s8.bf16 %v1209_v37 }
 0x234   : > { %9234 = vmatprep.subr.bf16.mxu0 %v9233_v36  ;;  %9298 = vmatprep.subr.bf16.mxu1 %v9297_v31  ;;  %v9249_v36 = vunpack.c.l.s8.bf16 %v1146_v16  ;;  %v9313_v31 = vunpack.c.l.s8.bf16 %v1210_v61  ;;  %v1130_v16 = vld [vmem:[%s11291_s13 + $0x118] sm:$0xff] }
 0x235   : > { %v1194_v61 = vld [vmem:[%s11291_s13 + $0x318] sm:$0xff] }
 0x237   : > { %9236 = vmatpush1.bf16.msra.mxu0 %v9235_v49  ;;  %9300 = vmatpush1.bf16.msra.mxu1 %v9299_v51  ;;  %v9251_v49 = vunpack.c.l.s8.bf16 %v1145_v40  ;;  %v9315_v51 = vunpack.c.l.s8.bf16 %v1209_v37  ;;  %v1129_v40 = vld [vmem:[%s11291_s13 + $0x110] sm:$0xff] }
 0x238   : > { %9238 = vmatprep.subr.bf16.mxu0 %v9237_v52  ;;  %9302 = vmatprep.subr.bf16.mxu1 %v9301_v18  ;;  %v9253_v52 = vunpack.c.h.s8.bf16 %v1138_v47  ;;  %v9317_v18 = vunpack.c.h.s8.bf16 %v1202_v46  ;;  %v1193_v37 = vld [vmem:[%s11291_s13 + $0x310] sm:$0xff] }
 0x23b   : > { %9240 = vmatpush2.bf16.msra.mxu0 %v9239_v15  ;;  %9304 = vmatpush2.bf16.msra.mxu1 %v9303_v58  ;;  %v9255_v15 = vunpack.c.h.s8.bf16 %v1137_v54  ;;  %v9319_v58 = vunpack.c.h.s8.bf16 %v1201_v3 }
 0x23c   : > { %9242 = vmatprep.subr.bf16.mxu0 %v9241_v7  ;;  %9306 = vmatprep.subr.bf16.mxu1 %v9305_v13  ;;  %v9257_v7 = vunpack.c.l.s8.bf16 %v1138_v47  ;;  %v9321_v13 = vunpack.c.l.s8.bf16 %v1202_v46  ;;  %v1250_v47 = vld [vmem:[%s11291_s13 + $0x4d8] sm:$0xff] }
 0x23d   : > { %v1314_v46 = vld [vmem:[%s11291_s13 + $0x6d8] sm:$0xff] }
 0x23f   : > { %9244 = vmatpush2.bf16.msra.mxu0 %v9243_v6  ;;  %9308 = vmatpush2.bf16.msra.mxu1 %v9307_v25  ;;  %v9259_v6 = vunpack.c.l.s8.bf16 %v1137_v54  ;;  %v9323_v25 = vunpack.c.l.s8.bf16 %v1201_v3  ;;  %v9397_v54 = vunpack.c.h.s8.bf16 %v1314_v46  ;;  %v1313_v3 = vld [vmem:[%s11291_s13 + $0x6d0] sm:$0xff] }
 0x240   : > { %9246 = vmatprep.subr.bf16.mxu0 %v9245_v26  ;;  %9310 = vmatprep.subr.bf16.mxu1 %v9309_v27  ;;  %v9261_v26 = vunpack.c.h.s8.bf16 %v1130_v16  ;;  %v9325_v27 = vunpack.c.h.s8.bf16 %v1194_v61 }
 0x243   : > { %9248 = vmatpush2.bf16.msra.mxu0 %v9247_v21  ;;  %9312 = vmatpush2.bf16.msra.mxu1 %v9311_v32  ;;  %v9263_v21 = vunpack.c.h.s8.bf16 %v1129_v40  ;;  %v9327_v32 = vunpack.c.h.s8.bf16 %v1193_v37 }
 0x244   : > { %9250 = vmatprep.subr.bf16.mxu0 %v9249_v36  ;;  %9314 = vmatprep.subr.bf16.mxu1 %v9313_v31  ;;  %v9265_v36 = vunpack.c.l.s8.bf16 %v1130_v16  ;;  %v9329_v31 = vunpack.c.l.s8.bf16 %v1194_v61  ;;  %v1242_v16 = vld [vmem:[%s11291_s13 + $0x498] sm:$0xff] }
 0x245   : > { %v1306_v61 = vld [vmem:[%s11291_s13 + $0x698] sm:$0xff] }
 0x247   : > { %9252 = vmatpush2.bf16.msra.mxu0 %v9251_v49  ;;  %9316 = vmatpush2.bf16.msra.mxu1 %v9315_v51  ;;  %v9267_v49 = vunpack.c.l.s8.bf16 %v1129_v40  ;;  %v9331_v51 = vunpack.c.l.s8.bf16 %v1193_v37  ;;  %v1241_v40 = vld [vmem:[%s11291_s13 + $0x490] sm:$0xff] }
 0x248   : > { %9254 = vmatprep.subr.bf16.mxu0 %v9253_v52  ;;  %9318 = vmatprep.subr.bf16.mxu1 %v9317_v18  ;;  %v9333_v52 = vunpack.c.h.s8.bf16 %v1250_v47  ;;  %v1249_v18 = vld [vmem:[%s11291_s13 + $0x4d0] sm:$0xff] }
 0x249   : > { %v1305_v37 = vld [vmem:[%s11291_s13 + $0x690] sm:$0xff] }
 0x24b   : > { %9256 = vmatpush2.bf16.msra.mxu0 %v9255_v15  ;;  %9320 = vmatpush2.bf16.msra.mxu1 %v9319_v58  ;;  %v9335_v15 = vunpack.c.h.s8.bf16 %v1249_v18  ;;  %v9399_v58 = vunpack.c.h.s8.bf16 %v1313_v3 }
 0x24c   : > { %9258 = vmatprep.subr.bf16.mxu0 %v9257_v7  ;;  %9322 = vmatprep.subr.bf16.mxu1 %v9321_v13  ;;  %v9337_v7 = vunpack.c.l.s8.bf16 %v1250_v47  ;;  %v9401_v13 = vunpack.c.l.s8.bf16 %v1314_v46  ;;  %v1234_v47 = vld [vmem:[%s11291_s13 + $0x458] sm:$0xff] }
 0x24d   : > { %v1298_v46 = vld [vmem:[%s11291_s13 + $0x658] sm:$0xff] }
 0x24f   : > { %9260 = vmatpush2.bf16.msra.mxu0 %v9259_v6  ;;  %9324 = vmatpush2.bf16.msra.mxu1 %v9323_v25  ;;  %v9339_v6 = vunpack.c.l.s8.bf16 %v1249_v18  ;;  %v9403_v25 = vunpack.c.l.s8.bf16 %v1313_v3  ;;  %v9413_v18 = vunpack.c.h.s8.bf16 %v1298_v46  ;;  %v1297_v3 = vld [vmem:[%s11291_s13 + $0x650] sm:$0xff] }
 0x250   : > { %9262 = vmatprep.subr.bf16.mxu0 %v9261_v26  ;;  %9326 = vmatprep.subr.bf16.mxu1 %v9325_v27  ;;  %v9341_v26 = vunpack.c.h.s8.bf16 %v1242_v16  ;;  %v9405_v27 = vunpack.c.h.s8.bf16 %v1306_v61 }
 0x253   : > { %9264 = vmatpush2.bf16.msra.mxu0 %v9263_v21  ;;  %9328 = vmatpush2.bf16.msra.mxu1 %v9327_v32  ;;  %v9343_v21 = vunpack.c.h.s8.bf16 %v1241_v40  ;;  %v9407_v32 = vunpack.c.h.s8.bf16 %v1305_v37 }
 0x254   : > { %9266 = vmatprep.subr.bf16.mxu0 %v9265_v36  ;;  %9330 = vmatprep.subr.bf16.mxu1 %v9329_v31  ;;  %v9345_v36 = vunpack.c.l.s8.bf16 %v1242_v16  ;;  %v9409_v31 = vunpack.c.l.s8.bf16 %v1306_v61  ;;  %v1226_v16 = vld [vmem:[%s11291_s13 + $0x418] sm:$0xff] }
 0x255   : > { %v1290_v61 = vld [vmem:[%s11291_s13 + $0x618] sm:$0xff] }
 0x257   : > { %9268 = vmatpush2.bf16.msra.mxu0 %v9267_v49  ;;  %9332 = vmatpush2.bf16.msra.mxu1 %v9331_v51  ;;  %v9347_v49 = vunpack.c.l.s8.bf16 %v1241_v40  ;;  %v9411_v51 = vunpack.c.l.s8.bf16 %v1305_v37  ;;  %v1225_v40 = vld [vmem:[%s11291_s13 + $0x410] sm:$0xff] }
 0x258   : > { %9334 = vmatprep.subr.bf16.mxu0 %v9333_v52  ;;  %9398 = vmatprep.subr.bf16.mxu1 %v9397_v54  ;;  %v9349_v52 = vunpack.c.h.s8.bf16 %v1234_v47  ;;  %v1233_v54 = vld [vmem:[%s11291_s13 + $0x450] sm:$0xff] }
 0x259   : > { %v1289_v37 = vld [vmem:[%s11291_s13 + $0x610] sm:$0xff] }
 0x25a   : > { %6400 = vmatmul.mubr.f32.vlgmr.msra.gmra.mxu0 %v11484_v4  ;;  %6477 = vmatmul.mubr.f32.vlgmr.msra.gmra.mxu1 %v11480_v63 }
 0x25b   : > { %6405 = vmatprep.mubr.f32.mxu0 %v11505_v19  ;;  %6482 = vmatprep.mubr.f32.mxu1 %v11512_v23 }
 0x25c   : > { %9336 = vmatpush1.bf16.msra.mxu0 %v9335_v15  ;;  %9400 = vmatpush1.bf16.msra.mxu1 %v9399_v58  ;;  %v9351_v15 = vunpack.c.h.s8.bf16 %v1233_v54  ;;  %v9415_v58 = vunpack.c.h.s8.bf16 %v1297_v3 }
 0x25d   : > { %9338 = vmatprep.subr.bf16.mxu0 %v9337_v7  ;;  %9402 = vmatprep.subr.bf16.mxu1 %v9401_v13  ;;  %v9353_v7 = vunpack.c.l.s8.bf16 %v1234_v47  ;;  %v9417_v13 = vunpack.c.l.s8.bf16 %v1298_v46  ;;  %v1282_v47 = vld [vmem:[%s11291_s13 + $0x5d8] sm:$0xff] }
 0x25e   : > { %6406 = vmatmul.mubr.f32.gmra.mxu0 %v11510_v22  ;;  %6483 = vmatmul.mubr.f32.gmra.mxu1 %v11515_v28  ;;  %v1346_v46 = vld [vmem:[%s11291_s13 + $0x7d8] sm:$0xff] }
 0x25f   : > { %6553 = vmatprep.mubr.f32.mxu0 %v11524_v35  ;;  %6630 = vmatprep.mubr.f32.mxu1 %v11526_v38 }
 0x260   : > { %9340 = vmatpush1.bf16.msra.mxu0 %v9339_v6  ;;  %9404 = vmatpush1.bf16.msra.mxu1 %v9403_v25  ;;  %v9355_v6 = vunpack.c.l.s8.bf16 %v1233_v54  ;;  %v9419_v25 = vunpack.c.l.s8.bf16 %v1297_v3  ;;  %v1281_v54 = vld [vmem:[%s11291_s13 + $0x5d0] sm:$0xff] }
 0x261   : > { %9342 = vmatprep.subr.bf16.mxu0 %v9341_v26  ;;  %9406 = vmatprep.subr.bf16.mxu1 %v9405_v27  ;;  %v9357_v26 = vunpack.c.h.s8.bf16 %v1226_v16  ;;  %v9421_v27 = vunpack.c.h.s8.bf16 %v1290_v61  ;;  %v1345_v3 = vld [vmem:[%s11291_s13 + $0x7d0] sm:$0xff] }
 0x264   : > { %9344 = vmatpush1.bf16.msra.mxu0 %v9343_v21  ;;  %9408 = vmatpush1.bf16.msra.mxu1 %v9407_v32  ;;  %v9359_v21 = vunpack.c.h.s8.bf16 %v1225_v40  ;;  %v9423_v32 = vunpack.c.h.s8.bf16 %v1289_v37 }
 0x265   : > { %9346 = vmatprep.subr.bf16.mxu0 %v9345_v36  ;;  %9410 = vmatprep.subr.bf16.mxu1 %v9409_v31  ;;  %v9361_v36 = vunpack.c.l.s8.bf16 %v1226_v16  ;;  %v9425_v31 = vunpack.c.l.s8.bf16 %v1290_v61  ;;  %v1274_v16 = vld [vmem:[%s11291_s13 + $0x598] sm:$0xff] }
 0x266   : > { %v1338_v61 = vld [vmem:[%s11291_s13 + $0x798] sm:$0xff] }
 0x268   : > { %9348 = vmatpush1.bf16.msra.mxu0 %v9347_v49  ;;  %9412 = vmatpush1.bf16.msra.mxu1 %v9411_v51  ;;  %v9363_v49 = vunpack.c.l.s8.bf16 %v1225_v40  ;;  %v9427_v51 = vunpack.c.l.s8.bf16 %v1289_v37  ;;  %v1273_v40 = vld [vmem:[%s11291_s13 + $0x590] sm:$0xff] }
 0x269   : > { %9350 = vmatprep.subr.bf16.mxu0 %v9349_v52  ;;  %9414 = vmatprep.subr.bf16.mxu1 %v9413_v18  ;;  %v9365_v52 = vunpack.c.h.s8.bf16 %v1282_v47  ;;  %v9429_v18 = vunpack.c.h.s8.bf16 %v1346_v46  ;;  %v1337_v37 = vld [vmem:[%s11291_s13 + $0x790] sm:$0xff] }
 0x26c   : > { %9352 = vmatpush1.bf16.msra.mxu0 %v9351_v15  ;;  %9416 = vmatpush1.bf16.msra.mxu1 %v9415_v58  ;;  %v9367_v15 = vunpack.c.h.s8.bf16 %v1281_v54  ;;  %v9431_v58 = vunpack.c.h.s8.bf16 %v1345_v3 }
 0x26d   : > { %9354 = vmatprep.subr.bf16.mxu0 %v9353_v7  ;;  %9418 = vmatprep.subr.bf16.mxu1 %v9417_v13  ;;  %v9369_v7 = vunpack.c.l.s8.bf16 %v1282_v47  ;;  %v9433_v13 = vunpack.c.l.s8.bf16 %v1346_v46  ;;  %v1266_v47 = vld [vmem:[%s11291_s13 + $0x558] sm:$0xff] }
 0x26e   : > { %v1330_v46 = vld [vmem:[%s11291_s13 + $0x758] sm:$0xff] }
 0x270   : > { %9356 = vmatpush1.bf16.msra.mxu0 %v9355_v6  ;;  %9420 = vmatpush1.bf16.msra.mxu1 %v9419_v25  ;;  %v9371_v6 = vunpack.c.l.s8.bf16 %v1281_v54  ;;  %v9435_v25 = vunpack.c.l.s8.bf16 %v1345_v3  ;;  %v1265_v54 = vld [vmem:[%s11291_s13 + $0x550] sm:$0xff] }
 0x271   : > { %9358 = vmatprep.subr.bf16.mxu0 %v9357_v26  ;;  %9422 = vmatprep.subr.bf16.mxu1 %v9421_v27  ;;  %v9373_v26 = vunpack.c.h.s8.bf16 %v1274_v16  ;;  %v9437_v27 = vunpack.c.h.s8.bf16 %v1338_v61  ;;  %v1329_v3 = vld [vmem:[%s11291_s13 + $0x750] sm:$0xff] }
 0x274   : > { %9360 = vmatpush1.bf16.msra.mxu0 %v9359_v21  ;;  %9424 = vmatpush1.bf16.msra.mxu1 %v9423_v32  ;;  %v9375_v21 = vunpack.c.h.s8.bf16 %v1273_v40  ;;  %v9439_v32 = vunpack.c.h.s8.bf16 %v1337_v37 }
 0x275   : > { %9362 = vmatprep.subr.bf16.mxu0 %v9361_v36  ;;  %9426 = vmatprep.subr.bf16.mxu1 %v9425_v31  ;;  %v9377_v36 = vunpack.c.l.s8.bf16 %v1274_v16  ;;  %v9441_v31 = vunpack.c.l.s8.bf16 %v1338_v61  ;;  %v1258_v16 = vld [vmem:[%s11291_s13 + $0x518] sm:$0xff] }
 0x276   : > { %v1322_v61 = vld [vmem:[%s11291_s13 + $0x718] sm:$0xff] }
 0x278   : > { %9364 = vmatpush1.bf16.msra.mxu0 %v9363_v49  ;;  %9428 = vmatpush1.bf16.msra.mxu1 %v9427_v51  ;;  %v9379_v49 = vunpack.c.l.s8.bf16 %v1273_v40  ;;  %v9443_v51 = vunpack.c.l.s8.bf16 %v1337_v37  ;;  %v1257_v40 = vld [vmem:[%s11291_s13 + $0x510] sm:$0xff] }
 0x279   : > { %9366 = vmatprep.subr.bf16.mxu0 %v9365_v52  ;;  %9430 = vmatprep.subr.bf16.mxu1 %v9429_v18  ;;  %v9381_v52 = vunpack.c.h.s8.bf16 %v1266_v47  ;;  %v9445_v18 = vunpack.c.h.s8.bf16 %v1330_v46  ;;  %v1321_v37 = vld [vmem:[%s11291_s13 + $0x710] sm:$0xff] }
 0x27c   : > { %9368 = vmatpush2.bf16.msra.mxu0 %v9367_v15  ;;  %9432 = vmatpush2.bf16.msra.mxu1 %v9431_v58  ;;  %v9383_v15 = vunpack.c.h.s8.bf16 %v1265_v54  ;;  %v9447_v58 = vunpack.c.h.s8.bf16 %v1329_v3 }
 0x27d   : > { %9370 = vmatprep.subr.bf16.mxu0 %v9369_v7  ;;  %9434 = vmatprep.subr.bf16.mxu1 %v9433_v13  ;;  %v9385_v7 = vunpack.c.l.s8.bf16 %v1266_v47  ;;  %v9449_v13 = vunpack.c.l.s8.bf16 %v1330_v46  ;;  %v1378_v47 = vld [vmem:[%s11291_s13 + $0x8d8] sm:$0xff] }
 0x27e   : > { %v1442_v46 = vld [vmem:[%s11291_s13 + $0xad8] sm:$0xff] }
 0x280   : > { %9372 = vmatpush2.bf16.msra.mxu0 %v9371_v6  ;;  %9436 = vmatpush2.bf16.msra.mxu1 %v9435_v25  ;;  %v9387_v6 = vunpack.c.l.s8.bf16 %v1265_v54  ;;  %v9451_v25 = vunpack.c.l.s8.bf16 %v1329_v3  ;;  %v9525_v54 = vunpack.c.h.s8.bf16 %v1442_v46  ;;  %v1441_v3 = vld [vmem:[%s11291_s13 + $0xad0] sm:$0xff] }
 0x281   : > { %9374 = vmatprep.subr.bf16.mxu0 %v9373_v26  ;;  %9438 = vmatprep.subr.bf16.mxu1 %v9437_v27  ;;  %v9389_v26 = vunpack.c.h.s8.bf16 %v1258_v16  ;;  %v9453_v27 = vunpack.c.h.s8.bf16 %v1322_v61 }
 0x284   : > { %9376 = vmatpush2.bf16.msra.mxu0 %v9375_v21  ;;  %9440 = vmatpush2.bf16.msra.mxu1 %v9439_v32  ;;  %v9391_v21 = vunpack.c.h.s8.bf16 %v1257_v40  ;;  %v9455_v32 = vunpack.c.h.s8.bf16 %v1321_v37 }
 0x285   : > { %9378 = vmatprep.subr.bf16.mxu0 %v9377_v36  ;;  %9442 = vmatprep.subr.bf16.mxu1 %v9441_v31  ;;  %v9393_v36 = vunpack.c.l.s8.bf16 %v1258_v16  ;;  %v9457_v31 = vunpack.c.l.s8.bf16 %v1322_v61  ;;  %v1370_v16 = vld [vmem:[%s11291_s13 + $0x898] sm:$0xff] }
 0x286   : > { %v1434_v61 = vld [vmem:[%s11291_s13 + $0xa98] sm:$0xff] }
 0x288   : > { %9380 = vmatpush2.bf16.msra.mxu0 %v9379_v49  ;;  %9444 = vmatpush2.bf16.msra.mxu1 %v9443_v51  ;;  %v9395_v49 = vunpack.c.l.s8.bf16 %v1257_v40  ;;  %v9459_v51 = vunpack.c.l.s8.bf16 %v1321_v37  ;;  %v1369_v40 = vld [vmem:[%s11291_s13 + $0x890] sm:$0xff] }
 0x289   : > { %9382 = vmatprep.subr.bf16.mxu0 %v9381_v52  ;;  %9446 = vmatprep.subr.bf16.mxu1 %v9445_v18  ;;  %v9461_v52 = vunpack.c.h.s8.bf16 %v1378_v47  ;;  %v1377_v18 = vld [vmem:[%s11291_s13 + $0x8d0] sm:$0xff] }
 0x28a   : > { %v1433_v37 = vld [vmem:[%s11291_s13 + $0xa90] sm:$0xff] }
 0x28c   : > { %9384 = vmatpush2.bf16.msra.mxu0 %v9383_v15  ;;  %9448 = vmatpush2.bf16.msra.mxu1 %v9447_v58  ;;  %v9463_v15 = vunpack.c.h.s8.bf16 %v1377_v18  ;;  %v9527_v58 = vunpack.c.h.s8.bf16 %v1441_v3 }
 0x28d   : > { %9386 = vmatprep.subr.bf16.mxu0 %v9385_v7  ;;  %9450 = vmatprep.subr.bf16.mxu1 %v9449_v13  ;;  %v9465_v7 = vunpack.c.l.s8.bf16 %v1378_v47  ;;  %v9529_v13 = vunpack.c.l.s8.bf16 %v1442_v46  ;;  %v1362_v47 = vld [vmem:[%s11291_s13 + $0x858] sm:$0xff] }
 0x28e   : > { %v1426_v46 = vld [vmem:[%s11291_s13 + $0xa58] sm:$0xff] }
 0x290   : > { %9388 = vmatpush2.bf16.msra.mxu0 %v9387_v6  ;;  %9452 = vmatpush2.bf16.msra.mxu1 %v9451_v25  ;;  %v9467_v6 = vunpack.c.l.s8.bf16 %v1377_v18  ;;  %v9531_v25 = vunpack.c.l.s8.bf16 %v1441_v3  ;;  %v9541_v18 = vunpack.c.h.s8.bf16 %v1426_v46  ;;  %v1425_v3 = vld [vmem:[%s11291_s13 + $0xa50] sm:$0xff] }
 0x291   : > { %9390 = vmatprep.subr.bf16.mxu0 %v9389_v26  ;;  %9454 = vmatprep.subr.bf16.mxu1 %v9453_v27  ;;  %v9469_v26 = vunpack.c.h.s8.bf16 %v1370_v16  ;;  %v9533_v27 = vunpack.c.h.s8.bf16 %v1434_v61 }
 0x294   : > { %9392 = vmatpush2.bf16.msra.mxu0 %v9391_v21  ;;  %9456 = vmatpush2.bf16.msra.mxu1 %v9455_v32  ;;  %v9471_v21 = vunpack.c.h.s8.bf16 %v1369_v40  ;;  %v9535_v32 = vunpack.c.h.s8.bf16 %v1433_v37 }
 0x295   : > { %9394 = vmatprep.subr.bf16.mxu0 %v9393_v36  ;;  %9458 = vmatprep.subr.bf16.mxu1 %v9457_v31  ;;  %v9473_v36 = vunpack.c.l.s8.bf16 %v1370_v16  ;;  %v9537_v31 = vunpack.c.l.s8.bf16 %v1434_v61  ;;  %v1354_v16 = vld [vmem:[%s11291_s13 + $0x818] sm:$0xff] }
 0x296   : > { %v1418_v61 = vld [vmem:[%s11291_s13 + $0xa18] sm:$0xff] }
 0x298   : > { %9396 = vmatpush2.bf16.msra.mxu0 %v9395_v49  ;;  %9460 = vmatpush2.bf16.msra.mxu1 %v9459_v51  ;;  %v9475_v49 = vunpack.c.l.s8.bf16 %v1369_v40  ;;  %v9539_v51 = vunpack.c.l.s8.bf16 %v1433_v37  ;;  %v9485_v40 = vunpack.c.h.s8.bf16 %v1354_v16  ;;  %v9549_v37 = vunpack.c.h.s8.bf16 %v1418_v61 }
 0x299   : > { %9462 = vmatprep.subr.bf16.mxu0 %v9461_v52  ;;  %9526 = vmatprep.subr.bf16.mxu1 %v9525_v54  ;;  %v9477_v52 = vunpack.c.h.s8.bf16 %v1362_v47  ;;  %v1361_v54 = vld [vmem:[%s11291_s13 + $0x850] sm:$0xff] }
 0x29b   : > { %6554 = vmatmul.mubr.f32.vlgmr.msra.gmra.mxu0 %v11590_v60  ;;  %6631 = vmatmul.mubr.f32.vlgmr.msra.gmra.mxu1 %v11587_v57 }
 0x29c   : > { %6559 = vmatprep.mubr.f32.mxu0 %v11595_v2  ;;  %6636 = vmatprep.mubr.f32.mxu1 %v11592_v1 }
 0x29d   : > { %9464 = vmatpush1.bf16.msra.mxu0 %v9463_v15  ;;  %9528 = vmatpush1.bf16.msra.mxu1 %v9527_v58  ;;  %v9479_v15 = vunpack.c.h.s8.bf16 %v1361_v54  ;;  %v9543_v58 = vunpack.c.h.s8.bf16 %v1425_v3 }
 0x29e   : > { %9466 = vmatprep.subr.bf16.mxu0 %v9465_v7  ;;  %9530 = vmatprep.subr.bf16.mxu1 %v9529_v13  ;;  %v9481_v7 = vunpack.c.l.s8.bf16 %v1362_v47  ;;  %v9545_v13 = vunpack.c.l.s8.bf16 %v1426_v46  ;;  %v9489_v46 = vunpack.c.l.s8.bf16 %v1354_v16  ;;  %v1473_v16 = vld [vmem:[%s11291_s13 + $0xbd0] sm:$0xff] }
 0x29f   : > { %6560 = vmatmul.mubr.f32.gmra.mxu0 %v11604_v9  ;;  %6637 = vmatmul.mubr.f32.gmra.mxu1 %v11609_v24  ;;  %v1449_v9 = vld [vmem:[%s11291_s13 + $0xb10] sm:$0xff] }
 0x2a0   : > { %6707 = vmatprep.mubr.f32.mxu0 %v11602_v14  ;;  %6784 = vmatprep.mubr.f32.mxu1 %v11607_v20  ;;  %v1450_v20 = vld [vmem:[%s11291_s13 + $0xb18] sm:$0xff]  ;;  %v9515_v14 = vunpack.c.l.s8.bf16 %v1393_v44 }
 0x2a1   : > { %9468 = vmatpush1.bf16.msra.mxu0 %v9467_v6  ;;  %9532 = vmatpush1.bf16.msra.mxu1 %v9531_v25  ;;  %v9483_v6 = vunpack.c.l.s8.bf16 %v1361_v54  ;;  %v11841_v25 = vpop.f32.mrf.mxu0  ;;  %v1474_v54 = vld [vmem:[%s11291_s13 + $0xbd8] sm:$0xff] }
 0x2a2   : > { %9470 = vmatprep.subr.bf16.mxu0 %v9469_v26  ;;  %9534 = vmatprep.subr.bf16.mxu1 %v9533_v27  ;;  %v9547_v26 = vunpack.c.l.s8.bf16 %v1425_v3  ;;  %v1353_v27 = vld [vmem:[%s11291_s13 + $0x810] sm:$0xff] }
 0x2a5   : > { %9472 = vmatpush1.bf16.msra.mxu0 %v9471_v21  ;;  %9536 = vmatpush1.bf16.msra.mxu1 %v9535_v32  ;;  %v1417_v21 = vld [vmem:[%s11291_s13 + $0xa10] sm:$0xff]  ;;  %v11845_v32 = vpop.f32.mrf.mxu1 }
 0x2a6   : > { %9474 = vmatprep.subr.bf16.mxu0 %v9473_v36  ;;  %9538 = vmatprep.subr.bf16.mxu1 %v9537_v31  ;;  %v9487_v36 = vunpack.c.h.s8.bf16 %v1353_v27  ;;  %v11847_v31 = vpop.f32.mrf.mxu0  ;;  %v9551_v47 = vunpack.c.h.s8.bf16 %v1417_v21 }
 0x2a8   : > { %v11853_v3 = vpop.f32.mrf.mxu0 }
 0x2a9   : > { %9476 = vmatpush1.bf16.msra.mxu0 %v9475_v49  ;;  %9540 = vmatpush1.bf16.msra.mxu1 %v9539_v51  ;;  %v9553_v49 = vunpack.c.l.s8.bf16 %v1418_v61  ;;  %v1410_v51 = vld [vmem:[%s11291_s13 + $0x9d8] sm:$0xff] }
 0x2aa   : > { %9478 = vmatprep.subr.bf16.mxu0 %v9477_v52  ;;  %9542 = vmatprep.subr.bf16.mxu1 %v9541_v18  ;;  %v11850_v52 = vpop.f32.mrf.mxu1  ;;  %v9491_v18 = vunpack.c.l.s8.bf16 %v1353_v27  ;;  %v9497_v27 = vunpack.c.l.s8.bf16 %v1410_v51 }
 0x2ad   : > { %9480 = vmatpush1.bf16.msra.mxu0 %v9479_v15  ;;  %9544 = vmatpush1.bf16.msra.mxu1 %v9543_v58  ;;  %v9555_v15 = vunpack.c.l.s8.bf16 %v1417_v21  ;;  %v9493_v58 = vunpack.c.h.s8.bf16 %v1410_v51  ;;  %v1402_v21 = vld [vmem:[%s11291_s13 + $0x998] sm:$0xff] }
 0x2ae   : > { %9482 = vmatprep.subr.bf16.mxu0 %v9481_v7  ;;  %9546 = vmatprep.subr.bf16.mxu1 %v9545_v13  ;;  %v1409_v7 = vld [vmem:[%s11291_s13 + $0x9d0] sm:$0xff]  ;;  %v9557_v13 = vunpack.c.h.s8.bf16 %v1474_v54 }
 0x2af   : > { %v9495_v61 = vunpack.c.h.s8.bf16 %v1409_v7 }
 0x2b1   : > { %9484 = vmatpush1.bf16.msra.mxu0 %v9483_v6  ;;  %9548 = vmatpush1.bf16.msra.mxu1 %v9547_v26  ;;  %v11857_v6 = vpop.f32.mrf.mxu1  ;;  %v11859_v26 = vpop.f32.mrf.mxu0 }
 0x2b2   : > { %9486 = vmatprep.subr.bf16.mxu0 %v9485_v40  ;;  %9550 = vmatprep.subr.bf16.mxu1 %v9549_v37  ;;  %v9559_v40 = vunpack.c.h.s8.bf16 %v1473_v16  ;;  %v9561_v37 = vunpack.c.l.s8.bf16 %v1474_v54 }
 0x2b5   : > { %9488 = vmatpush1.bf16.msra.mxu0 %v9487_v36  ;;  %9552 = vmatpush1.bf16.msra.mxu1 %v9551_v47  ;;  %v11862_v36 = vpop.f32.mrf.mxu1  ;;  %v5939_v47 = vpop.f32.mrf.mxu0 }
 0x2b6   : > { %9490 = vmatprep.subr.bf16.mxu0 %v9489_v46  ;;  %9554 = vmatprep.subr.bf16.mxu1 %v9553_v49  ;;  %v1466_v46 = vld [vmem:[%s11291_s13 + $0xb98] sm:$0xff]  ;;  %v9499_v49 = vunpack.c.l.s8.bf16 %v1409_v7 }
 0x2b7   : > { %v11865_v62 = vpop.f32.mrf.mxu1  ;;  %v9565_v51 = vunpack.c.h.s8.bf16 %v1466_v46  ;;  %v5941_v54 = vpop.f32.mrf.mxu0 }
 0x2b9   : > { %9492 = vmatpush1.bf16.msra.mxu0 %v9491_v18  ;;  %9556 = vmatpush1.bf16.msra.mxu1 %v9555_v15  ;;  %v9563_v18 = vunpack.c.l.s8.bf16 %v1473_v16  ;;  %v9501_v15 = vunpack.c.h.s8.bf16 %v1402_v21  ;;  %v11869_v59 = vpop.f32.mrf.mxu1  ;;  %v9569_v16 = vunpack.c.l.s8.bf16 %v1466_v46 }
 0x2ba   : > { %9494 = vmatprep.subr.bf16.mxu0 %v9493_v58  ;;  %9558 = vmatprep.subr.bf16.mxu1 %v9557_v13  ;;  %v1401_v58 = vld [vmem:[%s11291_s13 + $0x990] sm:$0xff] }
 0x2bb   : > { %v1465_v13 = vld [vmem:[%s11291_s13 + $0xb90] sm:$0xff]  ;;  %v9503_v8 = vunpack.c.h.s8.bf16 %v1401_v58  ;;  %v6022_v45 = vpop.f32.mrf.mxu1 }
 0x2bc   : > { %v9567_v7 = vunpack.c.h.s8.bf16 %v1465_v13 }
 0x2bd   : > { %9496 = vmatpush2.bf16.msra.mxu0 %v9495_v61  ;;  %9560 = vmatpush2.bf16.msra.mxu1 %v9559_v40  ;;  %v9505_v61 = vunpack.c.l.s8.bf16 %v1402_v21  ;;  %v1394_v40 = vld [vmem:[%s11291_s13 + $0x958] sm:$0xff]  ;;  %v6024_v46 = vpop.f32.mrf.mxu1 }
 0x2be   : > { %9498 = vmatprep.subr.bf16.mxu0 %v9497_v27  ;;  %9562 = vmatprep.subr.bf16.mxu1 %v9561_v37  ;;  %v5945_v27 = vpop.f32.mrf.mxu0  ;;  %v9507_v37 = vunpack.c.l.s8.bf16 %v1401_v58  ;;  %v9509_v42 = vunpack.c.h.s8.bf16 %v1394_v40  ;;  %v9513_v58 = vunpack.c.l.s8.bf16 %v1394_v40 }
 0x2c0   : > { %v5947_v21 = vpop.f32.mrf.mxu0 }
 0x2c1   : > { %9500 = vmatpush2.bf16.msra.mxu0 %v9499_v49  ;;  %9564 = vmatpush2.bf16.msra.mxu1 %v9563_v18  ;;  %v9571_v49 = vunpack.c.l.s8.bf16 %v1465_v13  ;;  %v9573_v18 = vunpack.c.h.s8.bf16 %v1458_v11  ;;  %v1386_v13 = vld [vmem:[%s11291_s13 + $0x918] sm:$0xff] }
 0x2c2   : > { %9502 = vmatprep.subr.bf16.mxu0 %v9501_v15  ;;  %9566 = vmatprep.subr.bf16.mxu1 %v9565_v51  ;;  %v1457_v15 = vld [vmem:[%s11291_s13 + $0xb50] sm:$0xff]  ;;  %v9511_v51 = vunpack.c.h.s8.bf16 %v1393_v44  ;;  %v6093_v41 = vpop.f32.mrf.mxu0  ;;  %v9517_v40 = vunpack.c.h.s8.bf16 %v1386_v13  ;;  %v5871_v44 = vadd.f32 %v11862_v36, %v11859_v26 }
 0x2c5   : > { %9504 = vmatpush2.bf16.msra.mxu0 %v9503_v8  ;;  %9568 = vmatpush2.bf16.msra.mxu1 %v9567_v7  ;;  %v9575_v8 = vunpack.c.h.s8.bf16 %v1457_v15  ;;  %v9577_v7 = vunpack.c.l.s8.bf16 %v1458_v11  ;;  %v9581_v11 = vunpack.c.h.s8.bf16 %v1450_v20 }
 0x2c6   : > { %9506 = vmatprep.subr.bf16.mxu0 %v9505_v61  ;;  %9570 = vmatprep.subr.bf16.mxu1 %v9569_v16  ;;  %v5863_v61 = vadd.f32 %v11845_v32, %v11841_v25  ;;  %v6170_v16 = vpop.f32.mrf.mxu1  ;;  %v5869_v25 = vadd.f32 %v11857_v6, %v11853_v3  ;;  %v9585_v3 = vunpack.c.l.s8.bf16 %v1450_v20  ;;  %v1506_v6 = vld [vmem:[%s11291_s13 + $0xcd8] sm:$0xff] }
 0x2c8   : > { %v5940_v24 = vadd.f32 %v5939_v47, %v5863_v61  ;;  %v5946_v47 = vadd.f32 %v5945_v27, %v5869_v25 }
 0x2c9   : > { %9508 = vmatpush2.bf16.msra.mxu0 %v9507_v37  ;;  %9572 = vmatpush2.bf16.msra.mxu1 %v9571_v49  ;;  %v5865_v37 = vadd.f32 %v11850_v52, %v11847_v31  ;;  %v6095_v49 = vpop.f32.mrf.mxu0 }
 0x2ca   : > { %9510 = vmatprep.subr.bf16.mxu0 %v9509_v42  ;;  %9574 = vmatprep.subr.bf16.mxu1 %v9573_v18  ;;  %v9579_v42 = vunpack.c.l.s8.bf16 %v1457_v15  ;;  %v1385_v18 = vld [vmem:[%s11291_s13 + $0x910] sm:$0xff]  ;;  %v6017_v52 = vadd.f32 %v11865_v62, %v5940_v24  ;;  %v6023_v24 = vadd.f32 %v6022_v45, %v5946_v47 }
 0x2cb   : > { %v5942_v32 = vadd.f32 %v5941_v54, %v5865_v37  ;;  %v9519_v31 = vunpack.c.h.s8.bf16 %v1385_v18  ;;  %v6099_v15 = vpop.f32.mrf.mxu0  ;;  %v9523_v62 = vunpack.c.l.s8.bf16 %v1385_v18 }
 0x2cc   : > { %v6094_v61 = vadd.f32 %v6093_v41, %v6017_v52  ;;  %v6100_v41 = vadd.f32 %v6099_v15, %v6023_v24 }
 0x2cd   : > { %9512 = vmatpush2.bf16.msra.mxu0 %v9511_v51  ;;  %9576 = vmatpush2.bf16.msra.mxu1 %v9575_v8  ;;  %v6172_v51 = vpop.f32.mrf.mxu1  ;;  %v9583_v8 = vunpack.c.h.s8.bf16 %v1449_v9  ;;  %v6019_v54 = vadd.f32 %v11869_v59, %v5942_v32  ;;  %v6101_v27 = vpop.f32.mrf.mxu0  ;;  %v1505_v59 = vld [vmem:[%s11291_s13 + $0xcd0] sm:$0xff] }
 0x2ce   : > { %9514 = vmatprep.subr.bf16.mxu0 %v9513_v58  ;;  %9578 = vmatprep.subr.bf16.mxu1 %v9577_v7  ;;  %v9521_v58 = vunpack.c.l.s8.bf16 %v1386_v13  ;;  %v5948_v7 = vadd.f32 %v5947_v21, %v5871_v44  ;;  %v9587_v13 = vunpack.c.l.s8.bf16 %v1449_v9  ;;  %v9589_v21 = vunpack.c.h.s8.bf16 %v1506_v6 }
 0x2cf   : > { %v6176_v26 = vpop.f32.mrf.mxu1  ;;  %v6096_v36 = vadd.f32 %v6095_v49, %v6019_v54  ;;  %v9591_v9 = vunpack.c.h.s8.bf16 %v1505_v59  ;;  %v1562_v54 = vld [vmem:[%s11291_s13 + $0xe98] sm:$0xff]  ;;  %v9595_v24 = vunpack.c.l.s8.bf16 %v1505_v59 }
 0x2d0   : > { %v6025_v37 = vadd.f32 %v6024_v46, %v5948_v7  ;;  %v5703_v46 = vld [vmem:[%s12564_s6] sm:$0xff]  ;;  %v6177_v52 = vadd.f32 %v6176_v26, %v6100_v41  ;;  %v9661_v41 = vunpack.c.h.s8.bf16 %v1562_v54 }
 0x2d1   : > { %9516 = vmatpush2.bf16.msra.mxu0 %v9515_v14  ;;  %9580 = vmatpush2.bf16.msra.mxu1 %v9579_v42  ;;  %v11891_v14 = vld [vmem:[%s11291_s13 + $0xed8] sm:$0xff]  ;;  %v6171_v42 = vadd.f32 %v6170_v16, %v6094_v61  ;;  %v6173_v18 = vadd.f32 %v6172_v51, %v6096_v36  ;;  %v5711_v36 = vld [vmem:[%s12564_s6 + $0x40] sm:$0xff] }
 0x2d2   : > { %9518 = vmatprep.subr.bf16.mxu0 %v9517_v40  ;;  %9582 = vmatprep.subr.bf16.mxu1 %v9581_v11  ;;  %v9653_v20 = vunpack.c.h.s8.bf16 %v11891_v14  ;;  %v6178_v40 = vpop.f32.mrf.mxu1  ;;  %v1569_v11 = vld [vmem:[%s11291_s13 + $0xed0] sm:$0xff]  ;;  %v6102_v25 = vadd.f32 %v6101_v27, %v6025_v37 }
 0x2d3   : > { %v9655_v16 = vunpack.c.h.s8.bf16 %v1569_v11  ;;  %v9659_v27 = vunpack.c.l.s8.bf16 %v1569_v11  ;;  %v1497_v37 = vld [vmem:[%s11291_s13 + $0xc90] sm:$0xff]  ;;  %v5712_v11 = vld [vmem:[%s12564_s6 + $0x48] sm:$0xff] }
 0x2d4   : > { %v6179_v7 = vadd.f32 %v6178_v40, %v6102_v25  ;;  %v1561_v40 = vld [vmem:[%s11291_s13 + $0xe90] sm:$0xff] }
 0x2d5   : > { %9520 = vmatpush2.bf16.msra.mxu0 %v9519_v31  ;;  %9584 = vmatpush2.bf16.msra.mxu1 %v9583_v8  ;;  %v9593_v31 = vunpack.c.l.s8.bf16 %v1506_v6  ;;  %v9657_v8 = vunpack.c.l.s8.bf16 %v11891_v14 }
 0x2d6   : > { %9522 = vmatprep.subr.bf16.mxu0 %v9521_v58  ;;  %9586 = vmatprep.subr.bf16.mxu1 %v9585_v3  ;;  %v1498_v58 = vld [vmem:[%s11291_s13 + $0xc98] sm:$0xff]  ;;  %v5704_v3 = vld [vmem:[%s12564_s6 + $0x8] sm:$0xff] }
 0x2d9   : > { %9524 = vmatpush2.bf16.msra.mxu0 %v9523_v62  ;;  %v6247_v32 = vpop.f32.mrf.mxu0  ;;  %9588 = vmatpush2.bf16.msra.mxu1 %v9587_v13  ;;  %v6324_v49 = vpop.f32.mrf.mxu1 }
 0x2da   : > { %v6248_v45 = vadd.f32 %v6247_v32, %v6171_v42  ;;  %9590 = vmatprep.subr.bf16.mxu0 %v9589_v21  ;;  %9654 = vmatprep.subr.bf16.mxu1 %v9653_v20  ;;  %v9597_v21 = vunpack.c.h.s8.bf16 %v1498_v58 }
 0x2db   : > { %v6249_v44 = vpop.f32.mrf.mxu0  ;;  %v6326_v15 = vpop.f32.mrf.mxu1 }
 0x2dc   : > { %v6325_v47 = vadd.f32 %v6324_v49, %v6248_v45  ;;  %6708 = vmatmul.mubr.f32.vlgmr.msra.gmra.mxu0 %v11668_v34  ;;  %v6250_v51 = vadd.f32 %v6249_v44, %v6173_v18  ;;  %6785 = vmatmul.mubr.f32.vlgmr.msra.gmra.mxu1 %v11665_v30  ;;  %v9599_v45 = vunpack.c.h.s8.bf16 %v1497_v37  ;;  %v9663_v49 = vunpack.c.h.s8.bf16 %v1561_v40  ;;  %v1490_v44 = vld [vmem:[%s11291_s13 + $0xc58] sm:$0xff] }
 0x2dd   : > { %6713 = vmatprep.mubr.f32.mxu0 %v11673_v43  ;;  %v6253_v6 = vpop.f32.mrf.mxu0  ;;  %6790 = vmatprep.mubr.f32.mxu1 %v11670_v39  ;;  %v6330_v14 = vpop.f32.mrf.mxu1 }
 0x2de   : > { %v8183_v61 = vadd.f32 %v6325_v47, %v5703_v46  ;;  %9592 = vmatpush1.bf16.msra.mxu0 %v9591_v9  ;;  %v6327_v26 = vadd.f32 %v6326_v15, %v6250_v51  ;;  %v6254_v62 = vadd.f32 %v6253_v6, %v6177_v52  ;;  %9656 = vmatpush1.bf16.msra.mxu1 %v9655_v16  ;;  %v9601_v9 = vunpack.c.l.s8.bf16 %v1498_v58  ;;  %v1489_v15 = vld [vmem:[%s11291_s13 + $0xc50] sm:$0xff] }
 0x2df   : > { %9594 = vmatprep.subr.bf16.mxu0 %v9593_v31  ;;  %v6255_v13 = vpop.f32.mrf.mxu0  ;;  %9658 = vmatprep.subr.bf16.mxu1 %v9657_v8  ;;  %v6332_v25 = vpop.f32.mrf.mxu1  ;;  %v9665_v16 = vunpack.c.l.s8.bf16 %v1562_v54  ;;  %v1554_v31 = vld [vmem:[%s11291_s13 + $0xe58] sm:$0xff]  ;;  %v9603_v52 = vunpack.c.l.s8.bf16 %v1497_v37  ;;  %v9667_v47 = vunpack.c.l.s8.bf16 %v1561_v40  ;;  %v9605_v51 = vunpack.c.h.s8.bf16 %v1490_v44  ;;  %v1553_v58 = vld [vmem:[%s11291_s13 + $0xe50] sm:$0xff] }
 0x2e0   : > { %8199 = vst [vmem:[%s12564_s6] sm:$0xff] %v8183_v61  ;;  %v8184_v20 = vadd.f32 %v6327_v26, %v5704_v3  ;;  %v6331_v42 = vadd.f32 %v6330_v14, %v6254_v62  ;;  %6714 = vmatmul.mubr.f32.gmra.mxu0 %v11682_v53  ;;  %v6256_v59 = vadd.f32 %v6255_v13, %v6179_v7  ;;  %v9669_v8 = vunpack.c.h.s8.bf16 %v1554_v31  ;;  %v1482_v61 = vld [vmem:[%s11291_s13 + $0xc18] sm:$0xff]  ;;  %v1545_v13 = vld [vmem:[%s11291_s13 + $0xe10] sm:$0xff] }
 0x2e1   : > { %6791 = vmatmul.mubr.f32.gmra.mxu1 %v11687_v50  ;;  %6861 = vmatprep.mubr.f32.mxu0 %v11677_v55  ;;  %v9607_v7 = vunpack.c.h.s8.bf16 %v1489_v15  ;;  %v9671_v3 = vunpack.c.h.s8.bf16 %v1553_v58  ;;  %v9609_v6 = vunpack.c.l.s8.bf16 %v1490_v44  ;;  %v9673_v54 = vunpack.c.l.s8.bf16 %v1554_v31  ;;  %v1546_v26 = vld [vmem:[%s11291_s13 + $0xe18] sm:$0xff] }
 0x2e2   : > { %8200 = vst [vmem:[%s12564_s6 + $0x8] sm:$0xff] %v8184_v20  ;;  %v8191_v32 = vadd.f32 %v6331_v42, %v5711_v36  ;;  %9596 = vmatpush1.bf16.msra.mxu0 %v9595_v24  ;;  %6938 = vmatprep.mubr.f32.mxu1 %v11684_v56  ;;  %v6333_v18 = vadd.f32 %v6332_v25, %v6256_v59  ;;  %v9611_v62 = vunpack.c.l.s8.bf16 %v1489_v15  ;;  %v9675_v14 = vunpack.c.l.s8.bf16 %v1553_v58  ;;  %v1481_v36 = vld [vmem:[%s11291_s13 + $0xc10] sm:$0xff]  ;;  %v1538_v59 = vld [vmem:[%s11291_s13 + $0xdd8] sm:$0xff] }
 0x2e3   : > { %9660 = vmatpush1.bf16.msra.mxu1 %v9659_v27  ;;  %9598 = vmatprep.subr.bf16.mxu0 %v9597_v21  ;;  %v9613_v24 = vunpack.c.h.s8.bf16 %v1482_v61  ;;  %v9677_v27 = vunpack.c.h.s8.bf16 %v1546_v26  ;;  %v9615_v21 = vunpack.c.h.s8.bf16 %v1481_v36  ;;  %v9679_v37 = vunpack.c.h.s8.bf16 %v1545_v13  ;;  %v1530_v44 = vld [vmem:[%s11291_s13 + $0xd98] sm:$0xff]  ;;  %v1529_v15 = vld [vmem:[%s11291_s13 + $0xd90] sm:$0xff] }
 0x2e4   : > { %8207 = vst [vmem:[%s12564_s6 + $0x40] sm:$0xff] %v8191_v32  ;;  %v8192_v46 = vadd.f32 %v6333_v18, %v5712_v11  ;;  %9662 = vmatprep.subr.bf16.mxu1 %v9661_v41  ;;  %v9617_v20 = vunpack.c.l.s8.bf16 %v1482_v61  ;;  %v9681_v42 = vunpack.c.l.s8.bf16 %v1546_v26  ;;  %v1602_v41 = vld [vmem:[%s11291_s13 + $0xfd8] sm:$0xff]  ;;  %v9619_v40 = vunpack.c.l.s8.bf16 %v1481_v36  ;;  %v1537_v32 = vld [vmem:[%s11291_s13 + $0xdd0] sm:$0xff] }
 0x2e5   : > { %v9683_v11 = vunpack.c.l.s8.bf16 %v1545_v13  ;;  %v9621_v25 = vunpack.c.h.s8.bf16 %v1538_v59  ;;  %v9685_v18 = vunpack.c.h.s8.bf16 %v1602_v41  ;;  %v1594_v31 = vld [vmem:[%s11291_s13 + $0xf98] sm:$0xff]  ;;  %v1593_v58 = vld [vmem:[%s11291_s13 + $0xf90] sm:$0xff] }
 0x2e6   : > { %8208 = vst [vmem:[%s12564_s6 + $0x48] sm:$0xff] %v8192_v46  ;;  %9600 = vmatpush1.bf16.msra.mxu0 %v9599_v45  ;;  %v1601_v45 = vld [vmem:[%s11291_s13 + $0xfd0] sm:$0xff]  ;;  %v9625_v46 = vunpack.c.l.s8.bf16 %v1538_v59  ;;  %v1522_v61 = vld [vmem:[%s11291_s13 + $0xd58] sm:$0xff] }
 0x2e7   : > { %9664 = vmatpush1.bf16.msra.mxu1 %v9663_v49  ;;  %9602 = vmatprep.subr.bf16.mxu0 %v9601_v9  ;;  %v9623_v49 = vunpack.c.h.s8.bf16 %v1537_v32  ;;  %v9687_v9 = vunpack.c.h.s8.bf16 %v1601_v45  ;;  %v1586_v26 = vld [vmem:[%s11291_s13 + $0xf58] sm:$0xff]  ;;  %v1521_v36 = vld [vmem:[%s11291_s13 + $0xd50] sm:$0xff] }
 0x2e8   : > { %9666 = vmatprep.subr.bf16.mxu1 %v9665_v16  ;;  %v9689_v16 = vunpack.c.l.s8.bf16 %v1602_v41  ;;  %v1585_v13 = vld [vmem:[%s11291_s13 + $0xf50] sm:$0xff]  ;;  %v1514_v59 = vld [vmem:[%s11291_s13 + $0xd18] sm:$0xff] }
 0x2e9   : > { %v1578_v41 = vld [vmem:[%s11291_s13 + $0xf18] sm:$0xff] }
 0x2ea   : > { %9604 = vmatpush1.bf16.msra.mxu0 %v9603_v52  ;;  %v9627_v52 = vunpack.c.l.s8.bf16 %v1537_v32  ;;  %v1513_v32 = vld [vmem:[%s11291_s13 + $0xd10] sm:$0xff] }
 0x2eb   : > { %9668 = vmatpush1.bf16.msra.mxu1 %v9667_v47  ;;  %9606 = vmatprep.subr.bf16.mxu0 %v9605_v51  ;;  %v9691_v47 = vunpack.c.l.s8.bf16 %v1601_v45  ;;  %v9629_v51 = vunpack.c.h.s8.bf16 %v1530_v44  ;;  %v1577_v45 = vld [vmem:[%s11291_s13 + $0xf10] sm:$0xff] }
 0x2ec   : > { %9670 = vmatprep.subr.bf16.mxu1 %v9669_v8  ;;  %v9693_v8 = vunpack.c.h.s8.bf16 %v1594_v31 }
 0x2ee   : > { %9608 = vmatpush1.bf16.msra.mxu0 %v9607_v7  ;;  %v9631_v7 = vunpack.c.h.s8.bf16 %v1529_v15 }
 0x2ef   : > { %9672 = vmatpush1.bf16.msra.mxu1 %v9671_v3  ;;  %9610 = vmatprep.subr.bf16.mxu0 %v9609_v6  ;;  %v9695_v3 = vunpack.c.h.s8.bf16 %v1593_v58  ;;  %v9633_v6 = vunpack.c.l.s8.bf16 %v1530_v44  ;;  %v1124_v44 = vld [vmem:[%s11291_s13 + $0xe8] sm:$0xff] }
 0x2f0   : > { %9674 = vmatprep.subr.bf16.mxu1 %v9673_v54  ;;  %v9697_v54 = vunpack.c.l.s8.bf16 %v1594_v31  ;;  %v1188_v31 = vld [vmem:[%s11291_s13 + $0x2e8] sm:$0xff] }
 0x2f2   : > { %9612 = vmatpush1.bf16.msra.mxu0 %v9611_v62  ;;  %v9635_v62 = vunpack.c.l.s8.bf16 %v1529_v15  ;;  %v9781_v15 = vunpack.c.h.s8.bf16 %v1188_v31 }
 0x2f3   : > { %9676 = vmatpush1.bf16.msra.mxu1 %v9675_v14  ;;  %9614 = vmatprep.subr.bf16.mxu0 %v9613_v24  ;;  %v9699_v14 = vunpack.c.l.s8.bf16 %v1593_v58  ;;  %v9637_v24 = vunpack.c.h.s8.bf16 %v1522_v61  ;;  %v1187_v58 = vld [vmem:[%s11291_s13 + $0x2e0] sm:$0xff] }
 0x2f4   : > { %9678 = vmatprep.subr.bf16.mxu1 %v9677_v27  ;;  %v9701_v27 = vunpack.c.h.s8.bf16 %v1586_v26 }
 0x2f6   : > { %9616 = vmatpush1.bf16.msra.mxu0 %v9615_v21  ;;  %v9639_v21 = vunpack.c.h.s8.bf16 %v1521_v36 }
 0x2f7   : > { %9680 = vmatpush1.bf16.msra.mxu1 %v9679_v37  ;;  %9618 = vmatprep.subr.bf16.mxu0 %v9617_v20  ;;  %v9703_v37 = vunpack.c.h.s8.bf16 %v1585_v13  ;;  %v9641_v20 = vunpack.c.l.s8.bf16 %v1522_v61  ;;  %v1116_v61 = vld [vmem:[%s11291_s13 + $0xa8] sm:$0xff] }
 0x2f8   : > { %9682 = vmatprep.subr.bf16.mxu1 %v9681_v42  ;;  %v9705_v42 = vunpack.c.l.s8.bf16 %v1586_v26  ;;  %v1180_v26 = vld [vmem:[%s11291_s13 + $0x2a8] sm:$0xff] }
 0x2fa   : > { %9620 = vmatpush1.bf16.msra.mxu0 %v9619_v40  ;;  %v9643_v40 = vunpack.c.l.s8.bf16 %v1521_v36  ;;  %v1115_v36 = vld [vmem:[%s11291_s13 + $0xa0] sm:$0xff] }
 0x2fb   : > { %9684 = vmatpush1.bf16.msra.mxu1 %v9683_v11  ;;  %9622 = vmatprep.subr.bf16.mxu0 %v9621_v25  ;;  %v9707_v11 = vunpack.c.l.s8.bf16 %v1585_v13  ;;  %v9645_v25 = vunpack.c.h.s8.bf16 %v1514_v59  ;;  %v1179_v13 = vld [vmem:[%s11291_s13 + $0x2a0] sm:$0xff] }
 0x2fc   : > { %9686 = vmatprep.subr.bf16.mxu1 %v9685_v18  ;;  %v9709_v18 = vunpack.c.h.s8.bf16 %v1578_v41 }
 0x2fe   : > { %9624 = vmatpush2.bf16.msra.mxu0 %v9623_v49  ;;  %v9647_v49 = vunpack.c.h.s8.bf16 %v1513_v32 }
 0x2ff   : > { %9688 = vmatpush2.bf16.msra.mxu1 %v9687_v9  ;;  %9626 = vmatprep.subr.bf16.mxu0 %v9625_v46  ;;  %v9711_v9 = vunpack.c.h.s8.bf16 %v1577_v45  ;;  %v9649_v46 = vunpack.c.l.s8.bf16 %v1514_v59  ;;  %v1108_v59 = vld [vmem:[%s11291_s13 + $0x68] sm:$0xff] }
 0x300   : > { %9690 = vmatprep.subr.bf16.mxu1 %v9689_v16  ;;  %v9713_v16 = vunpack.c.l.s8.bf16 %v1578_v41  ;;  %v1172_v41 = vld [vmem:[%s11291_s13 + $0x268] sm:$0xff] }
 0x302   : > { %9628 = vmatpush2.bf16.msra.mxu0 %v9627_v52  ;;  %v9651_v52 = vunpack.c.l.s8.bf16 %v1513_v32  ;;  %v1107_v32 = vld [vmem:[%s11291_s13 + $0x60] sm:$0xff] }
 0x303   : > { %9692 = vmatpush2.bf16.msra.mxu1 %v9691_v47  ;;  %9630 = vmatprep.subr.bf16.mxu0 %v9629_v51  ;;  %v9715_v47 = vunpack.c.l.s8.bf16 %v1577_v45  ;;  %v9717_v51 = vunpack.c.h.s8.bf16 %v1124_v44  ;;  %v1171_v45 = vld [vmem:[%s11291_s13 + $0x260] sm:$0xff] }
 0x304   : > { %9694 = vmatprep.subr.bf16.mxu1 %v9693_v8  ;;  %v1123_v8 = vld [vmem:[%s11291_s13 + $0xe0] sm:$0xff] }
 0x306   : > { %9632 = vmatpush2.bf16.msra.mxu0 %v9631_v7  ;;  %v9719_v7 = vunpack.c.h.s8.bf16 %v1123_v8 }
 0x307   : > { %9696 = vmatpush2.bf16.msra.mxu1 %v9695_v3  ;;  %9634 = vmatprep.subr.bf16.mxu0 %v9633_v6  ;;  %v9783_v3 = vunpack.c.h.s8.bf16 %v1187_v58  ;;  %v9721_v6 = vunpack.c.l.s8.bf16 %v1124_v44  ;;  %v1100_v44 = vld [vmem:[%s11291_s13 + $0x28] sm:$0xff] }
 0x308   : > { %9698 = vmatprep.subr.bf16.mxu1 %v9697_v54  ;;  %v9785_v54 = vunpack.c.l.s8.bf16 %v1188_v31  ;;  %v1164_v31 = vld [vmem:[%s11291_s13 + $0x228] sm:$0xff] }
 0x30a   : > { %9636 = vmatpush2.bf16.msra.mxu0 %v9635_v62  ;;  %v9723_v62 = vunpack.c.l.s8.bf16 %v1123_v8  ;;  %v9805_v8 = vunpack.c.h.s8.bf16 %v1164_v31 }
 0x30b   : > { %9700 = vmatpush2.bf16.msra.mxu1 %v9699_v14  ;;  %9638 = vmatprep.subr.bf16.mxu0 %v9637_v24  ;;  %v9787_v14 = vunpack.c.l.s8.bf16 %v1187_v58  ;;  %v9725_v24 = vunpack.c.h.s8.bf16 %v1116_v61  ;;  %v1163_v58 = vld [vmem:[%s11291_s13 + $0x220] sm:$0xff] }
 0x30c   : > { %9702 = vmatprep.subr.bf16.mxu1 %v9701_v27  ;;  %v9789_v27 = vunpack.c.h.s8.bf16 %v1180_v26 }
 0x30e   : > { %9640 = vmatpush2.bf16.msra.mxu0 %v9639_v21  ;;  %v9727_v21 = vunpack.c.h.s8.bf16 %v1115_v36 }
 0x30f   : > { %9704 = vmatpush2.bf16.msra.mxu1 %v9703_v37  ;;  %9642 = vmatprep.subr.bf16.mxu0 %v9641_v20  ;;  %v9791_v37 = vunpack.c.h.s8.bf16 %v1179_v13  ;;  %v9729_v20 = vunpack.c.l.s8.bf16 %v1116_v61  ;;  %v1156_v61 = vld [vmem:[%s11291_s13 + $0x1e8] sm:$0xff] }
 0x310   : > { %9706 = vmatprep.subr.bf16.mxu1 %v9705_v42  ;;  %v9793_v42 = vunpack.c.l.s8.bf16 %v1180_v26  ;;  %v1220_v26 = vld [vmem:[%s11291_s13 + $0x3e8] sm:$0xff] }
 0x312   : > { %9644 = vmatpush2.bf16.msra.mxu0 %v9643_v40  ;;  %v9731_v40 = vunpack.c.l.s8.bf16 %v1115_v36  ;;  %v1155_v36 = vld [vmem:[%s11291_s13 + $0x1e0] sm:$0xff] }
 0x313   : > { %9708 = vmatpush2.bf16.msra.mxu1 %v9707_v11  ;;  %9646 = vmatprep.subr.bf16.mxu0 %v9645_v25  ;;  %v9795_v11 = vunpack.c.l.s8.bf16 %v1179_v13  ;;  %v9733_v25 = vunpack.c.h.s8.bf16 %v1108_v59  ;;  %v1219_v13 = vld [vmem:[%s11291_s13 + $0x3e0] sm:$0xff] }
 0x314   : > { %9710 = vmatprep.subr.bf16.mxu1 %v9709_v18  ;;  %v9797_v18 = vunpack.c.h.s8.bf16 %v1172_v41 }
 0x316   : > { %9648 = vmatpush2.bf16.msra.mxu0 %v9647_v49  ;;  %v9735_v49 = vunpack.c.h.s8.bf16 %v1107_v32 }
 0x317   : > { %9712 = vmatpush2.bf16.msra.mxu1 %v9711_v9  ;;  %9650 = vmatprep.subr.bf16.mxu0 %v9649_v46  ;;  %v9799_v9 = vunpack.c.h.s8.bf16 %v1171_v45  ;;  %v9737_v46 = vunpack.c.l.s8.bf16 %v1108_v59  ;;  %v1148_v59 = vld [vmem:[%s11291_s13 + $0x1a8] sm:$0xff] }
 0x318   : > { %9714 = vmatprep.subr.bf16.mxu1 %v9713_v16  ;;  %v9801_v16 = vunpack.c.l.s8.bf16 %v1172_v41  ;;  %v1212_v41 = vld [vmem:[%s11291_s13 + $0x3a8] sm:$0xff] }
 0x31a   : > { %9652 = vmatpush2.bf16.msra.mxu0 %v9651_v52  ;;  %v9739_v52 = vunpack.c.l.s8.bf16 %v1107_v32  ;;  %v1147_v32 = vld [vmem:[%s11291_s13 + $0x1a0] sm:$0xff] }
 0x31b   : > { %9716 = vmatpush2.bf16.msra.mxu1 %v9715_v47  ;;  %9718 = vmatprep.subr.bf16.mxu0 %v9717_v51  ;;  %v9803_v47 = vunpack.c.l.s8.bf16 %v1171_v45  ;;  %v9741_v51 = vunpack.c.h.s8.bf16 %v1100_v44  ;;  %v1211_v45 = vld [vmem:[%s11291_s13 + $0x3a0] sm:$0xff] }
 0x31c   : > { %9782 = vmatprep.subr.bf16.mxu1 %v9781_v15  ;;  %v1099_v15 = vld [vmem:[%s11291_s13 + $0x20] sm:$0xff] }
 0x31d   : > { %6862 = vmatmul.mubr.f32.vlgmr.msra.gmra.mxu0 %v11731_v29 }
 0x31e   : > { %6939 = vmatmul.mubr.f32.vlgmr.msra.gmra.mxu1 %v11733_v33  ;;  %6867 = vmatprep.mubr.f32.mxu0 %v11735_v17 }
 0x31f   : > { %6944 = vmatprep.mubr.f32.mxu1 %v11737_v48  ;;  %9720 = vmatpush1.bf16.msra.mxu0 %v9719_v7  ;;  %v9743_v7 = vunpack.c.h.s8.bf16 %v1099_v15 }
 0x320   : > { %9784 = vmatpush1.bf16.msra.mxu1 %v9783_v3  ;;  %9722 = vmatprep.subr.bf16.mxu0 %v9721_v6  ;;  %v9807_v3 = vunpack.c.h.s8.bf16 %v1163_v58  ;;  %v9745_v6 = vunpack.c.l.s8.bf16 %v1100_v44  ;;  %v1140_v44 = vld [vmem:[%s11291_s13 + $0x168] sm:$0xff] }
 0x321   : > { %6868 = vmatmul.mubr.f32.gmra.mxu0 %v11744_v10  ;;  %9786 = vmatprep.subr.bf16.mxu1 %v9785_v54  ;;  %v9809_v54 = vunpack.c.l.s8.bf16 %v1164_v31  ;;  %v1204_v31 = vld [vmem:[%s11291_s13 + $0x368] sm:$0xff] }
 0x322   : > { %6945 = vmatmul.mubr.f32.gmra.mxu1 %v11747_v12  ;;  %7015 = vmatprep.mubr.f32.mxu0 %v11482_v0 }
 0x323   : > { %9724 = vmatpush1.bf16.msra.mxu0 %v9723_v62  ;;  %7092 = vmatprep.mubr.f32.mxu1 %v11486_v5  ;;  %v9747_v62 = vunpack.c.l.s8.bf16 %v1099_v15  ;;  %v1139_v15 = vld [vmem:[%s11291_s13 + $0x160] sm:$0xff] }
 0x324   : > { %9788 = vmatpush1.bf16.msra.mxu1 %v9787_v14  ;;  %9726 = vmatprep.subr.bf16.mxu0 %v9725_v24  ;;  %v9811_v14 = vunpack.c.l.s8.bf16 %v1163_v58  ;;  %v9749_v24 = vunpack.c.h.s8.bf16 %v1156_v61  ;;  %v1203_v58 = vld [vmem:[%s11291_s13 + $0x360] sm:$0xff] }
 0x325   : > { %9790 = vmatprep.subr.bf16.mxu1 %v9789_v27  ;;  %v9813_v27 = vunpack.c.h.s8.bf16 %v1220_v26 }
 0x327   : > { %9728 = vmatpush1.bf16.msra.mxu0 %v9727_v21  ;;  %v9751_v21 = vunpack.c.h.s8.bf16 %v1155_v36 }
 0x328   : > { %9792 = vmatpush1.bf16.msra.mxu1 %v9791_v37  ;;  %9730 = vmatprep.subr.bf16.mxu0 %v9729_v20  ;;  %v9815_v37 = vunpack.c.h.s8.bf16 %v1219_v13  ;;  %v9753_v20 = vunpack.c.l.s8.bf16 %v1156_v61  ;;  %v1132_v61 = vld [vmem:[%s11291_s13 + $0x128] sm:$0xff] }
 0x329   : > { %9794 = vmatprep.subr.bf16.mxu1 %v9793_v42  ;;  %v9817_v42 = vunpack.c.l.s8.bf16 %v1220_v26  ;;  %v1196_v26 = vld [vmem:[%s11291_s13 + $0x328] sm:$0xff] }
 0x32b   : > { %9732 = vmatpush1.bf16.msra.mxu0 %v9731_v40  ;;  %v9755_v40 = vunpack.c.l.s8.bf16 %v1155_v36  ;;  %v1131_v36 = vld [vmem:[%s11291_s13 + $0x120] sm:$0xff] }
 0x32c   : > { %9796 = vmatpush1.bf16.msra.mxu1 %v9795_v11  ;;  %9734 = vmatprep.subr.bf16.mxu0 %v9733_v25  ;;  %v9819_v11 = vunpack.c.l.s8.bf16 %v1219_v13  ;;  %v9757_v25 = vunpack.c.h.s8.bf16 %v1148_v59  ;;  %v1195_v13 = vld [vmem:[%s11291_s13 + $0x320] sm:$0xff] }
 0x32d   : > { %9798 = vmatprep.subr.bf16.mxu1 %v9797_v18  ;;  %v9821_v18 = vunpack.c.h.s8.bf16 %v1212_v41 }
 0x32f   : > { %9736 = vmatpush1.bf16.msra.mxu0 %v9735_v49  ;;  %v9759_v49 = vunpack.c.h.s8.bf16 %v1147_v32 }
 0x330   : > { %9800 = vmatpush1.bf16.msra.mxu1 %v9799_v9  ;;  %9738 = vmatprep.subr.bf16.mxu0 %v9737_v46  ;;  %v9823_v9 = vunpack.c.h.s8.bf16 %v1211_v45  ;;  %v9761_v46 = vunpack.c.l.s8.bf16 %v1148_v59  ;;  %v1252_v59 = vld [vmem:[%s11291_s13 + $0x4e8] sm:$0xff] }
 0x331   : > { %9802 = vmatprep.subr.bf16.mxu1 %v9801_v16  ;;  %v9825_v16 = vunpack.c.l.s8.bf16 %v1212_v41  ;;  %v1316_v41 = vld [vmem:[%s11291_s13 + $0x6e8] sm:$0xff] }
 0x333   : > { %9740 = vmatpush1.bf16.msra.mxu0 %v9739_v52  ;;  %v9763_v52 = vunpack.c.l.s8.bf16 %v1147_v32  ;;  %v9909_v32 = vunpack.c.h.s8.bf16 %v1316_v41 }
 0x334   : > { %9804 = vmatpush1.bf16.msra.mxu1 %v9803_v47  ;;  %9742 = vmatprep.subr.bf16.mxu0 %v9741_v51  ;;  %v9827_v47 = vunpack.c.l.s8.bf16 %v1211_v45  ;;  %v9765_v51 = vunpack.c.h.s8.bf16 %v1140_v44  ;;  %v1315_v45 = vld [vmem:[%s11291_s13 + $0x6e0] sm:$0xff] }
 0x335   : > { %9806 = vmatprep.subr.bf16.mxu1 %v9805_v8  ;;  %v9829_v8 = vunpack.c.h.s8.bf16 %v1204_v31 }
 0x337   : > { %9744 = vmatpush1.bf16.msra.mxu0 %v9743_v7  ;;  %v9767_v7 = vunpack.c.h.s8.bf16 %v1139_v15 }
 0x338   : > { %9808 = vmatpush1.bf16.msra.mxu1 %v9807_v3  ;;  %9746 = vmatprep.subr.bf16.mxu0 %v9745_v6  ;;  %v9831_v3 = vunpack.c.h.s8.bf16 %v1203_v58  ;;  %v9769_v6 = vunpack.c.l.s8.bf16 %v1140_v44  ;;  %v1244_v44 = vld [vmem:[%s11291_s13 + $0x4a8] sm:$0xff] }
 0x339   : > { %9810 = vmatprep.subr.bf16.mxu1 %v9809_v54  ;;  %v9833_v54 = vunpack.c.l.s8.bf16 %v1204_v31  ;;  %v1308_v31 = vld [vmem:[%s11291_s13 + $0x6a8] sm:$0xff] }
 0x33b   : > { %9748 = vmatpush1.bf16.msra.mxu0 %v9747_v62  ;;  %v9771_v62 = vunpack.c.l.s8.bf16 %v1139_v15  ;;  %v1243_v15 = vld [vmem:[%s11291_s13 + $0x4a0] sm:$0xff] }
 0x33c   : > { %9812 = vmatpush1.bf16.msra.mxu1 %v9811_v14  ;;  %9750 = vmatprep.subr.bf16.mxu0 %v9749_v24  ;;  %v9835_v14 = vunpack.c.l.s8.bf16 %v1203_v58  ;;  %v9773_v24 = vunpack.c.h.s8.bf16 %v1132_v61  ;;  %v1307_v58 = vld [vmem:[%s11291_s13 + $0x6a0] sm:$0xff] }
 0x33d   : > { %9814 = vmatprep.subr.bf16.mxu1 %v9813_v27  ;;  %v9837_v27 = vunpack.c.h.s8.bf16 %v1196_v26 }
 0x33f   : > { %9752 = vmatpush2.bf16.msra.mxu0 %v9751_v21  ;;  %v9775_v21 = vunpack.c.h.s8.bf16 %v1131_v36 }
 0x340   : > { %9816 = vmatpush2.bf16.msra.mxu1 %v9815_v37  ;;  %9754 = vmatprep.subr.bf16.mxu0 %v9753_v20  ;;  %v9839_v37 = vunpack.c.h.s8.bf16 %v1195_v13  ;;  %v9777_v20 = vunpack.c.l.s8.bf16 %v1132_v61  ;;  %v1236_v61 = vld [vmem:[%s11291_s13 + $0x468] sm:$0xff] }
 0x341   : > { %9818 = vmatprep.subr.bf16.mxu1 %v9817_v42  ;;  %v9841_v42 = vunpack.c.l.s8.bf16 %v1196_v26  ;;  %v1300_v26 = vld [vmem:[%s11291_s13 + $0x668] sm:$0xff] }
 0x343   : > { %9756 = vmatpush2.bf16.msra.mxu0 %v9755_v40  ;;  %v9779_v40 = vunpack.c.l.s8.bf16 %v1131_v36  ;;  %v1235_v36 = vld [vmem:[%s11291_s13 + $0x460] sm:$0xff] }
 0x344   : > { %9820 = vmatpush2.bf16.msra.mxu1 %v9819_v11  ;;  %9758 = vmatprep.subr.bf16.mxu0 %v9757_v25  ;;  %v9843_v11 = vunpack.c.l.s8.bf16 %v1195_v13  ;;  %v9845_v25 = vunpack.c.h.s8.bf16 %v1252_v59  ;;  %v1299_v13 = vld [vmem:[%s11291_s13 + $0x660] sm:$0xff] }
 0x345   : > { %9822 = vmatprep.subr.bf16.mxu1 %v9821_v18  ;;  %v1251_v18 = vld [vmem:[%s11291_s13 + $0x4e0] sm:$0xff] }
 0x347   : > { %9760 = vmatpush2.bf16.msra.mxu0 %v9759_v49  ;;  %v9847_v49 = vunpack.c.h.s8.bf16 %v1251_v18 }
 0x348   : > { %9824 = vmatpush2.bf16.msra.mxu1 %v9823_v9  ;;  %9762 = vmatprep.subr.bf16.mxu0 %v9761_v46  ;;  %v9911_v9 = vunpack.c.h.s8.bf16 %v1315_v45  ;;  %v9849_v46 = vunpack.c.l.s8.bf16 %v1252_v59  ;;  %v1228_v59 = vld [vmem:[%s11291_s13 + $0x428] sm:$0xff] }
 0x349   : > { %9826 = vmatprep.subr.bf16.mxu1 %v9825_v16  ;;  %v9913_v16 = vunpack.c.l.s8.bf16 %v1316_v41  ;;  %v1292_v41 = vld [vmem:[%s11291_s13 + $0x628] sm:$0xff] }
 0x34b   : > { %9764 = vmatpush2.bf16.msra.mxu0 %v9763_v52  ;;  %v9851_v52 = vunpack.c.l.s8.bf16 %v1251_v18  ;;  %v9933_v18 = vunpack.c.h.s8.bf16 %v1292_v41 }
 0x34c   : > { %9828 = vmatpush2.bf16.msra.mxu1 %v9827_v47  ;;  %9766 = vmatprep.subr.bf16.mxu0 %v9765_v51  ;;  %v9915_v47 = vunpack.c.l.s8.bf16 %v1315_v45  ;;  %v9853_v51 = vunpack.c.h.s8.bf16 %v1244_v44  ;;  %v1291_v45 = vld [vmem:[%s11291_s13 + $0x620] sm:$0xff] }
 0x34d   : > { %9830 = vmatprep.subr.bf16.mxu1 %v9829_v8  ;;  %v9917_v8 = vunpack.c.h.s8.bf16 %v1308_v31 }
 0x34f   : > { %9768 = vmatpush2.bf16.msra.mxu0 %v9767_v7  ;;  %v9855_v7 = vunpack.c.h.s8.bf16 %v1243_v15 }
 0x350   : > { %9832 = vmatpush2.bf16.msra.mxu1 %v9831_v3  ;;  %9770 = vmatprep.subr.bf16.mxu0 %v9769_v6  ;;  %v9919_v3 = vunpack.c.h.s8.bf16 %v1307_v58  ;;  %v9857_v6 = vunpack.c.l.s8.bf16 %v1244_v44  ;;  %v1284_v44 = vld [vmem:[%s11291_s13 + $0x5e8] sm:$0xff] }
 0x351   : > { %9834 = vmatprep.subr.bf16.mxu1 %v9833_v54  ;;  %v9921_v54 = vunpack.c.l.s8.bf16 %v1308_v31  ;;  %v1348_v31 = vld [vmem:[%s11291_s13 + $0x7e8] sm:$0xff] }
 0x353   : > { %9772 = vmatpush2.bf16.msra.mxu0 %v9771_v62  ;;  %v9859_v62 = vunpack.c.l.s8.bf16 %v1243_v15  ;;  %v1283_v15 = vld [vmem:[%s11291_s13 + $0x5e0] sm:$0xff] }
 0x354   : > { %9836 = vmatpush2.bf16.msra.mxu1 %v9835_v14  ;;  %9774 = vmatprep.subr.bf16.mxu0 %v9773_v24  ;;  %v9923_v14 = vunpack.c.l.s8.bf16 %v1307_v58  ;;  %v9861_v24 = vunpack.c.h.s8.bf16 %v1236_v61  ;;  %v1347_v58 = vld [vmem:[%s11291_s13 + $0x7e0] sm:$0xff] }
 0x355   : > { %9838 = vmatprep.subr.bf16.mxu1 %v9837_v27  ;;  %v9925_v27 = vunpack.c.h.s8.bf16 %v1300_v26 }
 0x357   : > { %9776 = vmatpush2.bf16.msra.mxu0 %v9775_v21  ;;  %v9863_v21 = vunpack.c.h.s8.bf16 %v1235_v36 }
 0x358   : > { %9840 = vmatpush2.bf16.msra.mxu1 %v9839_v37  ;;  %9778 = vmatprep.subr.bf16.mxu0 %v9777_v20  ;;  %v9927_v37 = vunpack.c.h.s8.bf16 %v1299_v13  ;;  %v9865_v20 = vunpack.c.l.s8.bf16 %v1236_v61  ;;  %v1276_v61 = vld [vmem:[%s11291_s13 + $0x5a8] sm:$0xff] }
 0x359   : > { %9842 = vmatprep.subr.bf16.mxu1 %v9841_v42  ;;  %v9929_v42 = vunpack.c.l.s8.bf16 %v1300_v26  ;;  %v1340_v26 = vld [vmem:[%s11291_s13 + $0x7a8] sm:$0xff] }
 0x35b   : > { %9780 = vmatpush2.bf16.msra.mxu0 %v9779_v40  ;;  %v9867_v40 = vunpack.c.l.s8.bf16 %v1235_v36  ;;  %v1275_v36 = vld [vmem:[%s11291_s13 + $0x5a0] sm:$0xff] }
 0x35c   : > { %9844 = vmatpush2.bf16.msra.mxu1 %v9843_v11  ;;  %9846 = vmatprep.subr.bf16.mxu0 %v9845_v25  ;;  %v9931_v11 = vunpack.c.l.s8.bf16 %v1299_v13  ;;  %v9869_v25 = vunpack.c.h.s8.bf16 %v1228_v59  ;;  %v1339_v13 = vld [vmem:[%s11291_s13 + $0x7a0] sm:$0xff] }
 0x35d   : > { %9910 = vmatprep.subr.bf16.mxu1 %v9909_v32  ;;  %v1227_v32 = vld [vmem:[%s11291_s13 + $0x420] sm:$0xff] }
 0x35e   : > { %7016 = vmatmul.mubr.f32.vlgmr.msra.gmra.mxu0 %v11484_v4 }
 0x35f   : > { %7093 = vmatmul.mubr.f32.vlgmr.msra.gmra.mxu1 %v11480_v63  ;;  %7021 = vmatprep.mubr.f32.mxu0 %v11505_v19 }
 0x360   : > { %7098 = vmatprep.mubr.f32.mxu1 %v11512_v23  ;;  %9848 = vmatpush1.bf16.msra.mxu0 %v9847_v49  ;;  %v9871_v49 = vunpack.c.h.s8.bf16 %v1227_v32 }
 0x361   : > { %9912 = vmatpush1.bf16.msra.mxu1 %v9911_v9  ;;  %9850 = vmatprep.subr.bf16.mxu0 %v9849_v46  ;;  %v9935_v9 = vunpack.c.h.s8.bf16 %v1291_v45  ;;  %v9873_v46 = vunpack.c.l.s8.bf16 %v1228_v59  ;;  %v1268_v59 = vld [vmem:[%s11291_s13 + $0x568] sm:$0xff] }
 0x362   : > { %7022 = vmatmul.mubr.f32.gmra.mxu0 %v11510_v22  ;;  %9914 = vmatprep.subr.bf16.mxu1 %v9913_v16  ;;  %v9937_v16 = vunpack.c.l.s8.bf16 %v1292_v41  ;;  %v1332_v41 = vld [vmem:[%s11291_s13 + $0x768] sm:$0xff] }
 0x363   : > { %7099 = vmatmul.mubr.f32.gmra.mxu1 %v11515_v28  ;;  %7169 = vmatprep.mubr.f32.mxu0 %v11524_v35 }
 0x364   : > { %9852 = vmatpush1.bf16.msra.mxu0 %v9851_v52  ;;  %7246 = vmatprep.mubr.f32.mxu1 %v11526_v38  ;;  %v9875_v52 = vunpack.c.l.s8.bf16 %v1227_v32  ;;  %v1267_v32 = vld [vmem:[%s11291_s13 + $0x560] sm:$0xff] }
 0x365   : > { %9916 = vmatpush1.bf16.msra.mxu1 %v9915_v47  ;;  %9854 = vmatprep.subr.bf16.mxu0 %v9853_v51  ;;  %v9939_v47 = vunpack.c.l.s8.bf16 %v1291_v45  ;;  %v9877_v51 = vunpack.c.h.s8.bf16 %v1284_v44  ;;  %v1331_v45 = vld [vmem:[%s11291_s13 + $0x760] sm:$0xff] }
 0x366   : > { %9918 = vmatprep.subr.bf16.mxu1 %v9917_v8  ;;  %v9941_v8 = vunpack.c.h.s8.bf16 %v1348_v31 }
 0x368   : > { %9856 = vmatpush1.bf16.msra.mxu0 %v9855_v7  ;;  %v9879_v7 = vunpack.c.h.s8.bf16 %v1283_v15 }
 0x369   : > { %9920 = vmatpush1.bf16.msra.mxu1 %v9919_v3  ;;  %9858 = vmatprep.subr.bf16.mxu0 %v9857_v6  ;;  %v9943_v3 = vunpack.c.h.s8.bf16 %v1347_v58  ;;  %v9881_v6 = vunpack.c.l.s8.bf16 %v1284_v44  ;;  %v1260_v44 = vld [vmem:[%s11291_s13 + $0x528] sm:$0xff] }
 0x36a   : > { %9922 = vmatprep.subr.bf16.mxu1 %v9921_v54  ;;  %v9945_v54 = vunpack.c.l.s8.bf16 %v1348_v31  ;;  %v1324_v31 = vld [vmem:[%s11291_s13 + $0x728] sm:$0xff] }
 0x36c   : > { %9860 = vmatpush1.bf16.msra.mxu0 %v9859_v62  ;;  %v9883_v62 = vunpack.c.l.s8.bf16 %v1283_v15  ;;  %v1259_v15 = vld [vmem:[%s11291_s13 + $0x520] sm:$0xff] }
 0x36d   : > { %9924 = vmatpush1.bf16.msra.mxu1 %v9923_v14  ;;  %9862 = vmatprep.subr.bf16.mxu0 %v9861_v24  ;;  %v9947_v14 = vunpack.c.l.s8.bf16 %v1347_v58  ;;  %v9885_v24 = vunpack.c.h.s8.bf16 %v1276_v61  ;;  %v1323_v58 = vld [vmem:[%s11291_s13 + $0x720] sm:$0xff] }
 0x36e   : > { %9926 = vmatprep.subr.bf16.mxu1 %v9925_v27  ;;  %v9949_v27 = vunpack.c.h.s8.bf16 %v1340_v26 }
 0x370   : > { %9864 = vmatpush1.bf16.msra.mxu0 %v9863_v21  ;;  %v9887_v21 = vunpack.c.h.s8.bf16 %v1275_v36 }
 0x371   : > { %9928 = vmatpush1.bf16.msra.mxu1 %v9927_v37  ;;  %9866 = vmatprep.subr.bf16.mxu0 %v9865_v20  ;;  %v9951_v37 = vunpack.c.h.s8.bf16 %v1339_v13  ;;  %v9889_v20 = vunpack.c.l.s8.bf16 %v1276_v61  ;;  %v1380_v61 = vld [vmem:[%s11291_s13 + $0x8e8] sm:$0xff] }
 0x372   : > { %9930 = vmatprep.subr.bf16.mxu1 %v9929_v42  ;;  %v9953_v42 = vunpack.c.l.s8.bf16 %v1340_v26  ;;  %v1444_v26 = vld [vmem:[%s11291_s13 + $0xae8] sm:$0xff] }
 0x374   : > { %9868 = vmatpush1.bf16.msra.mxu0 %v9867_v40  ;;  %v9891_v40 = vunpack.c.l.s8.bf16 %v1275_v36  ;;  %v10037_v36 = vunpack.c.h.s8.bf16 %v1444_v26 }
 0x375   : > { %9932 = vmatpush1.bf16.msra.mxu1 %v9931_v11  ;;  %9870 = vmatprep.subr.bf16.mxu0 %v9869_v25  ;;  %v9955_v11 = vunpack.c.l.s8.bf16 %v1339_v13  ;;  %v9893_v25 = vunpack.c.h.s8.bf16 %v1268_v59  ;;  %v1443_v13 = vld [vmem:[%s11291_s13 + $0xae0] sm:$0xff] }
 0x376   : > { %9934 = vmatprep.subr.bf16.mxu1 %v9933_v18  ;;  %v9957_v18 = vunpack.c.h.s8.bf16 %v1332_v41 }
 0x378   : > { %9872 = vmatpush1.bf16.msra.mxu0 %v9871_v49  ;;  %v9895_v49 = vunpack.c.h.s8.bf16 %v1267_v32 }
 0x379   : > { %9936 = vmatpush1.bf16.msra.mxu1 %v9935_v9  ;;  %9874 = vmatprep.subr.bf16.mxu0 %v9873_v46  ;;  %v9959_v9 = vunpack.c.h.s8.bf16 %v1331_v45  ;;  %v9897_v46 = vunpack.c.l.s8.bf16 %v1268_v59  ;;  %v1372_v59 = vld [vmem:[%s11291_s13 + $0x8a8] sm:$0xff] }
 0x37a   : > { %9938 = vmatprep.subr.bf16.mxu1 %v9937_v16  ;;  %v9961_v16 = vunpack.c.l.s8.bf16 %v1332_v41  ;;  %v1436_v41 = vld [vmem:[%s11291_s13 + $0xaa8] sm:$0xff] }
 0x37c   : > { %9876 = vmatpush1.bf16.msra.mxu0 %v9875_v52  ;;  %v9899_v52 = vunpack.c.l.s8.bf16 %v1267_v32  ;;  %v1371_v32 = vld [vmem:[%s11291_s13 + $0x8a0] sm:$0xff] }
 0x37d   : > { %9940 = vmatpush1.bf16.msra.mxu1 %v9939_v47  ;;  %9878 = vmatprep.subr.bf16.mxu0 %v9877_v51  ;;  %v9963_v47 = vunpack.c.l.s8.bf16 %v1331_v45  ;;  %v9901_v51 = vunpack.c.h.s8.bf16 %v1260_v44  ;;  %v10045_v45 = vunpack.c.h.s8.bf16 %v1436_v41 }
 0x37e   : > { %9942 = vmatprep.subr.bf16.mxu1 %v9941_v8  ;;  %v9965_v8 = vunpack.c.h.s8.bf16 %v1324_v31 }
 0x380   : > { %9880 = vmatpush2.bf16.msra.mxu0 %v9879_v7  ;;  %v9903_v7 = vunpack.c.h.s8.bf16 %v1259_v15 }
 0x381   : > { %9944 = vmatpush2.bf16.msra.mxu1 %v9943_v3  ;;  %9882 = vmatprep.subr.bf16.mxu0 %v9881_v6  ;;  %v9967_v3 = vunpack.c.h.s8.bf16 %v1323_v58  ;;  %v9905_v6 = vunpack.c.l.s8.bf16 %v1260_v44  ;;  %v9983_v44 = vunpack.c.h.s8.bf16 %v1371_v32 }
 0x382   : > { %9946 = vmatprep.subr.bf16.mxu1 %v9945_v54  ;;  %v9969_v54 = vunpack.c.l.s8.bf16 %v1324_v31 }
 0x384   : > { %9884 = vmatpush2.bf16.msra.mxu0 %v9883_v62  ;;  %v9907_v62 = vunpack.c.l.s8.bf16 %v1259_v15  ;;  %v1428_v15 = vld [vmem:[%s11291_s13 + $0xa68] sm:$0xff] }
 0x385   : > { %9948 = vmatpush2.bf16.msra.mxu1 %v9947_v14  ;;  %9886 = vmatprep.subr.bf16.mxu0 %v9885_v24  ;;  %v9971_v14 = vunpack.c.l.s8.bf16 %v1323_v58  ;;  %v9973_v24 = vunpack.c.h.s8.bf16 %v1380_v61 }
 0x386   : > { %9950 = vmatprep.subr.bf16.mxu1 %v9949_v27  ;;  %v1379_v27 = vld [vmem:[%s11291_s13 + $0x8e0] sm:$0xff] }
 0x388   : > { %9888 = vmatpush2.bf16.msra.mxu0 %v9887_v21  ;;  %v9975_v21 = vunpack.c.h.s8.bf16 %v1379_v27 }
 0x389   : > { %9952 = vmatpush2.bf16.msra.mxu1 %v9951_v37  ;;  %9890 = vmatprep.subr.bf16.mxu0 %v9889_v20  ;;  %v10039_v37 = vunpack.c.h.s8.bf16 %v1443_v13  ;;  %v9977_v20 = vunpack.c.l.s8.bf16 %v1380_v61 }
 0x38a   : > { %9954 = vmatprep.subr.bf16.mxu1 %v9953_v42  ;;  %v10041_v42 = vunpack.c.l.s8.bf16 %v1444_v26 }
 0x38c   : > { %9892 = vmatpush2.bf16.msra.mxu0 %v9891_v40  ;;  %v9979_v40 = vunpack.c.l.s8.bf16 %v1379_v27 }
 0x38d   : > { %9956 = vmatpush2.bf16.msra.mxu1 %v9955_v11  ;;  %9894 = vmatprep.subr.bf16.mxu0 %v9893_v25  ;;  %v10043_v11 = vunpack.c.l.s8.bf16 %v1443_v13  ;;  %v9981_v25 = vunpack.c.h.s8.bf16 %v1372_v59  ;;  %v12059_v13 = vpop.f32.mrf.mxu0 }
 0x38e   : > { %9958 = vmatprep.subr.bf16.mxu1 %v9957_v18  ;;  %v12627_v18 = vld [vmem:[#allocation24_spill] sm:$0xff] }
 0x390   : > { %9896 = vmatpush2.bf16.msra.mxu0 %v9895_v49  ;;  %v1435_v49 = vld [vmem:[%s11291_s13 + $0xaa0] sm:$0xff] }
 0x391   : > { %9960 = vmatpush2.bf16.msra.mxu1 %v9959_v9  ;;  %9898 = vmatprep.subr.bf16.mxu0 %v9897_v46  ;;  %v12628_v9 = vld [vmem:[#allocation26_spill] sm:$0xff]  ;;  %v12629_v46 = vld [vmem:[#allocation23_spill] sm:$0xff]  ;;  %v10047_v31 = vunpack.c.h.s8.bf16 %v1435_v49  ;;  %v10051_v58 = vunpack.c.l.s8.bf16 %v1435_v49 }
 0x392   : > { %9962 = vmatprep.subr.bf16.mxu1 %v9961_v16  ;;  %v12630_v16 = vld [vmem:[#allocation25_spill] sm:$0xff]  ;;  %v1412_v49 = vld [vmem:[%s11291_s13 + $0x9e8] sm:$0xff] }
 0x394   : > { %9900 = vmatpush2.bf16.msra.mxu0 %v9899_v52  ;;  %v9985_v52 = vunpack.c.l.s8.bf16 %v1372_v59  ;;  %v1419_v59 = vld [vmem:[%s11291_s13 + $0xa20] sm:$0xff] }
 0x395   : > { %9964 = vmatpush2.bf16.msra.mxu1 %v9963_v47  ;;  %9902 = vmatprep.subr.bf16.mxu0 %v9901_v51  ;;  %v10049_v47 = vunpack.c.l.s8.bf16 %v1436_v41  ;;  %v1364_v51 = vld [vmem:[%s11291_s13 + $0x868] sm:$0xff]  ;;  %v12063_v41 = vpop.f32.mrf.mxu1 }
 0x396   : > { %9966 = vmatprep.subr.bf16.mxu1 %v9965_v8  ;;  %v9987_v8 = vunpack.c.l.s8.bf16 %v1371_v32 }
 0x398   : > { %9904 = vmatpush2.bf16.msra.mxu0 %v9903_v7  ;;  %v9989_v7 = vunpack.c.h.s8.bf16 %v1364_v51 }
 0x399   : > { %9968 = vmatpush2.bf16.msra.mxu1 %v9967_v3  ;;  %9906 = vmatprep.subr.bf16.mxu0 %v9905_v6  ;;  %v1363_v3 = vld [vmem:[%s11291_s13 + $0x860] sm:$0xff]  ;;  %v10053_v6 = vunpack.c.h.s8.bf16 %v1428_v15 }
 0x39a   : > { %9970 = vmatprep.subr.bf16.mxu1 %v9969_v54  ;;  %v1427_v54 = vld [vmem:[%s11291_s13 + $0xa60] sm:$0xff]  ;;  %v9991_v61 = vunpack.c.h.s8.bf16 %v1363_v3  ;;  %v9995_v27 = vunpack.c.l.s8.bf16 %v1363_v3 }
 0x39b   : > { %v10055_v26 = vunpack.c.h.s8.bf16 %v1427_v54 }
 0x39c   : > { %9908 = vmatpush2.bf16.msra.mxu0 %v9907_v62  ;;  %v9993_v62 = vunpack.c.l.s8.bf16 %v1364_v51  ;;  %v10067_v51 = vunpack.c.l.s8.bf16 %v1419_v59 }
 0x39d   : > { %9972 = vmatpush2.bf16.msra.mxu1 %v9971_v14  ;;  %9974 = vmatprep.subr.bf16.mxu0 %v9973_v24  ;;  %v10057_v14 = vunpack.c.l.s8.bf16 %v1428_v15  ;;  %v1356_v24 = vld [vmem:[%s11291_s13 + $0x828] sm:$0xff]  ;;  %v10005_v15 = vunpack.c.h.s8.bf16 %v1412_v49 }
 0x39e   : > { %10038 = vmatprep.subr.bf16.mxu1 %v10037_v36  ;;  %v1420_v36 = vld [vmem:[%s11291_s13 + $0xa28] sm:$0xff]  ;;  %v10001_v32 = vunpack.c.l.s8.bf16 %v1356_v24 }
 0x39f   : > { %7170 = vmatmul.mubr.f32.vlgmr.msra.gmra.mxu0 %v11590_v60 }
 0x3a0   : > { %7247 = vmatmul.mubr.f32.vlgmr.msra.gmra.mxu1 %v11587_v57  ;;  %7175 = vmatprep.mubr.f32.mxu0 %v11595_v2 }
 0x3a1   : > { %7252 = vmatprep.mubr.f32.mxu1 %v11592_v1  ;;  %9976 = vmatpush1.bf16.msra.mxu0 %v9975_v21  ;;  %v10059_v21 = vunpack.c.l.s8.bf16 %v1427_v54 }
 0x3a2   : > { %10040 = vmatpush1.bf16.msra.mxu1 %v10039_v37  ;;  %9978 = vmatprep.subr.bf16.mxu0 %v9977_v20  ;;  %v9997_v37 = vunpack.c.h.s8.bf16 %v1356_v24  ;;  %v1355_v20 = vld [vmem:[%s11291_s13 + $0x820] sm:$0xff] }
 0x3a3   : > { %7176 = vmatmul.mubr.f32.gmra.mxu0 %v12627_v18  ;;  %10042 = vmatprep.subr.bf16.mxu1 %v10041_v42  ;;  %v10061_v42 = vunpack.c.h.s8.bf16 %v1420_v36  ;;  %v1451_v18 = vld [vmem:[%s11291_s13 + $0xb20] sm:$0xff] }
 0x3a4   : > { %7253 = vmatmul.mubr.f32.gmra.mxu1 %v12628_v9  ;;  %7323 = vmatprep.mubr.f32.mxu0 %v12629_v46 }
 0x3a5   : > { %9980 = vmatpush1.bf16.msra.mxu0 %v9979_v40  ;;  %7400 = vmatprep.mubr.f32.mxu1 %v12630_v16  ;;  %v9999_v40 = vunpack.c.h.s8.bf16 %v1355_v20  ;;  %v1452_v16 = vld [vmem:[%s11291_s13 + $0xb28] sm:$0xff] }
 0x3a6   : > { %10044 = vmatpush1.bf16.msra.mxu1 %v10043_v11  ;;  %9982 = vmatprep.subr.bf16.mxu0 %v9981_v25  ;;  %v12065_v11 = vpop.f32.mrf.mxu0  ;;  %v10063_v25 = vunpack.c.h.s8.bf16 %v1419_v59  ;;  %v1403_v59 = vld [vmem:[%s11291_s13 + $0x9a0] sm:$0xff] }
 0x3a7   : > { %10046 = vmatprep.subr.bf16.mxu1 %v10045_v45  ;;  %v10065_v45 = vunpack.c.l.s8.bf16 %v1420_v36 }
 0x3a9   : > { %9984 = vmatpush1.bf16.msra.mxu0 %v9983_v44  ;;  %v12068_v44 = vpop.f32.mrf.mxu1 }
 0x3aa   : > { %10048 = vmatpush1.bf16.msra.mxu1 %v10047_v31  ;;  %9986 = vmatprep.subr.bf16.mxu0 %v9985_v52  ;;  %v1476_v31 = vld [vmem:[%s11291_s13 + $0xbe8] sm:$0xff]  ;;  %v10003_v52 = vunpack.c.l.s8.bf16 %v1355_v20 }
 0x3ab   : > { %10050 = vmatprep.subr.bf16.mxu1 %v10049_v47  ;;  %v12071_v47 = vpop.f32.mrf.mxu0  ;;  %v12075_v3 = vpop.f32.mrf.mxu1 }
 0x3ad   : > { %9988 = vmatpush1.bf16.msra.mxu0 %v9987_v8  ;;  %v1411_v8 = vld [vmem:[%s11291_s13 + $0x9e0] sm:$0xff]  ;;  %v12077_v54 = vpop.f32.mrf.mxu0  ;;  %v12080_v24 = vpop.f32.mrf.mxu1 }
 0x3ae   : > { %10052 = vmatpush1.bf16.msra.mxu1 %v10051_v58  ;;  %9990 = vmatprep.subr.bf16.mxu0 %v9989_v7  ;;  %v10069_v58 = vunpack.c.h.s8.bf16 %v1476_v31  ;;  %v1475_v7 = vld [vmem:[%s11291_s13 + $0xbe0] sm:$0xff] }
 0x3af   : > { %10054 = vmatprep.subr.bf16.mxu1 %v10053_v6  ;;  %v10007_v6 = vunpack.c.h.s8.bf16 %v1411_v8  ;;  %v6555_v36 = vpop.f32.mrf.mxu0  ;;  %v10075_v20 = vunpack.c.l.s8.bf16 %v1475_v7 }
 0x3b1   : > { %9992 = vmatpush1.bf16.msra.mxu0 %v9991_v61  ;;  %v10071_v61 = vunpack.c.h.s8.bf16 %v1475_v7  ;;  %v10019_v7 = vunpack.c.l.s8.bf16 %v1403_v59 }
 0x3b2   : > { %10056 = vmatpush1.bf16.msra.mxu1 %v10055_v26  ;;  %9994 = vmatprep.subr.bf16.mxu0 %v9993_v62  ;;  %v10009_v26 = vunpack.c.l.s8.bf16 %v1412_v49  ;;  %v10073_v62 = vunpack.c.l.s8.bf16 %v1476_v31 }
 0x3b3   : > { %10058 = vmatprep.subr.bf16.mxu1 %v10057_v14  ;;  %v1404_v14 = vld [vmem:[%s11291_s13 + $0x9a8] sm:$0xff] }
 0x3b5   : > { %9996 = vmatpush1.bf16.msra.mxu0 %v9995_v27  ;;  %v1468_v27 = vld [vmem:[%s11291_s13 + $0xba8] sm:$0xff] }
 0x3b6   : > { %10060 = vmatpush1.bf16.msra.mxu1 %v10059_v21  ;;  %9998 = vmatprep.subr.bf16.mxu0 %v9997_v37  ;;  %v10011_v21 = vunpack.c.l.s8.bf16 %v1411_v8  ;;  %v12083_v37 = vpop.f32.mrf.mxu1 }
 0x3b7   : > { %10062 = vmatprep.subr.bf16.mxu1 %v10061_v42  ;;  %v10013_v42 = vunpack.c.h.s8.bf16 %v1404_v14 }
 0x3b8   : > { %v12087_v49 = vpop.f32.mrf.mxu1 }
 0x3b9   : > { %10000 = vmatpush1.bf16.msra.mxu0 %v9999_v40  ;;  %v10077_v40 = vunpack.c.h.s8.bf16 %v1468_v27 }
 0x3ba   : > { %10064 = vmatpush1.bf16.msra.mxu1 %v10063_v25  ;;  %10002 = vmatprep.subr.bf16.mxu0 %v10001_v32  ;;  %v1467_v25 = vld [vmem:[%s11291_s13 + $0xba0] sm:$0xff]  ;;  %v6557_v32 = vpop.f32.mrf.mxu0 }
 0x3bb   : > { %10066 = vmatprep.subr.bf16.mxu1 %v10065_v45  ;;  %v10015_v45 = vunpack.c.h.s8.bf16 %v1403_v59  ;;  %v10079_v31 = vunpack.c.h.s8.bf16 %v1467_v25 }
 0x3bc   : > { %v6561_v8 = vpop.f32.mrf.mxu0 }
 0x3bd   : > { %10004 = vmatpush1.bf16.msra.mxu0 %v10003_v52  ;;  %v10017_v52 = vunpack.c.l.s8.bf16 %v1404_v14 }
 0x3be   : > { %10068 = vmatpush1.bf16.msra.mxu1 %v10067_v51  ;;  %10006 = vmatprep.subr.bf16.mxu0 %v10005_v15  ;;  %v10081_v51 = vunpack.c.l.s8.bf16 %v1468_v27  ;;  %v1396_v15 = vld [vmem:[%s11291_s13 + $0x968] sm:$0xff]  ;;  %v6563_v14 = vpop.f32.mrf.mxu0 }
 0x3bf   : > { %10070 = vmatprep.subr.bf16.mxu1 %v10069_v58  ;;  %v1460_v58 = vld [vmem:[%s11291_s13 + $0xb68] sm:$0xff]  ;;  %v10025_v59 = vunpack.c.l.s8.bf16 %v1396_v15 }
 0x3c1   : > { %10008 = vmatpush2.bf16.msra.mxu0 %v10007_v6  ;;  %v6638_v6 = vpop.f32.mrf.mxu1 }
 0x3c2   : > { %10072 = vmatpush2.bf16.msra.mxu1 %v10071_v61  ;;  %10010 = vmatprep.subr.bf16.mxu0 %v10009_v26  ;;  %v10083_v61 = vunpack.c.l.s8.bf16 %v1467_v25  ;;  %v10021_v26 = vunpack.c.h.s8.bf16 %v1396_v15  ;;  %v1388_v25 = vld [vmem:[%s11291_s13 + $0x928] sm:$0xff] }
 0x3c3   : > { %10074 = vmatprep.subr.bf16.mxu1 %v10073_v62  ;;  %v1395_v62 = vld [vmem:[%s11291_s13 + $0x960] sm:$0xff]  ;;  %v6640_v27 = vpop.f32.mrf.mxu1 }
 0x3c4   : > { %v10027_v46 = vunpack.c.l.s8.bf16 %v1395_v62 }
 0x3c5   : > { %10012 = vmatpush2.bf16.msra.mxu0 %v10011_v21  ;;  %v10085_v21 = vunpack.c.h.s8.bf16 %v1460_v58 }
 0x3c6   : > { %10076 = vmatpush2.bf16.msra.mxu1 %v10075_v20  ;;  %10014 = vmatprep.subr.bf16.mxu0 %v10013_v42  ;;  %v1459_v20 = vld [vmem:[%s11291_s13 + $0xb60] sm:$0xff]  ;;  %v10023_v42 = vunpack.c.h.s8.bf16 %v1395_v62  ;;  %v6487_v62 = vadd.f32 %v12080_v24, %v12077_v54 }
 0x3c7   : > { %10078 = vmatprep.subr.bf16.mxu1 %v10077_v40  ;;  %v6709_v40 = vpop.f32.mrf.mxu0  ;;  %v10091_v15 = vunpack.c.l.s8.bf16 %v1459_v20 }
 0x3c9   : > { %10016 = vmatpush2.bf16.msra.mxu0 %v10015_v45  ;;  %v10087_v45 = vunpack.c.h.s8.bf16 %v1459_v20 }
 0x3ca   : > { %10080 = vmatpush2.bf16.msra.mxu1 %v10079_v31  ;;  %10018 = vmatprep.subr.bf16.mxu0 %v10017_v52  ;;  %v10089_v31 = vunpack.c.l.s8.bf16 %v1460_v58  ;;  %v6479_v52 = vadd.f32 %v12063_v41, %v12059_v13  ;;  %v10093_v58 = vunpack.c.h.s8.bf16 %v1452_v16  ;;  %v6485_v13 = vadd.f32 %v12075_v3, %v12071_v47  ;;  %v1508_v3 = vld [vmem:[%s11291_s13 + $0xce8] sm:$0xff] }
 0x3cb   : > { %10082 = vmatprep.subr.bf16.mxu1 %v10081_v51  ;;  %v6786_v51 = vpop.f32.mrf.mxu1  ;;  %v10097_v47 = vunpack.c.l.s8.bf16 %v1452_v16 }
 0x3cc   : > { %v6556_v9 = vadd.f32 %v6555_v36, %v6479_v52  ;;  %v6562_v36 = vadd.f32 %v6561_v8, %v6485_v13 }
 0x3cd   : > { %10020 = vmatpush2.bf16.msra.mxu0 %v10019_v7  ;;  %v6481_v7 = vadd.f32 %v12068_v44, %v12065_v11 }
 0x3ce   : > { %10084 = vmatpush2.bf16.msra.mxu1 %v10083_v61  ;;  %10022 = vmatprep.subr.bf16.mxu0 %v10021_v26  ;;  %v6711_v61 = vpop.f32.mrf.mxu0  ;;  %v10029_v26 = vunpack.c.h.s8.bf16 %v1388_v25  ;;  %v6633_v44 = vadd.f32 %v12083_v37, %v6556_v9  ;;  %v6639_v24 = vadd.f32 %v6638_v6, %v6562_v36 }
 0x3cf   : > { %10086 = vmatprep.subr.bf16.mxu1 %v10085_v21  ;;  %v1387_v21 = vld [vmem:[%s11291_s13 + $0x920] sm:$0xff]  ;;  %v6558_v41 = vadd.f32 %v6557_v32, %v6481_v7 }
 0x3d0   : > { %v10031_v11 = vunpack.c.h.s8.bf16 %v1387_v21  ;;  %v6715_v20 = vpop.f32.mrf.mxu0  ;;  %v6710_v52 = vadd.f32 %v6709_v40, %v6633_v44  ;;  %v10035_v9 = vunpack.c.l.s8.bf16 %v1387_v21 }
 0x3d1   : > { %10024 = vmatpush2.bf16.msra.mxu0 %v10023_v42  ;;  %v6788_v42 = vpop.f32.mrf.mxu1  ;;  %v6635_v32 = vadd.f32 %v12087_v49, %v6558_v41  ;;  %v1507_v49 = vld [vmem:[%s11291_s13 + $0xce0] sm:$0xff]  ;;  %v6716_v40 = vadd.f32 %v6715_v20, %v6639_v24 }
 0x3d2   : > { %10088 = vmatpush2.bf16.msra.mxu1 %v10087_v45  ;;  %10026 = vmatprep.subr.bf16.mxu0 %v10025_v59  ;;  %v10095_v45 = vunpack.c.h.s8.bf16 %v1451_v18  ;;  %v10033_v59 = vunpack.c.l.s8.bf16 %v1388_v25  ;;  %v6717_v8 = vpop.f32.mrf.mxu0  ;;  %v10099_v25 = vunpack.c.l.s8.bf16 %v1451_v18  ;;  %v10103_v18 = vunpack.c.h.s8.bf16 %v1507_v49 }
 0x3d3   : > { %10090 = vmatprep.subr.bf16.mxu1 %v10089_v31  ;;  %v6564_v31 = vadd.f32 %v6563_v14, %v6487_v62  ;;  %v6792_v54 = vpop.f32.mrf.mxu1  ;;  %v6712_v37 = vadd.f32 %v6711_v61, %v6635_v32  ;;  %v10101_v14 = vunpack.c.h.s8.bf16 %v1508_v3  ;;  %v1564_v32 = vld [vmem:[%s11291_s13 + $0xea8] sm:$0xff]  ;;  %v10107_v24 = vunpack.c.l.s8.bf16 %v1507_v49 }
 0x3d4   : > { %v6793_v44 = vadd.f32 %v6792_v54, %v6716_v40  ;;  %v10173_v40 = vunpack.c.h.s8.bf16 %v1564_v32 }
 0x3d5   : > { %10028 = vmatpush2.bf16.msra.mxu0 %v10027_v46  ;;  %v12109_v46 = vld [vmem:[%s11291_s13 + $0xee8] sm:$0xff]  ;;  %v6641_v7 = vadd.f32 %v6640_v27, %v6564_v31  ;;  %v6789_v21 = vadd.f32 %v6788_v42, %v6712_v37  ;;  %v5705_v27 = vld [vmem:[%s12564_s6 + $0x10] sm:$0xff] }
 0x3d6   : > { %10092 = vmatpush2.bf16.msra.mxu1 %v10091_v15  ;;  %10030 = vmatprep.subr.bf16.mxu0 %v10029_v26  ;;  %v10165_v16 = vunpack.c.h.s8.bf16 %v12109_v46  ;;  %v6787_v15 = vadd.f32 %v6786_v51, %v6710_v52  ;;  %v6794_v26 = vpop.f32.mrf.mxu1  ;;  %v5713_v37 = vld [vmem:[%s12564_s6 + $0x50] sm:$0xff] }
 0x3d7   : > { %10094 = vmatprep.subr.bf16.mxu1 %v10093_v58  ;;  %v1571_v58 = vld [vmem:[%s11291_s13 + $0xee0] sm:$0xff]  ;;  %v6718_v13 = vadd.f32 %v6717_v8, %v6641_v7 }
 0x3d8   : > { %v10167_v51 = vunpack.c.h.s8.bf16 %v1571_v58  ;;  %v10171_v8 = vunpack.c.l.s8.bf16 %v1571_v58  ;;  %v1499_v7 = vld [vmem:[%s11291_s13 + $0xca0] sm:$0xff]  ;;  %v5714_v58 = vld [vmem:[%s12564_s6 + $0x58] sm:$0xff] }
 0x3d9   : > { %10032 = vmatpush2.bf16.msra.mxu0 %v10031_v11  ;;  %v10105_v11 = vunpack.c.l.s8.bf16 %v1508_v3  ;;  %v6795_v31 = vadd.f32 %v6794_v26, %v6718_v13  ;;  %v1563_v26 = vld [vmem:[%s11291_s13 + $0xea0] sm:$0xff] }
 0x3da   : > { %10096 = vmatpush2.bf16.msra.mxu1 %v10095_v45  ;;  %10034 = vmatprep.subr.bf16.mxu0 %v10033_v59  ;;  %v10169_v45 = vunpack.c.l.s8.bf16 %v12109_v46  ;;  %v1500_v59 = vld [vmem:[%s11291_s13 + $0xca8] sm:$0xff] }
 0x3db   : > { %10098 = vmatprep.subr.bf16.mxu1 %v10097_v47  ;;  %v5706_v47 = vld [vmem:[%s12564_s6 + $0x18] sm:$0xff] }
 0x3dd   : > { %10036 = vmatpush2.bf16.msra.mxu0 %v10035_v9  ;;  %v6863_v41 = vpop.f32.mrf.mxu0 }
 0x3de   : > { %10100 = vmatpush2.bf16.msra.mxu1 %v10099_v25  ;;  %v6864_v6 = vadd.f32 %v6863_v41, %v6787_v15  ;;  %v6940_v61 = vpop.f32.mrf.mxu1  ;;  %10102 = vmatprep.subr.bf16.mxu0 %v10101_v14  ;;  %v10109_v14 = vunpack.c.h.s8.bf16 %v1500_v59 }
 0x3df   : > { %10166 = vmatprep.subr.bf16.mxu1 %v10165_v16  ;;  %v6865_v62 = vpop.f32.mrf.mxu0 }
 0x3e0   : > { %v6941_v36 = vadd.f32 %v6940_v61, %v6864_v6  ;;  %7324 = vmatmul.mubr.f32.vlgmr.msra.gmra.mxu0 %v11668_v34  ;;  %v6866_v42 = vadd.f32 %v6865_v62, %v6789_v21  ;;  %v6942_v20 = vpop.f32.mrf.mxu1  ;;  %v10111_v6 = vunpack.c.h.s8.bf16 %v1499_v7  ;;  %v10175_v61 = vunpack.c.h.s8.bf16 %v1563_v26  ;;  %v1492_v62 = vld [vmem:[%s11291_s13 + $0xc68] sm:$0xff] }
 0x3e1   : > { %7401 = vmatmul.mubr.f32.vlgmr.msra.gmra.mxu1 %v11665_v30  ;;  %7329 = vmatprep.mubr.f32.mxu0 %v11673_v43  ;;  %v6869_v3 = vpop.f32.mrf.mxu0 }
 0x3e2   : > { %v8185_v52 = vadd.f32 %v6941_v36, %v5705_v27  ;;  %7406 = vmatprep.mubr.f32.mxu1 %v11670_v39  ;;  %10104 = vmatpush1.bf16.msra.mxu0 %v10103_v18  ;;  %v6943_v54 = vadd.f32 %v6942_v20, %v6866_v42  ;;  %v6870_v9 = vadd.f32 %v6869_v3, %v6793_v44  ;;  %v6946_v46 = vpop.f32.mrf.mxu1  ;;  %v10113_v18 = vunpack.c.l.s8.bf16 %v1500_v59  ;;  %v1491_v20 = vld [vmem:[%s11291_s13 + $0xc60] sm:$0xff] }
 0x3e3   : > { %10168 = vmatpush1.bf16.msra.mxu1 %v10167_v51  ;;  %10106 = vmatprep.subr.bf16.mxu0 %v10105_v11  ;;  %v6871_v25 = vpop.f32.mrf.mxu0  ;;  %v10177_v51 = vunpack.c.l.s8.bf16 %v1564_v32  ;;  %v1556_v11 = vld [vmem:[%s11291_s13 + $0xe68] sm:$0xff]  ;;  %v10115_v44 = vunpack.c.l.s8.bf16 %v1499_v7  ;;  %v10179_v36 = vunpack.c.l.s8.bf16 %v1563_v26  ;;  %v10117_v42 = vunpack.c.h.s8.bf16 %v1492_v62  ;;  %v1555_v59 = vld [vmem:[%s11291_s13 + $0xe60] sm:$0xff] }
 0x3e4   : > { %8201 = vst [vmem:[%s12564_s6 + $0x10] sm:$0xff] %v8185_v52  ;;  %v8186_v16 = vadd.f32 %v6943_v54, %v5706_v47  ;;  %v6947_v15 = vadd.f32 %v6946_v46, %v6870_v9  ;;  %7330 = vmatmul.mubr.f32.gmra.mxu0 %v11682_v53  ;;  %10170 = vmatprep.subr.bf16.mxu1 %v10169_v45  ;;  %v6948_v13 = vpop.f32.mrf.mxu1  ;;  %v10181_v45 = vunpack.c.h.s8.bf16 %v1556_v11  ;;  %v10183_v47 = vunpack.c.h.s8.bf16 %v1555_v59  ;;  %v1484_v52 = vld [vmem:[%s11291_s13 + $0xc28] sm:$0xff] }
 0x3e5   : > { %v6872_v49 = vadd.f32 %v6871_v25, %v6795_v31  ;;  %7407 = vmatmul.mubr.f32.gmra.mxu1 %v11687_v50  ;;  %7477 = vmatprep.mubr.f32.mxu0 %v11677_v55  ;;  %v10119_v31 = vunpack.c.h.s8.bf16 %v1491_v20  ;;  %v10121_v3 = vunpack.c.l.s8.bf16 %v1492_v62  ;;  %v10185_v32 = vunpack.c.l.s8.bf16 %v1556_v11  ;;  %v1548_v54 = vld [vmem:[%s11291_s13 + $0xe28] sm:$0xff]  ;;  %v1547_v25 = vld [vmem:[%s11291_s13 + $0xe20] sm:$0xff] }
 0x3e6   : > { %8202 = vst [vmem:[%s12564_s6 + $0x18] sm:$0xff] %v8186_v16  ;;  %v8193_v41 = vadd.f32 %v6947_v15, %v5713_v37  ;;  %10108 = vmatpush1.bf16.msra.mxu0 %v10107_v24  ;;  %7554 = vmatprep.mubr.f32.mxu1 %v11684_v56  ;;  %v10123_v9 = vunpack.c.l.s8.bf16 %v1491_v20  ;;  %v10187_v46 = vunpack.c.l.s8.bf16 %v1555_v59  ;;  %v10125_v24 = vunpack.c.h.s8.bf16 %v1484_v52  ;;  %v1483_v37 = vld [vmem:[%s11291_s13 + $0xc20] sm:$0xff]  ;;  %v1532_v62 = vld [vmem:[%s11291_s13 + $0xda8] sm:$0xff] }
 0x3e7   : > { %v6949_v21 = vadd.f32 %v6948_v13, %v6872_v49  ;;  %10172 = vmatpush1.bf16.msra.mxu1 %v10171_v8  ;;  %10110 = vmatprep.subr.bf16.mxu0 %v10109_v14  ;;  %v10189_v8 = vunpack.c.h.s8.bf16 %v1548_v54  ;;  %v10127_v14 = vunpack.c.h.s8.bf16 %v1483_v37  ;;  %v10191_v7 = vunpack.c.h.s8.bf16 %v1547_v25  ;;  %v1540_v49 = vld [vmem:[%s11291_s13 + $0xde8] sm:$0xff]  ;;  %v1531_v20 = vld [vmem:[%s11291_s13 + $0xda0] sm:$0xff] }
 0x3e8   : > { %8209 = vst [vmem:[%s12564_s6 + $0x50] sm:$0xff] %v8193_v41  ;;  %10174 = vmatprep.subr.bf16.mxu1 %v10173_v40  ;;  %v10129_v16 = vunpack.c.l.s8.bf16 %v1484_v52  ;;  %v10193_v15 = vunpack.c.l.s8.bf16 %v1548_v54  ;;  %v1604_v40 = vld [vmem:[%s11291_s13 + $0xfe8] sm:$0xff]  ;;  %v10131_v26 = vunpack.c.l.s8.bf16 %v1483_v37  ;;  %v10133_v13 = vunpack.c.h.s8.bf16 %v1540_v49  ;;  %v1539_v41 = vld [vmem:[%s11291_s13 + $0xde0] sm:$0xff] }
 0x3e9   : > { %v8194_v27 = vadd.f32 %v6949_v21, %v5714_v58  ;;  %v10195_v58 = vunpack.c.l.s8.bf16 %v1547_v25  ;;  %v10197_v21 = vunpack.c.h.s8.bf16 %v1604_v40  ;;  %v1596_v11 = vld [vmem:[%s11291_s13 + $0xfa8] sm:$0xff]  ;;  %v1595_v59 = vld [vmem:[%s11291_s13 + $0xfa0] sm:$0xff] }
 0x3ea   : > { %10112 = vmatpush1.bf16.msra.mxu0 %v10111_v6  ;;  %v1603_v6 = vld [vmem:[%s11291_s13 + $0xfe0] sm:$0xff]  ;;  %v1524_v52 = vld [vmem:[%s11291_s13 + $0xd68] sm:$0xff] }
 0x3eb   : > { %8210 = vst [vmem:[%s12564_s6 + $0x58] sm:$0xff] %v8194_v27  ;;  %10176 = vmatpush1.bf16.msra.mxu1 %v10175_v61  ;;  %10114 = vmatprep.subr.bf16.mxu0 %v10113_v18  ;;  %v10135_v61 = vunpack.c.h.s8.bf16 %v1539_v41  ;;  %v10199_v18 = vunpack.c.h.s8.bf16 %v1603_v6  ;;  %v10137_v27 = vunpack.c.l.s8.bf16 %v1540_v49  ;;  %v1588_v54 = vld [vmem:[%s11291_s13 + $0xf68] sm:$0xff]  ;;  %v1523_v37 = vld [vmem:[%s11291_s13 + $0xd60] sm:$0xff] }
 0x3ec   : > { %10178 = vmatprep.subr.bf16.mxu1 %v10177_v51  ;;  %v10201_v51 = vunpack.c.l.s8.bf16 %v1604_v40  ;;  %v1587_v25 = vld [vmem:[%s11291_s13 + $0xf60] sm:$0xff]  ;;  %v1516_v49 = vld [vmem:[%s11291_s13 + $0xd28] sm:$0xff] }
 0x3ed   : > { %v1580_v40 = vld [vmem:[%s11291_s13 + $0xf28] sm:$0xff] }
 0x3ee   : > { %10116 = vmatpush1.bf16.msra.mxu0 %v10115_v44  ;;  %v10139_v44 = vunpack.c.l.s8.bf16 %v1539_v41  ;;  %v1515_v41 = vld [vmem:[%s11291_s13 + $0xd20] sm:$0xff] }
 0x3ef   : > { %10180 = vmatpush1.bf16.msra.mxu1 %v10179_v36  ;;  %10118 = vmatprep.subr.bf16.mxu0 %v10117_v42  ;;  %v10203_v36 = vunpack.c.l.s8.bf16 %v1603_v6  ;;  %v10141_v42 = vunpack.c.h.s8.bf16 %v1532_v62  ;;  %v1579_v6 = vld [vmem:[%s11291_s13 + $0xf20] sm:$0xff] }
 0x3f0   : > { %10182 = vmatprep.subr.bf16.mxu1 %v10181_v45  ;;  %v10205_v45 = vunpack.c.h.s8.bf16 %v1596_v11 }
 0x3f2   : > { %10120 = vmatpush1.bf16.msra.mxu0 %v10119_v31  ;;  %v10143_v31 = vunpack.c.h.s8.bf16 %v1531_v20 }
 0x3f3   : > { %10184 = vmatpush1.bf16.msra.mxu1 %v10183_v47  ;;  %10122 = vmatprep.subr.bf16.mxu0 %v10121_v3  ;;  %v10207_v47 = vunpack.c.h.s8.bf16 %v1595_v59  ;;  %v10145_v3 = vunpack.c.l.s8.bf16 %v1532_v62  ;;  %v1126_v62 = vld [vmem:[%s11291_s13 + $0xf8] sm:$0xff] }
 0x3f4   : > { %10186 = vmatprep.subr.bf16.mxu1 %v10185_v32  ;;  %v10209_v32 = vunpack.c.l.s8.bf16 %v1596_v11  ;;  %v1190_v11 = vld [vmem:[%s11291_s13 + $0x2f8] sm:$0xff] }
 0x3f6   : > { %10124 = vmatpush1.bf16.msra.mxu0 %v10123_v9  ;;  %v10147_v9 = vunpack.c.l.s8.bf16 %v1531_v20  ;;  %v10293_v20 = vunpack.c.h.s8.bf16 %v1190_v11 }
 0x3f7   : > { %10188 = vmatpush1.bf16.msra.mxu1 %v10187_v46  ;;  %10126 = vmatprep.subr.bf16.mxu0 %v10125_v24  ;;  %v10211_v46 = vunpack.c.l.s8.bf16 %v1595_v59  ;;  %v10149_v24 = vunpack.c.h.s8.bf16 %v1524_v52  ;;  %v1189_v59 = vld [vmem:[%s11291_s13 + $0x2f0] sm:$0xff] }
 0x3f8   : > { %10190 = vmatprep.subr.bf16.mxu1 %v10189_v8  ;;  %v10213_v8 = vunpack.c.h.s8.bf16 %v1588_v54 }
 0x3fa   : > { %10128 = vmatpush1.bf16.msra.mxu0 %v10127_v14  ;;  %v10151_v14 = vunpack.c.h.s8.bf16 %v1523_v37 }
 0x3fb   : > { %10192 = vmatpush1.bf16.msra.mxu1 %v10191_v7  ;;  %10130 = vmatprep.subr.bf16.mxu0 %v10129_v16  ;;  %v10215_v7 = vunpack.c.h.s8.bf16 %v1587_v25  ;;  %v10153_v16 = vunpack.c.l.s8.bf16 %v1524_v52  ;;  %v1118_v52 = vld [vmem:[%s11291_s13 + $0xb8] sm:$0xff] }
 0x3fc   : > { %10194 = vmatprep.subr.bf16.mxu1 %v10193_v15  ;;  %v10217_v15 = vunpack.c.l.s8.bf16 %v1588_v54  ;;  %v1182_v54 = vld [vmem:[%s11291_s13 + $0x2b8] sm:$0xff] }
 0x3fe   : > { %10132 = vmatpush1.bf16.msra.mxu0 %v10131_v26  ;;  %v10155_v26 = vunpack.c.l.s8.bf16 %v1523_v37  ;;  %v1117_v37 = vld [vmem:[%s11291_s13 + $0xb0] sm:$0xff] }
 0x3ff   : > { %10196 = vmatpush1.bf16.msra.mxu1 %v10195_v58  ;;  %10134 = vmatprep.subr.bf16.mxu0 %v10133_v13  ;;  %v10219_v58 = vunpack.c.l.s8.bf16 %v1587_v25  ;;  %v10157_v13 = vunpack.c.h.s8.bf16 %v1516_v49  ;;  %v1181_v25 = vld [vmem:[%s11291_s13 + $0x2b0] sm:$0xff] }
 0x400   : > { %10198 = vmatprep.subr.bf16.mxu1 %v10197_v21  ;;  %v10221_v21 = vunpack.c.h.s8.bf16 %v1580_v40 }
 0x402   : > { %10136 = vmatpush2.bf16.msra.mxu0 %v10135_v61  ;;  %v10159_v61 = vunpack.c.h.s8.bf16 %v1515_v41 }
 0x403   : > { %10200 = vmatpush2.bf16.msra.mxu1 %v10199_v18  ;;  %10138 = vmatprep.subr.bf16.mxu0 %v10137_v27  ;;  %v10223_v18 = vunpack.c.h.s8.bf16 %v1579_v6  ;;  %v10161_v27 = vunpack.c.l.s8.bf16 %v1516_v49  ;;  %v1110_v49 = vld [vmem:[%s11291_s13 + $0x78] sm:$0xff] }
 0x404   : > { %10202 = vmatprep.subr.bf16.mxu1 %v10201_v51  ;;  %v10225_v51 = vunpack.c.l.s8.bf16 %v1580_v40  ;;  %v1174_v40 = vld [vmem:[%s11291_s13 + $0x278] sm:$0xff] }
 0x406   : > { %10140 = vmatpush2.bf16.msra.mxu0 %v10139_v44  ;;  %v10163_v44 = vunpack.c.l.s8.bf16 %v1515_v41  ;;  %v1173_v41 = vld [vmem:[%s11291_s13 + $0x270] sm:$0xff] }
 0x407   : > { %10204 = vmatpush2.bf16.msra.mxu1 %v10203_v36  ;;  %10142 = vmatprep.subr.bf16.mxu0 %v10141_v42  ;;  %v10227_v36 = vunpack.c.l.s8.bf16 %v1579_v6  ;;  %v10229_v42 = vunpack.c.h.s8.bf16 %v1126_v62  ;;  %v10311_v6 = vunpack.c.h.s8.bf16 %v1173_v41 }
 0x408   : > { %10206 = vmatprep.subr.bf16.mxu1 %v10205_v45  ;;  %v1125_v45 = vld [vmem:[%s11291_s13 + $0xf0] sm:$0xff] }
 0x40a   : > { %10144 = vmatpush2.bf16.msra.mxu0 %v10143_v31  ;;  %v10231_v31 = vunpack.c.h.s8.bf16 %v1125_v45 }
 0x40b   : > { %10208 = vmatpush2.bf16.msra.mxu1 %v10207_v47  ;;  %10146 = vmatprep.subr.bf16.mxu0 %v10145_v3  ;;  %v10295_v47 = vunpack.c.h.s8.bf16 %v1189_v59  ;;  %v10233_v3 = vunpack.c.l.s8.bf16 %v1126_v62 }
 0x40c   : > { %10210 = vmatprep.subr.bf16.mxu1 %v10209_v32  ;;  %v10297_v32 = vunpack.c.l.s8.bf16 %v1190_v11  ;;  %v10315_v11 = vunpack.c.l.s8.bf16 %v1173_v41 }
 0x40e   : > { %10148 = vmatpush2.bf16.msra.mxu0 %v10147_v9  ;;  %v10235_v9 = vunpack.c.l.s8.bf16 %v1125_v45 }
 0x40f   : > { %10212 = vmatpush2.bf16.msra.mxu1 %v10211_v46  ;;  %10150 = vmatprep.subr.bf16.mxu0 %v10149_v24  ;;  %v10299_v46 = vunpack.c.l.s8.bf16 %v1189_v59  ;;  %v10237_v24 = vunpack.c.h.s8.bf16 %v1118_v52 }
 0x410   : > { %10214 = vmatprep.subr.bf16.mxu1 %v10213_v8  ;;  %v10301_v8 = vunpack.c.h.s8.bf16 %v1182_v54 }
 0x412   : > { %10152 = vmatpush2.bf16.msra.mxu0 %v10151_v14  ;;  %v10239_v14 = vunpack.c.h.s8.bf16 %v1117_v37 }
 0x413   : > { %10216 = vmatpush2.bf16.msra.mxu1 %v10215_v7  ;;  %10154 = vmatprep.subr.bf16.mxu0 %v10153_v16  ;;  %v10303_v7 = vunpack.c.h.s8.bf16 %v1181_v25  ;;  %v10241_v16 = vunpack.c.l.s8.bf16 %v1118_v52 }
 0x414   : > { %10218 = vmatprep.subr.bf16.mxu1 %v10217_v15  ;;  %v10305_v15 = vunpack.c.l.s8.bf16 %v1182_v54 }
 0x416   : > { %10156 = vmatpush2.bf16.msra.mxu0 %v10155_v26  ;;  %v10243_v26 = vunpack.c.l.s8.bf16 %v1117_v37  ;;  %v1221_v37 = vld [vmem:[%s11291_s13 + $0x3f0] sm:$0xff] }
 0x417   : > { %10220 = vmatpush2.bf16.msra.mxu1 %v10219_v58  ;;  %10158 = vmatprep.subr.bf16.mxu0 %v10157_v13  ;;  %v10245_v58 = vunpack.c.h.s8.bf16 %v1110_v49  ;;  %v10309_v13 = vunpack.c.h.s8.bf16 %v1174_v40 }
 0x418   : > { %10222 = vmatprep.subr.bf16.mxu1 %v10221_v21 }
 0x41a   : > { %10160 = vmatpush2.bf16.msra.mxu0 %v10159_v61  ;;  %v10249_v61 = vunpack.c.l.s8.bf16 %v1110_v49 }
 0x41b   : > { %10224 = vmatpush2.bf16.msra.mxu1 %v10223_v18  ;;  %10162 = vmatprep.subr.bf16.mxu0 %v10161_v27  ;;  %v10313_v18 = vunpack.c.l.s8.bf16 %v1174_v40  ;;  %v1102_v27 = vld [vmem:[%s11291_s13 + $0x38] sm:$0xff]  ;;  %v10331_v40 = vunpack.c.l.s8.bf16 %v1221_v37 }
 0x41c   : > { %10226 = vmatprep.subr.bf16.mxu1 %v10225_v51  ;;  %v1166_v51 = vld [vmem:[%s11291_s13 + $0x238] sm:$0xff] }
 0x41e   : > { %10164 = vmatpush2.bf16.msra.mxu0 %v10163_v44  ;;  %v10253_v44 = vunpack.c.h.s8.bf16 %v1102_v27 }
 0x41f   : > { %10228 = vmatpush2.bf16.msra.mxu1 %v10227_v36  ;;  %10230 = vmatprep.subr.bf16.mxu0 %v10229_v42  ;;  %v1101_v36 = vld [vmem:[%s11291_s13 + $0x30] sm:$0xff]  ;;  %v10317_v42 = vunpack.c.h.s8.bf16 %v1166_v51 }
 0x420   : > { %10294 = vmatprep.subr.bf16.mxu1 %v10293_v20  ;;  %v1165_v20 = vld [vmem:[%s11291_s13 + $0x230] sm:$0xff]  ;;  %v10255_v45 = vunpack.c.h.s8.bf16 %v1101_v36  ;;  %v10259_v52 = vunpack.c.l.s8.bf16 %v1101_v36 }
 0x421   : > { %7478 = vmatmul.mubr.f32.vlgmr.msra.gmra.mxu0 %v11731_v29  ;;  %v10319_v59 = vunpack.c.h.s8.bf16 %v1165_v20  ;;  %v10323_v54 = vunpack.c.l.s8.bf16 %v1165_v20  ;;  %v1205_v36 = vld [vmem:[%s11291_s13 + $0x370] sm:$0xff] }
 0x422   : > { %7555 = vmatmul.mubr.f32.vlgmr.msra.gmra.mxu1 %v11733_v33  ;;  %7483 = vmatprep.mubr.f32.mxu0 %v11735_v17  ;;  %v10343_v20 = vunpack.c.h.s8.bf16 %v1205_v36 }
 0x423   : > { %7560 = vmatprep.mubr.f32.mxu1 %v11737_v48  ;;  %10232 = vmatpush1.bf16.msra.mxu0 %v10231_v31  ;;  %v10257_v31 = vunpack.c.l.s8.bf16 %v1102_v27 }
 0x424   : > { %10296 = vmatpush1.bf16.msra.mxu1 %v10295_v47  ;;  %10234 = vmatprep.subr.bf16.mxu0 %v10233_v3  ;;  %v10321_v47 = vunpack.c.l.s8.bf16 %v1166_v51  ;;  %v1158_v3 = vld [vmem:[%s11291_s13 + $0x1f8] sm:$0xff] }
 0x425   : > { %7484 = vmatmul.mubr.f32.gmra.mxu0 %v11744_v10  ;;  %10298 = vmatprep.subr.bf16.mxu1 %v10297_v32  ;;  %v1222_v32 = vld [vmem:[%s11291_s13 + $0x3f8] sm:$0xff] }
 0x426   : > { %7561 = vmatmul.mubr.f32.gmra.mxu1 %v11747_v12  ;;  %7631 = vmatprep.mubr.f32.mxu0 %v11482_v0  ;;  %v10307_v0 = vunpack.c.l.s8.bf16 %v1181_v25  ;;  %v10327_v25 = vunpack.c.h.s8.bf16 %v1221_v37 }
 0x427   : > { %10236 = vmatpush1.bf16.msra.mxu0 %v10235_v9  ;;  %7708 = vmatprep.mubr.f32.mxu1 %v11486_v5  ;;  %v1109_v5 = vld [vmem:[%s11291_s13 + $0x70] sm:$0xff]  ;;  %v10261_v9 = vunpack.c.h.s8.bf16 %v1158_v3 }
 0x428   : > { %10300 = vmatpush1.bf16.msra.mxu1 %v10299_v46  ;;  %10238 = vmatprep.subr.bf16.mxu0 %v10237_v24  ;;  %v10247_v21 = vunpack.c.h.s8.bf16 %v1109_v5  ;;  %v10251_v62 = vunpack.c.l.s8.bf16 %v1109_v5  ;;  %v1157_v46 = vld [vmem:[%s11291_s13 + $0x1f0] sm:$0xff]  ;;  %v10325_v24 = vunpack.c.h.s8.bf16 %v1222_v32 }
 0x429   : > { %10302 = vmatprep.subr.bf16.mxu1 %v10301_v8  ;;  %v10263_v8 = vunpack.c.h.s8.bf16 %v1157_v46  ;;  %v10267_v49 = vunpack.c.l.s8.bf16 %v1157_v46  ;;  %v1213_v5 = vld [vmem:[%s11291_s13 + $0x3b0] sm:$0xff] }
 0x42a   : > { %v10335_v41 = vunpack.c.h.s8.bf16 %v1213_v5  ;;  %v10339_v51 = vunpack.c.l.s8.bf16 %v1213_v5  ;;  %v1197_v46 = vld [vmem:[%s11291_s13 + $0x330] sm:$0xff] }
 0x42b   : > { %10240 = vmatpush1.bf16.msra.mxu0 %v10239_v14  ;;  %v10265_v14 = vunpack.c.l.s8.bf16 %v1158_v3  ;;  %v10351_v37 = vunpack.c.h.s8.bf16 %v1197_v46 }
 0x42c   : > { %10304 = vmatpush1.bf16.msra.mxu1 %v10303_v7  ;;  %10242 = vmatprep.subr.bf16.mxu0 %v10241_v16  ;;  %v10329_v7 = vunpack.c.l.s8.bf16 %v1222_v32  ;;  %v1150_v16 = vld [vmem:[%s11291_s13 + $0x1b8] sm:$0xff]  ;;  %v10347_v32 = vunpack.c.l.s8.bf16 %v1205_v36 }
 0x42d   : > { %10306 = vmatprep.subr.bf16.mxu1 %v10305_v15  ;;  %v1214_v15 = vld [vmem:[%s11291_s13 + $0x3b8] sm:$0xff] }
 0x42f   : > { %10244 = vmatpush1.bf16.msra.mxu0 %v10243_v26  ;;  %v10269_v26 = vunpack.c.h.s8.bf16 %v1150_v16 }
 0x430   : > { %10308 = vmatpush1.bf16.msra.mxu1 %v10307_v0  ;;  %10246 = vmatprep.subr.bf16.mxu0 %v10245_v58  ;;  %v1149_v0 = vld [vmem:[%s11291_s13 + $0x1b0] sm:$0xff]  ;;  %v10333_v58 = vunpack.c.h.s8.bf16 %v1214_v15 }
 0x431   : > { %10310 = vmatprep.subr.bf16.mxu1 %v10309_v13  ;;  %v10271_v13 = vunpack.c.h.s8.bf16 %v1149_v0  ;;  %v10275_v27 = vunpack.c.l.s8.bf16 %v1149_v0  ;;  %v1317_v0 = vld [vmem:[%s11291_s13 + $0x6f0] sm:$0xff] }
 0x432   : > { %v10423_v5 = vunpack.c.h.s8.bf16 %v1317_v0 }
 0x433   : > { %10248 = vmatpush1.bf16.msra.mxu0 %v10247_v21  ;;  %v10273_v21 = vunpack.c.l.s8.bf16 %v1150_v16 }
 0x434   : > { %10312 = vmatpush1.bf16.msra.mxu1 %v10311_v6  ;;  %10250 = vmatprep.subr.bf16.mxu0 %v10249_v61  ;;  %v10337_v6 = vunpack.c.l.s8.bf16 %v1214_v15  ;;  %v1142_v61 = vld [vmem:[%s11291_s13 + $0x178] sm:$0xff]  ;;  %v10355_v15 = vunpack.c.l.s8.bf16 %v1197_v46  ;;  %v1229_v46 = vld [vmem:[%s11291_s13 + $0x430] sm:$0xff] }
 0x435   : > { %10314 = vmatprep.subr.bf16.mxu1 %v10313_v18  ;;  %v1206_v18 = vld [vmem:[%s11291_s13 + $0x378] sm:$0xff] }
 0x437   : > { %10252 = vmatpush1.bf16.msra.mxu0 %v10251_v62  ;;  %v10277_v62 = vunpack.c.h.s8.bf16 %v1142_v61 }
 0x438   : > { %10316 = vmatpush1.bf16.msra.mxu1 %v10315_v11  ;;  %10254 = vmatprep.subr.bf16.mxu0 %v10253_v44  ;;  %v1141_v11 = vld [vmem:[%s11291_s13 + $0x170] sm:$0xff]  ;;  %v10341_v44 = vunpack.c.h.s8.bf16 %v1206_v18 }
 0x439   : > { %10318 = vmatprep.subr.bf16.mxu1 %v10317_v42  ;;  %v10279_v42 = vunpack.c.h.s8.bf16 %v1141_v11  ;;  %v10283_v3 = vunpack.c.l.s8.bf16 %v1141_v11  ;;  %v1238_v11 = vld [vmem:[%s11291_s13 + $0x478] sm:$0xff] }
 0x43b   : > { %10256 = vmatpush1.bf16.msra.mxu0 %v10255_v45  ;;  %v10281_v45 = vunpack.c.l.s8.bf16 %v1142_v61 }
 0x43c   : > { %10320 = vmatpush1.bf16.msra.mxu1 %v10319_v59  ;;  %10258 = vmatprep.subr.bf16.mxu0 %v10257_v31  ;;  %v10345_v59 = vunpack.c.l.s8.bf16 %v1206_v18  ;;  %v1134_v31 = vld [vmem:[%s11291_s13 + $0x138] sm:$0xff]  ;;  %v10427_v18 = vunpack.c.l.s8.bf16 %v1317_v0  ;;  %v1285_v0 = vld [vmem:[%s11291_s13 + $0x5f0] sm:$0xff] }
 0x43d   : > { %10322 = vmatprep.subr.bf16.mxu1 %v10321_v47  ;;  %v1198_v47 = vld [vmem:[%s11291_s13 + $0x338] sm:$0xff] }
 0x43f   : > { %10260 = vmatpush1.bf16.msra.mxu0 %v10259_v52  ;;  %v10285_v52 = vunpack.c.h.s8.bf16 %v1134_v31 }
 0x440   : > { %10324 = vmatpush1.bf16.msra.mxu1 %v10323_v54  ;;  %10262 = vmatprep.subr.bf16.mxu0 %v10261_v9  ;;  %v1133_v54 = vld [vmem:[%s11291_s13 + $0x130] sm:$0xff]  ;;  %v10349_v9 = vunpack.c.h.s8.bf16 %v1198_v47 }
 0x441   : > { %10326 = vmatprep.subr.bf16.mxu1 %v10325_v24  ;;  %v10287_v24 = vunpack.c.h.s8.bf16 %v1133_v54  ;;  %v10291_v16 = vunpack.c.l.s8.bf16 %v1133_v54 }
 0x443   : > { %10264 = vmatpush2.bf16.msra.mxu0 %v10263_v8  ;;  %v10289_v8 = vunpack.c.l.s8.bf16 %v1134_v31  ;;  %v10377_v31 = vunpack.c.l.s8.bf16 %v1238_v11 }
 0x444   : > { %10328 = vmatpush2.bf16.msra.mxu1 %v10327_v25  ;;  %10266 = vmatprep.subr.bf16.mxu0 %v10265_v14  ;;  %v10353_v25 = vunpack.c.l.s8.bf16 %v1198_v47  ;;  %v1254_v14 = vld [vmem:[%s11291_s13 + $0x4f8] sm:$0xff] }
 0x445   : > { %10330 = vmatprep.subr.bf16.mxu1 %v10329_v7  ;;  %v1318_v7 = vld [vmem:[%s11291_s13 + $0x6f8] sm:$0xff] }
 0x447   : > { %10268 = vmatpush2.bf16.msra.mxu0 %v10267_v49  ;;  %v10357_v49 = vunpack.c.h.s8.bf16 %v1254_v14 }
 0x448   : > { %10332 = vmatpush2.bf16.msra.mxu1 %v10331_v40  ;;  %10270 = vmatprep.subr.bf16.mxu0 %v10269_v26  ;;  %v10421_v40 = vunpack.c.h.s8.bf16 %v1318_v7  ;;  %v1253_v26 = vld [vmem:[%s11291_s13 + $0x4f0] sm:$0xff] }
 0x449   : > { %10334 = vmatprep.subr.bf16.mxu1 %v10333_v58  ;;  %v10359_v58 = vunpack.c.h.s8.bf16 %v1253_v26  ;;  %v10363_v61 = vunpack.c.l.s8.bf16 %v1253_v26 }
 0x44b   : > { %10272 = vmatpush2.bf16.msra.mxu0 %v10271_v13  ;;  %v10361_v13 = vunpack.c.l.s8.bf16 %v1254_v14 }
 0x44c   : > { %10336 = vmatpush2.bf16.msra.mxu1 %v10335_v41  ;;  %10274 = vmatprep.subr.bf16.mxu0 %v10273_v21  ;;  %v10425_v41 = vunpack.c.l.s8.bf16 %v1318_v7  ;;  %v1246_v21 = vld [vmem:[%s11291_s13 + $0x4b8] sm:$0xff] }
 0x44d   : > { %10338 = vmatprep.subr.bf16.mxu1 %v10337_v6  ;;  %v1310_v6 = vld [vmem:[%s11291_s13 + $0x6b8] sm:$0xff] }
 0x44f   : > { %10276 = vmatpush2.bf16.msra.mxu0 %v10275_v27  ;;  %v10365_v27 = vunpack.c.h.s8.bf16 %v1246_v21 }
 0x450   : > { %10340 = vmatpush2.bf16.msra.mxu1 %v10339_v51  ;;  %10278 = vmatprep.subr.bf16.mxu0 %v10277_v62  ;;  %v1245_v51 = vld [vmem:[%s11291_s13 + $0x4b0] sm:$0xff] }
 0x451   : > { %10342 = vmatprep.subr.bf16.mxu1 %v10341_v44  ;;  %v1309_v62 = vld [vmem:[%s11291_s13 + $0x6b0] sm:$0xff]  ;;  %v1302_v44 = vld [vmem:[%s11291_s13 + $0x678] sm:$0xff]  ;;  %v10371_v36 = vunpack.c.l.s8.bf16 %v1245_v51 }
 0x452   : > { %v10441_v47 = vunpack.c.l.s8.bf16 %v1302_v44 }
 0x453   : > { %10280 = vmatpush2.bf16.msra.mxu0 %v10279_v42  ;;  %v10437_v42 = vunpack.c.h.s8.bf16 %v1302_v44 }
 0x454   : > { %10344 = vmatpush2.bf16.msra.mxu1 %v10343_v20  ;;  %10282 = vmatprep.subr.bf16.mxu0 %v10281_v45  ;;  %v1301_v20 = vld [vmem:[%s11291_s13 + $0x670] sm:$0xff] }
 0x455   : > { %10346 = vmatprep.subr.bf16.mxu1 %v10345_v59  ;;  %v10439_v59 = vunpack.c.h.s8.bf16 %v1301_v20  ;;  %v10443_v54 = vunpack.c.l.s8.bf16 %v1301_v20  ;;  %v1269_v20 = vld [vmem:[%s11291_s13 + $0x570] sm:$0xff] }
 0x457   : > { %10284 = vmatpush2.bf16.msra.mxu0 %v10283_v3  ;;  %v1230_v3 = vld [vmem:[%s11291_s13 + $0x438] sm:$0xff] }
 0x458   : > { %10348 = vmatpush2.bf16.msra.mxu1 %v10347_v32  ;;  %10286 = vmatprep.subr.bf16.mxu0 %v10285_v52  ;;  %v1294_v32 = vld [vmem:[%s11291_s13 + $0x638] sm:$0xff]  ;;  %v10385_v14 = vunpack.c.l.s8.bf16 %v1230_v3 }
 0x459   : > { %10350 = vmatprep.subr.bf16.mxu1 %v10349_v9  ;;  %v10381_v9 = vunpack.c.h.s8.bf16 %v1230_v3  ;;  %v10449_v7 = vunpack.c.l.s8.bf16 %v1294_v32 }
 0x45b   : > { %10288 = vmatpush2.bf16.msra.mxu0 %v10287_v24  ;;  %v10445_v24 = vunpack.c.h.s8.bf16 %v1294_v32 }
 0x45c   : > { %10352 = vmatpush2.bf16.msra.mxu1 %v10351_v37  ;;  %10290 = vmatprep.subr.bf16.mxu0 %v10289_v8  ;;  %v1293_v37 = vld [vmem:[%s11291_s13 + $0x630] sm:$0xff]  ;;  %v10383_v8 = vunpack.c.h.s8.bf16 %v1229_v46 }
 0x45d   : > { %10354 = vmatprep.subr.bf16.mxu1 %v10353_v25  ;;  %v10447_v25 = vunpack.c.h.s8.bf16 %v1293_v37 }
 0x45f   : > { %10292 = vmatpush2.bf16.msra.mxu0 %v10291_v16  ;;  %v1286_v16 = vld [vmem:[%s11291_s13 + $0x5f8] sm:$0xff] }
 0x460   : > { %10356 = vmatpush2.bf16.msra.mxu1 %v10355_v15  ;;  %10358 = vmatprep.subr.bf16.mxu0 %v10357_v49  ;;  %v1350_v15 = vld [vmem:[%s11291_s13 + $0x7f8] sm:$0xff]  ;;  %v10387_v49 = vunpack.c.l.s8.bf16 %v1229_v46  ;;  %v10389_v26 = vunpack.c.h.s8.bf16 %v1286_v16 }
 0x461   : > { %10422 = vmatprep.subr.bf16.mxu1 %v10421_v40  ;;  %v10451_v40 = vunpack.c.l.s8.bf16 %v1293_v37  ;;  %v1261_v37 = vld [vmem:[%s11291_s13 + $0x530] sm:$0xff] }
 0x462   : > { %7632 = vmatmul.mubr.f32.vlgmr.msra.gmra.mxu0 %v11484_v4  ;;  %v10429_v4 = vunpack.c.h.s8.bf16 %v1310_v6 }
 0x463   : > { %7709 = vmatmul.mubr.f32.vlgmr.msra.gmra.mxu1 %v11480_v63  ;;  %7637 = vmatprep.mubr.f32.mxu0 %v11505_v19  ;;  %v10367_v63 = vunpack.c.h.s8.bf16 %v1245_v51  ;;  %v10431_v19 = vunpack.c.h.s8.bf16 %v1309_v62 }
 0x464   : > { %7714 = vmatprep.mubr.f32.mxu1 %v11512_v23  ;;  %10360 = vmatpush1.bf16.msra.mxu0 %v10359_v58  ;;  %v10369_v23 = vunpack.c.l.s8.bf16 %v1246_v21  ;;  %v10453_v58 = vunpack.c.h.s8.bf16 %v1350_v15  ;;  %v10393_v21 = vunpack.c.l.s8.bf16 %v1286_v16 }
 0x465   : > { %10424 = vmatpush1.bf16.msra.mxu1 %v10423_v5  ;;  %10362 = vmatprep.subr.bf16.mxu0 %v10361_v13  ;;  %v1349_v5 = vld [vmem:[%s11291_s13 + $0x7f0] sm:$0xff]  ;;  %v10391_v13 = vunpack.c.h.s8.bf16 %v1285_v0 }
 0x466   : > { %7638 = vmatmul.mubr.f32.gmra.mxu0 %v11510_v22  ;;  %10426 = vmatprep.subr.bf16.mxu1 %v10425_v41  ;;  %v10433_v22 = vunpack.c.l.s8.bf16 %v1310_v6  ;;  %v10455_v41 = vunpack.c.h.s8.bf16 %v1349_v5  ;;  %v10457_v6 = vunpack.c.l.s8.bf16 %v1350_v15  ;;  %v10459_v51 = vunpack.c.l.s8.bf16 %v1349_v5 }
 0x467   : > { %7715 = vmatmul.mubr.f32.gmra.mxu1 %v11515_v28  ;;  %7785 = vmatprep.mubr.f32.mxu0 %v11524_v35  ;;  %v10435_v28 = vunpack.c.l.s8.bf16 %v1309_v62  ;;  %v10373_v35 = vunpack.c.h.s8.bf16 %v1238_v11  ;;  %v1277_v62 = vld [vmem:[%s11291_s13 + $0x5b0] sm:$0xff] }
 0x468   : > { %10364 = vmatpush1.bf16.msra.mxu0 %v10363_v61  ;;  %7862 = vmatprep.mubr.f32.mxu1 %v11526_v38  ;;  %v1237_v38 = vld [vmem:[%s11291_s13 + $0x470] sm:$0xff]  ;;  %v1278_v61 = vld [vmem:[%s11291_s13 + $0x5b8] sm:$0xff] }
 0x469   : > { %10428 = vmatpush1.bf16.msra.mxu1 %v10427_v18  ;;  %10366 = vmatprep.subr.bf16.mxu0 %v10365_v27  ;;  %v10375_v45 = vunpack.c.h.s8.bf16 %v1237_v38  ;;  %v10379_v52 = vunpack.c.l.s8.bf16 %v1237_v38  ;;  %v1342_v18 = vld [vmem:[%s11291_s13 + $0x7b8] sm:$0xff]  ;;  %v10395_v27 = vunpack.c.l.s8.bf16 %v1285_v0  ;;  %v10401_v11 = vunpack.c.l.s8.bf16 %v1278_v61 }
 0x46a   : > { %10430 = vmatprep.subr.bf16.mxu1 %v10429_v4  ;;  %v10397_v4 = vunpack.c.h.s8.bf16 %v1278_v61  ;;  %v10465_v44 = vunpack.c.l.s8.bf16 %v1342_v18 }
 0x46c   : > { %10368 = vmatpush1.bf16.msra.mxu0 %v10367_v63  ;;  %v10461_v63 = vunpack.c.h.s8.bf16 %v1342_v18 }
 0x46d   : > { %10432 = vmatpush1.bf16.msra.mxu1 %v10431_v19  ;;  %10370 = vmatprep.subr.bf16.mxu0 %v10369_v23  ;;  %v1341_v19 = vld [vmem:[%s11291_s13 + $0x7b0] sm:$0xff]  ;;  %v10399_v23 = vunpack.c.h.s8.bf16 %v1277_v62 }
 0x46e   : > { %10434 = vmatprep.subr.bf16.mxu1 %v10433_v22  ;;  %v10463_v22 = vunpack.c.h.s8.bf16 %v1341_v19  ;;  %v10467_v38 = vunpack.c.l.s8.bf16 %v1341_v19  ;;  %v1373_v19 = vld [vmem:[%s11291_s13 + $0x8b0] sm:$0xff] }
 0x470   : > { %10372 = vmatpush1.bf16.msra.mxu0 %v10371_v36  ;;  %v1270_v36 = vld [vmem:[%s11291_s13 + $0x578] sm:$0xff] }
 0x471   : > { %10436 = vmatpush1.bf16.msra.mxu1 %v10435_v28  ;;  %10374 = vmatprep.subr.bf16.mxu0 %v10373_v35  ;;  %v1334_v28 = vld [vmem:[%s11291_s13 + $0x778] sm:$0xff]  ;;  %v10403_v35 = vunpack.c.l.s8.bf16 %v1277_v62  ;;  %v10409_v3 = vunpack.c.l.s8.bf16 %v1270_v36 }
 0x472   : > { %10438 = vmatprep.subr.bf16.mxu1 %v10437_v42  ;;  %v10405_v42 = vunpack.c.h.s8.bf16 %v1270_v36  ;;  %v10473_v32 = vunpack.c.l.s8.bf16 %v1334_v28 }
 0x474   : > { %10376 = vmatpush1.bf16.msra.mxu0 %v10375_v45  ;;  %v10469_v45 = vunpack.c.h.s8.bf16 %v1334_v28 }
 0x475   : > { %10440 = vmatpush1.bf16.msra.mxu1 %v10439_v59  ;;  %10378 = vmatprep.subr.bf16.mxu0 %v10377_v31  ;;  %v1333_v59 = vld [vmem:[%s11291_s13 + $0x770] sm:$0xff]  ;;  %v10407_v31 = vunpack.c.h.s8.bf16 %v1269_v20 }
 0x476   : > { %10442 = vmatprep.subr.bf16.mxu1 %v10441_v47  ;;  %v10471_v47 = vunpack.c.h.s8.bf16 %v1333_v59  ;;  %v10475_v46 = vunpack.c.l.s8.bf16 %v1333_v59  ;;  %v1365_v59 = vld [vmem:[%s11291_s13 + $0x870] sm:$0xff] }
 0x478   : > { %10380 = vmatpush1.bf16.msra.mxu0 %v10379_v52  ;;  %v1262_v52 = vld [vmem:[%s11291_s13 + $0x538] sm:$0xff] }
 0x479   : > { %10444 = vmatpush1.bf16.msra.mxu1 %v10443_v54  ;;  %10382 = vmatprep.subr.bf16.mxu0 %v10381_v9  ;;  %v1326_v54 = vld [vmem:[%s11291_s13 + $0x738] sm:$0xff]  ;;  %v10411_v9 = vunpack.c.l.s8.bf16 %v1269_v20  ;;  %v10417_v16 = vunpack.c.l.s8.bf16 %v1262_v52 }
 0x47a   : > { %10446 = vmatprep.subr.bf16.mxu1 %v10445_v24  ;;  %v10413_v24 = vunpack.c.h.s8.bf16 %v1262_v52  ;;  %v10481_v15 = vunpack.c.l.s8.bf16 %v1326_v54 }
 0x47c   : > { %10384 = vmatpush1.bf16.msra.mxu0 %v10383_v8  ;;  %v10477_v8 = vunpack.c.h.s8.bf16 %v1326_v54 }
 0x47d   : > { %10448 = vmatpush1.bf16.msra.mxu1 %v10447_v25  ;;  %10386 = vmatprep.subr.bf16.mxu0 %v10385_v14  ;;  %v1325_v25 = vld [vmem:[%s11291_s13 + $0x730] sm:$0xff]  ;;  %v10415_v14 = vunpack.c.h.s8.bf16 %v1261_v37 }
 0x47e   : > { %10450 = vmatprep.subr.bf16.mxu1 %v10449_v7  ;;  %v10479_v7 = vunpack.c.h.s8.bf16 %v1325_v25  ;;  %v10483_v0 = vunpack.c.l.s8.bf16 %v1325_v25 }
 0x480   : > { %10388 = vmatpush1.bf16.msra.mxu0 %v10387_v49  ;;  %v1382_v49 = vld [vmem:[%s11291_s13 + $0x8f8] sm:$0xff] }
 0x481   : > { %10452 = vmatpush1.bf16.msra.mxu1 %v10451_v40  ;;  %10390 = vmatprep.subr.bf16.mxu0 %v10389_v26  ;;  %v1446_v40 = vld [vmem:[%s11291_s13 + $0xaf8] sm:$0xff]  ;;  %v10419_v26 = vunpack.c.l.s8.bf16 %v1261_v37  ;;  %v10489_v61 = vunpack.c.l.s8.bf16 %v1382_v49  ;;  %v12277_v37 = vpop.f32.mrf.mxu0 }
 0x482   : > { %10454 = vmatprep.subr.bf16.mxu1 %v10453_v58  ;;  %v10485_v58 = vunpack.c.h.s8.bf16 %v1382_v49  ;;  %v10549_v5 = vunpack.c.h.s8.bf16 %v1446_v40  ;;  %v10553_v18 = vunpack.c.l.s8.bf16 %v1446_v40 }
 0x483   : > { %v12283_v40 = vpop.f32.mrf.mxu0 }
 0x484   : > { %10392 = vmatpush2.bf16.msra.mxu0 %v10391_v13  ;;  %v1381_v13 = vld [vmem:[%s11291_s13 + $0x8f0] sm:$0xff] }
 0x485   : > { %10456 = vmatpush2.bf16.msra.mxu1 %v10455_v41  ;;  %10394 = vmatprep.subr.bf16.mxu0 %v10393_v21  ;;  %v1445_v41 = vld [vmem:[%s11291_s13 + $0xaf0] sm:$0xff]  ;;  %v10487_v21 = vunpack.c.h.s8.bf16 %v1381_v13 }
 0x486   : > { %10458 = vmatprep.subr.bf16.mxu1 %v10457_v6  ;;  %v10551_v6 = vunpack.c.h.s8.bf16 %v1445_v41  ;;  %v10555_v62 = vunpack.c.l.s8.bf16 %v1445_v41  ;;  %v1478_v41 = vld [vmem:[%s11291_s13 + $0xbf8] sm:$0xff] }
 0x488   : > { %10396 = vmatpush2.bf16.msra.mxu0 %v10395_v27  ;;  %v1374_v27 = vld [vmem:[%s11291_s13 + $0x8b8] sm:$0xff] }
 0x489   : > { %10460 = vmatpush2.bf16.msra.mxu1 %v10459_v51  ;;  %10398 = vmatprep.subr.bf16.mxu0 %v10397_v4  ;;  %v1438_v51 = vld [vmem:[%s11291_s13 + $0xab8] sm:$0xff]  ;;  %v10491_v4 = vunpack.c.l.s8.bf16 %v1381_v13  ;;  %v10497_v36 = vunpack.c.l.s8.bf16 %v1374_v27 }
 0x48a   : > { %10462 = vmatprep.subr.bf16.mxu1 %v10461_v63  ;;  %v10493_v63 = vunpack.c.h.s8.bf16 %v1374_v27  ;;  %v10561_v28 = vunpack.c.l.s8.bf16 %v1438_v51  ;;  %v1413_v27 = vld [vmem:[%s11291_s13 + $0x9f0] sm:$0xff] }
 0x48c   : > { %10400 = vmatpush2.bf16.msra.mxu0 %v10399_v23  ;;  %v12631_v23 = vld [vmem:[#allocation24_spill] sm:$0xff] }
 0x48d   : > { %10464 = vmatpush2.bf16.msra.mxu1 %v10463_v22  ;;  %10402 = vmatprep.subr.bf16.mxu0 %v10401_v11  ;;  %v1437_v22 = vld [vmem:[%s11291_s13 + $0xab0] sm:$0xff]  ;;  %v10495_v11 = vunpack.c.h.s8.bf16 %v1373_v19 }
 0x48e   : > { %10466 = vmatprep.subr.bf16.mxu1 %v10465_v44  ;;  %v10559_v44 = vunpack.c.h.s8.bf16 %v1437_v22  ;;  %v10563_v20 = vunpack.c.l.s8.bf16 %v1437_v22  ;;  %v10585_v22 = vunpack.c.l.s8.bf16 %v1478_v41 }
 0x490   : > { %10404 = vmatpush2.bf16.msra.mxu0 %v10403_v35  ;;  %v1366_v35 = vld [vmem:[%s11291_s13 + $0x878] sm:$0xff] }
 0x491   : > { %10468 = vmatpush2.bf16.msra.mxu1 %v10467_v38  ;;  %10406 = vmatprep.subr.bf16.mxu0 %v10405_v42  ;;  %v1430_v38 = vld [vmem:[%s11291_s13 + $0xa78] sm:$0xff]  ;;  %v10499_v42 = vunpack.c.l.s8.bf16 %v1373_v19  ;;  %v10505_v52 = vunpack.c.l.s8.bf16 %v1366_v35 }
 0x492   : > { %10470 = vmatprep.subr.bf16.mxu1 %v10469_v45  ;;  %v10501_v45 = vunpack.c.h.s8.bf16 %v1366_v35  ;;  %v10569_v54 = vunpack.c.l.s8.bf16 %v1430_v38 }
 0x494   : > { %10408 = vmatpush2.bf16.msra.mxu0 %v10407_v31  ;;  %v10565_v31 = vunpack.c.h.s8.bf16 %v1430_v38  ;;  %v1405_v38 = vld [vmem:[%s11291_s13 + $0x9b0] sm:$0xff] }
 0x495   : > { %10472 = vmatpush2.bf16.msra.mxu1 %v10471_v47  ;;  %10410 = vmatprep.subr.bf16.mxu0 %v10409_v3  ;;  %v1429_v47 = vld [vmem:[%s11291_s13 + $0xa70] sm:$0xff]  ;;  %v10503_v3 = vunpack.c.h.s8.bf16 %v1365_v59 }
 0x496   : > { %10474 = vmatprep.subr.bf16.mxu1 %v10473_v32  ;;  %v10567_v32 = vunpack.c.h.s8.bf16 %v1429_v47 }
 0x498   : > { %10412 = vmatpush2.bf16.msra.mxu0 %v10411_v9  ;;  %v1358_v9 = vld [vmem:[%s11291_s13 + $0x838] sm:$0xff] }
 0x499   : > { %10476 = vmatpush2.bf16.msra.mxu1 %v10475_v46  ;;  %10414 = vmatprep.subr.bf16.mxu0 %v10413_v24  ;;  %v1422_v46 = vld [vmem:[%s11291_s13 + $0xa38] sm:$0xff]  ;;  %v10507_v24 = vunpack.c.l.s8.bf16 %v1365_v59  ;;  %v10509_v25 = vunpack.c.h.s8.bf16 %v1358_v9  ;;  %v10527_v59 = vunpack.c.h.s8.bf16 %v1405_v38 }
 0x49a   : > { %10478 = vmatprep.subr.bf16.mxu1 %v10477_v8  ;;  %v10571_v8 = vunpack.c.l.s8.bf16 %v1429_v47 }
 0x49c   : > { %10416 = vmatpush2.bf16.msra.mxu0 %v10415_v14  ;;  %v1357_v14 = vld [vmem:[%s11291_s13 + $0x830] sm:$0xff] }
 0x49d   : > { %10480 = vmatpush2.bf16.msra.mxu1 %v10479_v7  ;;  %10418 = vmatprep.subr.bf16.mxu0 %v10417_v16  ;;  %v10573_v7 = vunpack.c.h.s8.bf16 %v1422_v46  ;;  %v1421_v16 = vld [vmem:[%s11291_s13 + $0xa30] sm:$0xff]  ;;  %v10511_v49 = vunpack.c.h.s8.bf16 %v1357_v14 }
 0x49e   : > { %10482 = vmatprep.subr.bf16.mxu1 %v10481_v15  ;;  %v12281_v15 = vpop.f32.mrf.mxu1 }
 0x4a0   : > { %10420 = vmatpush2.bf16.msra.mxu0 %v10419_v26  ;;  %v10575_v26 = vunpack.c.h.s8.bf16 %v1421_v16  ;;  %v12286_v13 = vpop.f32.mrf.mxu1 }
 0x4a1   : > { %10484 = vmatpush2.bf16.msra.mxu1 %v10483_v0  ;;  %10486 = vmatprep.subr.bf16.mxu0 %v10485_v58  ;;  %v10513_v0 = vunpack.c.l.s8.bf16 %v1358_v9  ;;  %v10577_v58 = vunpack.c.l.s8.bf16 %v1422_v46  ;;  %v1462_v9 = vld [vmem:[%s11291_s13 + $0xb78] sm:$0xff]  ;;  %v10531_v46 = vunpack.c.l.s8.bf16 %v1405_v38 }
 0x4a2   : > { %10550 = vmatprep.subr.bf16.mxu1 %v10549_v5  ;;  %v1414_v5 = vld [vmem:[%s11291_s13 + $0x9f8] sm:$0xff] }
 0x4a3   : > { %7786 = vmatmul.mubr.f32.vlgmr.msra.gmra.mxu0 %v11590_v60  ;;  %v10557_v60 = vunpack.c.h.s8.bf16 %v1438_v51  ;;  %v10581_v51 = vunpack.c.h.s8.bf16 %v1478_v41 }
 0x4a4   : > { %7863 = vmatmul.mubr.f32.vlgmr.msra.gmra.mxu1 %v11587_v57  ;;  %7791 = vmatprep.mubr.f32.mxu0 %v11595_v2  ;;  %v12632_v57 = vld [vmem:[#allocation26_spill] sm:$0xff]  ;;  %v12633_v2 = vld [vmem:[#allocation23_spill] sm:$0xff] }
 0x4a5   : > { %7868 = vmatprep.mubr.f32.mxu1 %v11592_v1  ;;  %10488 = vmatpush1.bf16.msra.mxu0 %v10487_v21  ;;  %v12634_v1 = vld [vmem:[#allocation25_spill] sm:$0xff]  ;;  %v10515_v21 = vunpack.c.l.s8.bf16 %v1357_v14  ;;  %v1397_v14 = vld [vmem:[%s11291_s13 + $0x970] sm:$0xff] }
 0x4a6   : > { %10552 = vmatpush1.bf16.msra.mxu1 %v10551_v6  ;;  %10490 = vmatprep.subr.bf16.mxu0 %v10489_v61  ;;  %v12289_v6 = vpop.f32.mrf.mxu0  ;;  %v10579_v61 = vunpack.c.l.s8.bf16 %v1421_v16  ;;  %v1461_v16 = vld [vmem:[%s11291_s13 + $0xb70] sm:$0xff] }
 0x4a7   : > { %7792 = vmatmul.mubr.f32.gmra.mxu0 %v12631_v23  ;;  %10554 = vmatprep.subr.bf16.mxu1 %v10553_v18  ;;  %v10517_v18 = vunpack.c.h.s8.bf16 %v1414_v5 }
 0x4a8   : > { %7869 = vmatmul.mubr.f32.gmra.mxu1 %v12632_v57  ;;  %7939 = vmatprep.mubr.f32.mxu0 %v12633_v2  ;;  %v12295_v19 = vpop.f32.mrf.mxu0  ;;  %v1406_v57 = vld [vmem:[%s11291_s13 + $0x9b8] sm:$0xff] }
 0x4a9   : > { %10492 = vmatpush1.bf16.msra.mxu0 %v10491_v4  ;;  %8016 = vmatprep.mubr.f32.mxu1 %v12634_v1  ;;  %v1477_v4 = vld [vmem:[%s11291_s13 + $0xbf0] sm:$0xff]  ;;  %v10525_v35 = vunpack.c.h.s8.bf16 %v1406_v57 }
 0x4aa   : > { %10556 = vmatpush1.bf16.msra.mxu1 %v10555_v62  ;;  %10494 = vmatprep.subr.bf16.mxu0 %v10493_v63  ;;  %v12293_v62 = vpop.f32.mrf.mxu1  ;;  %v10519_v63 = vunpack.c.h.s8.bf16 %v1413_v27  ;;  %v10583_v23 = vunpack.c.h.s8.bf16 %v1477_v4  ;;  %v7171_v1 = vpop.f32.mrf.mxu0 }
 0x4ab   : > { %10558 = vmatprep.subr.bf16.mxu1 %v10557_v60  ;;  %v10521_v60 = vunpack.c.l.s8.bf16 %v1414_v5  ;;  %v10599_v5 = vunpack.c.h.s8.bf16 %v1461_v16 }
 0x4ac   : > { %v12298_v2 = vpop.f32.mrf.mxu1 }
 0x4ad   : > { %10496 = vmatpush1.bf16.msra.mxu0 %v10495_v11  ;;  %v1470_v11 = vld [vmem:[%s11291_s13 + $0xbb8] sm:$0xff]  ;;  %v7103_v38 = vadd.f32 %v12298_v2, %v12295_v19 }
 0x4ae   : > { %10560 = vmatpush1.bf16.msra.mxu1 %v10559_v44  ;;  %10498 = vmatprep.subr.bf16.mxu0 %v10497_v36  ;;  %v10523_v44 = vunpack.c.l.s8.bf16 %v1413_v27  ;;  %v12301_v36 = vpop.f32.mrf.mxu1  ;;  %v12327_v2 = vld [vmem:[%s11291_s13 + $0xef8] sm:$0xff] }
 0x4af   : > { %10562 = vmatprep.subr.bf16.mxu1 %v10561_v28  ;;  %v10587_v28 = vunpack.c.l.s8.bf16 %v1477_v4  ;;  %v10539_v4 = vunpack.c.l.s8.bf16 %v1397_v14 }
 0x4b1   : > { %10500 = vmatpush1.bf16.msra.mxu0 %v10499_v42  ;;  %v10589_v42 = vunpack.c.h.s8.bf16 %v1470_v11 }
 0x4b2   : > { %10564 = vmatpush1.bf16.msra.mxu1 %v10563_v20  ;;  %10502 = vmatprep.subr.bf16.mxu0 %v10501_v45  ;;  %v1469_v20 = vld [vmem:[%s11291_s13 + $0xbb0] sm:$0xff]  ;;  %v7173_v45 = vpop.f32.mrf.mxu0 }
 0x4b3   : > { %10566 = vmatprep.subr.bf16.mxu1 %v10565_v31  ;;  %v12305_v31 = vpop.f32.mrf.mxu1  ;;  %v10591_v47 = vunpack.c.h.s8.bf16 %v1469_v20 }
 0x4b5   : > { %10504 = vmatpush1.bf16.msra.mxu0 %v10503_v3  ;;  %v10529_v3 = vunpack.c.l.s8.bf16 %v1406_v57 }
 0x4b6   : > { %10568 = vmatpush1.bf16.msra.mxu1 %v10567_v32  ;;  %10506 = vmatprep.subr.bf16.mxu0 %v10505_v52  ;;  %v10593_v32 = vunpack.c.l.s8.bf16 %v1470_v11  ;;  %v1398_v52 = vld [vmem:[%s11291_s13 + $0x978] sm:$0xff]  ;;  %v1389_v11 = vld [vmem:[%s11291_s13 + $0x930] sm:$0xff] }
 0x4b7   : > { %10570 = vmatprep.subr.bf16.mxu1 %v10569_v54  ;;  %v7177_v54 = vpop.f32.mrf.mxu0  ;;  %v10537_v41 = vunpack.c.l.s8.bf16 %v1398_v52 }
 0x4b9   : > { %10508 = vmatpush1.bf16.msra.mxu0 %v10507_v24  ;;  %v7254_v24 = vpop.f32.mrf.mxu1 }
 0x4ba   : > { %10572 = vmatpush1.bf16.msra.mxu1 %v10571_v8  ;;  %10510 = vmatprep.subr.bf16.mxu0 %v10509_v25  ;;  %v10595_v8 = vunpack.c.l.s8.bf16 %v1469_v20  ;;  %v10533_v25 = vunpack.c.h.s8.bf16 %v1398_v52 }
 0x4bb   : > { %10574 = vmatprep.subr.bf16.mxu1 %v10573_v7  ;;  %v10597_v7 = vunpack.c.h.s8.bf16 %v1462_v9 }
 0x4bd   : > { %10512 = vmatpush1.bf16.msra.mxu0 %v10511_v49  ;;  %v7179_v49 = vpop.f32.mrf.mxu0 }
 0x4be   : > { %10576 = vmatpush1.bf16.msra.mxu1 %v10575_v26  ;;  %10514 = vmatprep.subr.bf16.mxu0 %v10513_v0  ;;  %v10535_v26 = vunpack.c.h.s8.bf16 %v1397_v14  ;;  %v7256_v0 = vpop.f32.mrf.mxu1 }
 0x4bf   : > { %10578 = vmatprep.subr.bf16.mxu1 %v10577_v58  ;;  %v7325_v58 = vpop.f32.mrf.mxu0 }
 0x4c0   : > { %v7402_v27 = vpop.f32.mrf.mxu1 }
 0x4c1   : > { %10516 = vmatpush1.bf16.msra.mxu0 %v10515_v21  ;;  %v10601_v21 = vunpack.c.l.s8.bf16 %v1462_v9 }
 0x4c2   : > { %10580 = vmatpush1.bf16.msra.mxu1 %v10579_v61  ;;  %10518 = vmatprep.subr.bf16.mxu0 %v10517_v18  ;;  %v1390_v61 = vld [vmem:[%s11291_s13 + $0x938] sm:$0xff]  ;;  %v7095_v18 = vadd.f32 %v12281_v15, %v12277_v37  ;;  %v7101_v37 = vadd.f32 %v12293_v62, %v12289_v6 }
 0x4c3   : > { %10582 = vmatprep.subr.bf16.mxu1 %v10581_v51  ;;  %v1454_v51 = vld [vmem:[%s11291_s13 + $0xb38] sm:$0xff]  ;;  %v10541_v57 = vunpack.c.h.s8.bf16 %v1390_v61 }
 0x4c4   : > { %v10609_v6 = vunpack.c.l.s8.bf16 %v1454_v51  ;;  %v1510_v62 = vld [vmem:[%s11291_s13 + $0xcf8] sm:$0xff] }
 0x4c5   : > { %10520 = vmatpush2.bf16.msra.mxu0 %v10519_v63  ;;  %v7097_v63 = vadd.f32 %v12286_v13, %v12283_v40  ;;  %v10543_v40 = vunpack.c.h.s8.bf16 %v1389_v11 }
 0x4c6   : > { %10584 = vmatpush2.bf16.msra.mxu1 %v10583_v23  ;;  %10522 = vmatprep.subr.bf16.mxu0 %v10521_v60  ;;  %v7172_v23 = vadd.f32 %v7171_v1, %v7095_v18  ;;  %v7327_v60 = vpop.f32.mrf.mxu0  ;;  %v7178_v1 = vadd.f32 %v7177_v54, %v7101_v37 }
 0x4c7   : > { %10586 = vmatprep.subr.bf16.mxu1 %v10585_v22  ;;  %v10603_v22 = vunpack.c.l.s8.bf16 %v1461_v16  ;;  %v7174_v15 = vadd.f32 %v7173_v45, %v7097_v63 }
 0x4c8   : > { %v7249_v13 = vadd.f32 %v12301_v36, %v7172_v23  ;;  %v10547_v36 = vunpack.c.l.s8.bf16 %v1389_v11  ;;  %v5708_v11 = vld [vmem:[%s12564_s6 + $0x28] sm:$0xff] }
 0x4c9   : > { %10524 = vmatpush2.bf16.msra.mxu0 %v10523_v44  ;;  %v10605_v44 = vunpack.c.h.s8.bf16 %v1454_v51  ;;  %v7251_v45 = vadd.f32 %v12305_v31, %v7174_v15  ;;  %v1509_v31 = vld [vmem:[%s11291_s13 + $0xcf0] sm:$0xff] }
 0x4ca   : > { %10588 = vmatpush2.bf16.msra.mxu1 %v10587_v28  ;;  %10526 = vmatprep.subr.bf16.mxu0 %v10525_v35  ;;  %v1453_v28 = vld [vmem:[%s11291_s13 + $0xb30] sm:$0xff]  ;;  %v7404_v35 = vpop.f32.mrf.mxu1 }
 0x4cb   : > { %10590 = vmatprep.subr.bf16.mxu1 %v10589_v42  ;;  %v7331_v42 = vpop.f32.mrf.mxu0  ;;  %v10607_v20 = vunpack.c.h.s8.bf16 %v1453_v28  ;;  %v7328_v52 = vadd.f32 %v7327_v60, %v7251_v45  ;;  %v10611_v9 = vunpack.c.l.s8.bf16 %v1453_v28  ;;  %v10681_v60 = vunpack.c.l.s8.bf16 %v12327_v2  ;;  %v1566_v28 = vld [vmem:[%s11291_s13 + $0xeb8] sm:$0xff] }
 0x4cc   : > { %v7408_v19 = vpop.f32.mrf.mxu1 }
 0x4cd   : > { %10528 = vmatpush2.bf16.msra.mxu0 %v10527_v59  ;;  %v10545_v59 = vunpack.c.l.s8.bf16 %v1390_v61  ;;  %v7333_v54 = vpop.f32.mrf.mxu0 }
 0x4ce   : > { %10592 = vmatpush2.bf16.msra.mxu1 %v10591_v47  ;;  %10530 = vmatprep.subr.bf16.mxu0 %v10529_v3  ;;  %v7180_v47 = vadd.f32 %v7179_v49, %v7103_v38  ;;  %v7326_v3 = vadd.f32 %v7325_v58, %v7249_v13  ;;  %v7410_v16 = vpop.f32.mrf.mxu1  ;;  %v1573_v49 = vld [vmem:[%s11291_s13 + $0xef0] sm:$0xff]  ;;  %v10619_v38 = vunpack.c.l.s8.bf16 %v1509_v31 }
 0x4cf   : > { %10594 = vmatprep.subr.bf16.mxu1 %v10593_v32  ;;  %v7255_v32 = vadd.f32 %v7254_v24, %v7178_v1  ;;  %v10679_v61 = vunpack.c.h.s8.bf16 %v1573_v49  ;;  %v1501_v1 = vld [vmem:[%s11291_s13 + $0xcb0] sm:$0xff] }
 0x4d0   : > { %v7403_v14 = vadd.f32 %v7402_v27, %v7326_v3  ;;  %v10617_v27 = vunpack.c.l.s8.bf16 %v1510_v62  ;;  %v10623_v3 = vunpack.c.h.s8.bf16 %v1501_v1 }
 0x4d1   : > { %10532 = vmatpush2.bf16.msra.mxu0 %v10531_v46  ;;  %v10613_v46 = vunpack.c.h.s8.bf16 %v1510_v62 }
 0x4d2   : > { %10596 = vmatpush2.bf16.msra.mxu1 %v10595_v8  ;;  %10534 = vmatprep.subr.bf16.mxu0 %v10533_v25  ;;  %v7257_v8 = vadd.f32 %v7256_v0, %v7180_v47  ;;  %v10677_v25 = vunpack.c.h.s8.bf16 %v12327_v2  ;;  %v5707_v0 = vld [vmem:[%s12564_s6 + $0x20] sm:$0xff]  ;;  %v1565_v47 = vld [vmem:[%s11291_s13 + $0xeb0] sm:$0xff]  ;;  %v10689_v2 = vunpack.c.l.s8.bf16 %v1566_v28 }
 0x4d3   : > { %10598 = vmatprep.subr.bf16.mxu1 %v10597_v7  ;;  %v7332_v7 = vadd.f32 %v7331_v42, %v7255_v32  ;;  %v1558_v32 = vld [vmem:[%s11291_s13 + $0xe78] sm:$0xff] }
 0x4d5   : > { %10536 = vmatpush2.bf16.msra.mxu0 %v10535_v26  ;;  %v7334_v26 = vadd.f32 %v7333_v54, %v7257_v8  ;;  %v7409_v51 = vadd.f32 %v7408_v19, %v7332_v7  ;;  %v1557_v8 = vld [vmem:[%s11291_s13 + $0xe70] sm:$0xff]  ;;  %v10697_v7 = vunpack.c.l.s8.bf16 %v1558_v32 }
 0x4d6   : > { %10600 = vmatpush2.bf16.msra.mxu1 %v10599_v5  ;;  %10538 = vmatprep.subr.bf16.mxu0 %v10537_v41  ;;  %v7405_v5 = vadd.f32 %v7404_v35, %v7328_v52  ;;  %v10691_v52 = vunpack.c.l.s8.bf16 %v1565_v47 }
 0x4d7   : > { %10602 = vmatprep.subr.bf16.mxu1 %v10601_v21  ;;  %v10615_v21 = vunpack.c.h.s8.bf16 %v1509_v31  ;;  %v10695_v31 = vunpack.c.h.s8.bf16 %v1557_v8 }
 0x4d9   : > { %10540 = vmatpush2.bf16.msra.mxu0 %v10539_v4 }
 0x4da   : > { %10604 = vmatpush2.bf16.msra.mxu1 %v10603_v22  ;;  %10542 = vmatprep.subr.bf16.mxu0 %v10541_v57  ;;  %v1502_v22 = vld [vmem:[%s11291_s13 + $0xcb8] sm:$0xff]  ;;  %v7411_v57 = vadd.f32 %v7410_v16, %v7334_v26 }
 0x4db   : > { %10606 = vmatprep.subr.bf16.mxu1 %v10605_v44  ;;  %v10621_v13 = vunpack.c.h.s8.bf16 %v1502_v22  ;;  %v1486_v16 = vld [vmem:[%s11291_s13 + $0xc38] sm:$0xff] }
 0x4dd   : > { %10544 = vmatpush2.bf16.msra.mxu0 %v10543_v40 }
 0x4de   : > { %10608 = vmatpush2.bf16.msra.mxu1 %v10607_v20  ;;  %10546 = vmatprep.subr.bf16.mxu0 %v10545_v59  ;;  %v10685_v59 = vunpack.c.h.s8.bf16 %v1566_v28 }
 0x4df   : > { %10610 = vmatprep.subr.bf16.mxu1 %v10609_v6  ;;  %v5716_v6 = vld [vmem:[%s12564_s6 + $0x68] sm:$0xff] }
 0x4e1   : > { %10548 = vmatpush2.bf16.msra.mxu0 %v10547_v36  ;;  %v7479_v58 = vpop.f32.mrf.mxu0  ;;  %v1494_v36 = vld [vmem:[%s11291_s13 + $0xc78] sm:$0xff] }
 0x4e2   : > { %10612 = vmatpush2.bf16.msra.mxu1 %v10611_v9  ;;  %v7480_v24 = vadd.f32 %v7479_v58, %v7403_v14  ;;  %v7556_v41 = vpop.f32.mrf.mxu1  ;;  %10614 = vmatprep.subr.bf16.mxu0 %v10613_v46  ;;  %v10629_v54 = vunpack.c.h.s8.bf16 %v1494_v36  ;;  %v1493_v9 = vld [vmem:[%s11291_s13 + $0xc70] sm:$0xff]  ;;  %v10693_v46 = vunpack.c.h.s8.bf16 %v1558_v32  ;;  %v10633_v14 = vunpack.c.l.s8.bf16 %v1494_v36 }
 0x4e3   : > { %10678 = vmatprep.subr.bf16.mxu1 %v10677_v25  ;;  %v7481_v18 = vpop.f32.mrf.mxu0  ;;  %v10631_v25 = vunpack.c.h.s8.bf16 %v1493_v9  ;;  %v10635_v26 = vunpack.c.l.s8.bf16 %v1493_v9  ;;  %v10699_v58 = vunpack.c.l.s8.bf16 %v1557_v8  ;;  %v1517_v8 = vld [vmem:[%s11291_s13 + $0xd30] sm:$0xff] }
 0x4e4   : > { %v7557_v4 = vadd.f32 %v7556_v41, %v7480_v24  ;;  %7940 = vmatmul.mubr.f32.vlgmr.msra.gmra.mxu0 %v11668_v34  ;;  %v7482_v63 = vadd.f32 %v7481_v18, %v7405_v5  ;;  %v7558_v23 = vpop.f32.mrf.mxu1  ;;  %v10637_v5 = vunpack.c.h.s8.bf16 %v1486_v16  ;;  %v1485_v24 = vld [vmem:[%s11291_s13 + $0xc30] sm:$0xff]  ;;  %v10641_v18 = vunpack.c.l.s8.bf16 %v1486_v16 }
 0x4e5   : > { %8017 = vmatmul.mubr.f32.vlgmr.msra.gmra.mxu1 %v11665_v30  ;;  %7945 = vmatprep.mubr.f32.mxu0 %v11673_v43  ;;  %v7485_v44 = vpop.f32.mrf.mxu0  ;;  %v5715_v30 = vld [vmem:[%s12564_s6 + $0x60] sm:$0xff]  ;;  %v10683_v43 = vunpack.c.l.s8.bf16 %v1573_v49  ;;  %v1550_v49 = vld [vmem:[%s11291_s13 + $0xe38] sm:$0xff] }
 0x4e6   : > { %v8187_v37 = vadd.f32 %v7557_v4, %v5707_v0  ;;  %8022 = vmatprep.mubr.f32.mxu1 %v11670_v39  ;;  %10616 = vmatpush1.bf16.msra.mxu0 %v10615_v21  ;;  %v7559_v34 = vadd.f32 %v7558_v23, %v7482_v63  ;;  %v7486_v15 = vadd.f32 %v7485_v44, %v7409_v51  ;;  %v7562_v35 = vpop.f32.mrf.mxu1  ;;  %v10701_v41 = vunpack.c.h.s8.bf16 %v1550_v49  ;;  %v1549_v21 = vld [vmem:[%s11291_s13 + $0xe30] sm:$0xff]  ;;  %v1542_v51 = vld [vmem:[%s11291_s13 + $0xdf8] sm:$0xff] }
 0x4e7   : > { %10680 = vmatpush1.bf16.msra.mxu1 %v10679_v61  ;;  %10618 = vmatprep.subr.bf16.mxu0 %v10617_v27  ;;  %v7487_v40 = vpop.f32.mrf.mxu0  ;;  %v10639_v0 = vunpack.c.h.s8.bf16 %v1485_v24  ;;  %v10703_v61 = vunpack.c.h.s8.bf16 %v1549_v21  ;;  %v10705_v27 = vunpack.c.l.s8.bf16 %v1550_v49  ;;  %v1606_v4 = vld [vmem:[%s11291_s13 + $0xff8] sm:$0xff]  ;;  %v10643_v63 = vunpack.c.l.s8.bf16 %v1485_v24 }
 0x4e8   : > { %8203 = vst [vmem:[%s12564_s6 + $0x20] sm:$0xff] %v8187_v37  ;;  %v8188_v39 = vadd.f32 %v7559_v34, %v5708_v11  ;;  %v7563_v42 = vadd.f32 %v7562_v35, %v7486_v15  ;;  %7946 = vmatmul.mubr.f32.gmra.mxu0 %v11682_v53  ;;  %10682 = vmatprep.subr.bf16.mxu1 %v10681_v60  ;;  %v7564_v62 = vpop.f32.mrf.mxu1  ;;  %v10707_v23 = vunpack.c.l.s8.bf16 %v1549_v21  ;;  %v10645_v60 = vunpack.c.h.s8.bf16 %v1542_v51  ;;  %v1605_v11 = vld [vmem:[%s11291_s13 + $0xff0] sm:$0xff]  ;;  %v1534_v15 = vld [vmem:[%s11291_s13 + $0xdb8] sm:$0xff] }
 0x4e9   : > { %v7488_v20 = vadd.f32 %v7487_v40, %v7411_v57  ;;  %8023 = vmatmul.mubr.f32.gmra.mxu1 %v11687_v50  ;;  %8093 = vmatprep.mubr.f32.mxu0 %v11677_v55  ;;  %v10687_v55 = vunpack.c.h.s8.bf16 %v1565_v47  ;;  %v10625_v50 = vunpack.c.l.s8.bf16 %v1502_v22  ;;  %v1541_v22 = vld [vmem:[%s11291_s13 + $0xdf0] sm:$0xff]  ;;  %v10709_v57 = vunpack.c.h.s8.bf16 %v1606_v4  ;;  %v1598_v35 = vld [vmem:[%s11291_s13 + $0xfb8] sm:$0xff] }
 0x4ea   : > { %8204 = vst [vmem:[%s12564_s6 + $0x28] sm:$0xff] %v8188_v39  ;;  %v8195_v53 = vadd.f32 %v7563_v42, %v5715_v30  ;;  %10620 = vmatpush1.bf16.msra.mxu0 %v10619_v38  ;;  %8170 = vmatprep.mubr.f32.mxu1 %v11684_v56  ;;  %v10627_v56 = vunpack.c.l.s8.bf16 %v1501_v1  ;;  %v10647_v44 = vunpack.c.h.s8.bf16 %v1541_v22  ;;  %v10711_v28 = vunpack.c.h.s8.bf16 %v1605_v11  ;;  %v1533_v40 = vld [vmem:[%s11291_s13 + $0xdb0] sm:$0xff]  ;;  %v1526_v47 = vld [vmem:[%s11291_s13 + $0xd78] sm:$0xff] }
 0x4eb   : > { %v7565_v45 = vadd.f32 %v7564_v62, %v7488_v20  ;;  %10684 = vmatpush1.bf16.msra.mxu1 %v10683_v43  ;;  %10622 = vmatprep.subr.bf16.mxu0 %v10621_v13  ;;  %v10649_v37 = vunpack.c.l.s8.bf16 %v1542_v51  ;;  %v10713_v34 = vunpack.c.l.s8.bf16 %v1606_v4  ;;  %v10651_v38 = vunpack.c.l.s8.bf16 %v1541_v22  ;;  %v1597_v1 = vld [vmem:[%s11291_s13 + $0xfb0] sm:$0xff] }
 0x4ec   : > { %8211 = vst [vmem:[%s12564_s6 + $0x60] sm:$0xff] %v8195_v53  ;;  %10686 = vmatprep.subr.bf16.mxu1 %v10685_v59  ;;  %v10715_v30 = vunpack.c.l.s8.bf16 %v1605_v11  ;;  %v10653_v43 = vunpack.c.h.s8.bf16 %v1534_v15  ;;  %v10717_v13 = vunpack.c.h.s8.bf16 %v1598_v35  ;;  %v10655_v39 = vunpack.c.h.s8.bf16 %v1533_v40 }
 0x4ed   : > { %v8196_v19 = vadd.f32 %v7565_v45, %v5716_v6  ;;  %v10719_v42 = vunpack.c.h.s8.bf16 %v1597_v1  ;;  %v10657_v20 = vunpack.c.l.s8.bf16 %v1534_v15  ;;  %v10721_v59 = vunpack.c.l.s8.bf16 %v1598_v35  ;;  %v1590_v6 = vld [vmem:[%s11291_s13 + $0xf78] sm:$0xff] }
 0x4ee   : > { %10624 = vmatpush1.bf16.msra.mxu0 %v10623_v3  ;;  %v10659_v62 = vunpack.c.l.s8.bf16 %v1533_v40  ;;  %v10723_v53 = vunpack.c.l.s8.bf16 %v1597_v1  ;;  %v10661_v45 = vunpack.c.h.s8.bf16 %v1526_v47  ;;  %v1525_v3 = vld [vmem:[%s11291_s13 + $0xd70] sm:$0xff]  ;;  %v10665_v36 = vunpack.c.l.s8.bf16 %v1526_v47 }
 0x4ef   : > { %8212 = vst [vmem:[%s12564_s6 + $0x68] sm:$0xff] %v8196_v19  ;;  %10688 = vmatpush1.bf16.msra.mxu1 %v10687_v55  ;;  %10626 = vmatprep.subr.bf16.mxu0 %v10625_v50  ;;  %v10725_v55 = vunpack.c.h.s8.bf16 %v1590_v6  ;;  %v1589_v50 = vld [vmem:[%s11291_s13 + $0xf70] sm:$0xff]  ;;  %v10663_v19 = vunpack.c.h.s8.bf16 %v1525_v3  ;;  %v10729_v32 = vunpack.c.l.s8.bf16 %v1590_v6 }
 0x4f0   : > { %10690 = vmatprep.subr.bf16.mxu1 %v10689_v2  ;;  %v10727_v2 = vunpack.c.h.s8.bf16 %v1589_v50  ;;  %v10731_v9 = vunpack.c.l.s8.bf16 %v1589_v50  ;;  %v5709_v50 = vld [vmem:[%s12564_s6 + $0x30] sm:$0xff] }
 0x4f2   : > { %10628 = vmatpush1.bf16.msra.mxu0 %v10627_v56  ;;  %v1518_v56 = vld [vmem:[%s11291_s13 + $0xd38] sm:$0xff] }
 0x4f3   : > { %10692 = vmatpush1.bf16.msra.mxu1 %v10691_v52  ;;  %10630 = vmatprep.subr.bf16.mxu0 %v10629_v54  ;;  %v1582_v52 = vld [vmem:[%s11291_s13 + $0xf38] sm:$0xff]  ;;  %v10667_v54 = vunpack.c.l.s8.bf16 %v1525_v3  ;;  %v10673_v16 = vunpack.c.l.s8.bf16 %v1518_v56 }
 0x4f4   : > { %10694 = vmatprep.subr.bf16.mxu1 %v10693_v46  ;;  %v10669_v46 = vunpack.c.h.s8.bf16 %v1518_v56  ;;  %v10737_v49 = vunpack.c.l.s8.bf16 %v1582_v52 }
 0x4f6   : > { %10632 = vmatpush1.bf16.msra.mxu0 %v10631_v25  ;;  %v10733_v25 = vunpack.c.h.s8.bf16 %v1582_v52  ;;  %v5710_v52 = vld [vmem:[%s12564_s6 + $0x38] sm:$0xff] }
 0x4f7   : > { %10696 = vmatpush1.bf16.msra.mxu1 %v10695_v31  ;;  %10634 = vmatprep.subr.bf16.mxu0 %v10633_v14  ;;  %v1581_v31 = vld [vmem:[%s11291_s13 + $0xf30] sm:$0xff]  ;;  %v10671_v14 = vunpack.c.h.s8.bf16 %v1517_v8 }
 0x4f8   : > { %10698 = vmatprep.subr.bf16.mxu1 %v10697_v7  ;;  %v10735_v7 = vunpack.c.h.s8.bf16 %v1581_v31 }
 0x4fa   : > { %10636 = vmatpush1.bf16.msra.mxu0 %v10635_v26  ;;  %v10675_v26 = vunpack.c.l.s8.bf16 %v1517_v8 }
 0x4fb   : > { %10700 = vmatpush1.bf16.msra.mxu1 %v10699_v58  ;;  %10638 = vmatprep.subr.bf16.mxu0 %v10637_v5  ;;  %v10739_v58 = vunpack.c.l.s8.bf16 %v1581_v31 }
 0x4fc   : > { %10702 = vmatprep.subr.bf16.mxu1 %v10701_v41 }
 0x4fe   : > { %10640 = vmatpush1.bf16.msra.mxu0 %v10639_v0 }
 0x4ff   : > { %10704 = vmatpush1.bf16.msra.mxu1 %v10703_v61  ;;  %10642 = vmatprep.subr.bf16.mxu0 %v10641_v18 }
 0x500   : > { %10706 = vmatprep.subr.bf16.mxu1 %v10705_v27 }
 0x502   : > { %10644 = vmatpush1.bf16.msra.mxu0 %v10643_v63 }
 0x503   : > { %10708 = vmatpush1.bf16.msra.mxu1 %v10707_v23  ;;  %10646 = vmatprep.subr.bf16.mxu0 %v10645_v60 }
 0x504   : > { %10710 = vmatprep.subr.bf16.mxu1 %v10709_v57 }
 0x506   : > { %10648 = vmatpush2.bf16.msra.mxu0 %v10647_v44 }
 0x507   : > { %10712 = vmatpush2.bf16.msra.mxu1 %v10711_v28  ;;  %10650 = vmatprep.subr.bf16.mxu0 %v10649_v37 }
 0x508   : > { %10714 = vmatprep.subr.bf16.mxu1 %v10713_v34 }
 0x50a   : > { %10652 = vmatpush2.bf16.msra.mxu0 %v10651_v38 }
 0x50b   : > { %10716 = vmatpush2.bf16.msra.mxu1 %v10715_v30  ;;  %10654 = vmatprep.subr.bf16.mxu0 %v10653_v43 }
 0x50c   : > { %10718 = vmatprep.subr.bf16.mxu1 %v10717_v13 }
 0x50e   : > { %10656 = vmatpush2.bf16.msra.mxu0 %v10655_v39 }
 0x50f   : > { %10720 = vmatpush2.bf16.msra.mxu1 %v10719_v42  ;;  %10658 = vmatprep.subr.bf16.mxu0 %v10657_v20 }
 0x510   : > { %10722 = vmatprep.subr.bf16.mxu1 %v10721_v59 }
 0x512   : > { %10660 = vmatpush2.bf16.msra.mxu0 %v10659_v62 }
 0x513   : > { %10724 = vmatpush2.bf16.msra.mxu1 %v10723_v53  ;;  %10662 = vmatprep.subr.bf16.mxu0 %v10661_v45 }
 0x514   : > { %10726 = vmatprep.subr.bf16.mxu1 %v10725_v55 }
 0x516   : > { %10664 = vmatpush2.bf16.msra.mxu0 %v10663_v19 }
 0x517   : > { %10728 = vmatpush2.bf16.msra.mxu1 %v10727_v2  ;;  %10666 = vmatprep.subr.bf16.mxu0 %v10665_v36 }
 0x518   : > { %10730 = vmatprep.subr.bf16.mxu1 %v10729_v32 }
 0x51a   : > { %10668 = vmatpush2.bf16.msra.mxu0 %v10667_v54 }
 0x51b   : > { %10732 = vmatpush2.bf16.msra.mxu1 %v10731_v9  ;;  %10670 = vmatprep.subr.bf16.mxu0 %v10669_v46 }
 0x51c   : > { %10734 = vmatprep.subr.bf16.mxu1 %v10733_v25 }
 0x51e   : > { %10672 = vmatpush2.bf16.msra.mxu0 %v10671_v14  ;;  %v5717_v14 = vld [vmem:[%s12564_s6 + $0x70] sm:$0xff] }
 0x51f   : > { %10736 = vmatpush2.bf16.msra.mxu1 %v10735_v7  ;;  %10674 = vmatprep.subr.bf16.mxu0 %v10673_v16 }
 0x520   : > { %10738 = vmatprep.subr.bf16.mxu1 %v10737_v49 }
 0x522   : > { %10676 = vmatpush2.bf16.msra.mxu0 %v10675_v26  ;;  %v7633_v5 = vpop.f32.mrf.mxu0 }
 0x523   : > { %10740 = vmatpush2.bf16.msra.mxu1 %v10739_v58  ;;  %v7710_v24 = vpop.f32.mrf.mxu1  ;;  %v5718_v58 = vld [vmem:[%s12564_s6 + $0x78] sm:$0xff] }
 0x524   : > { %v7635_v41 = vpop.f32.mrf.mxu0 }
 0x525   : > { %8094 = vmatmul.mubr.f32.vlgmr.msra.gmra.mxu0 %v11731_v29  ;;  %v7712_v21 = vpop.f32.mrf.mxu1 }
 0x526   : > { %8171 = vmatmul.mubr.f32.vlgmr.msra.gmra.mxu1 %v11733_v33  ;;  %8099 = vmatprep.mubr.f32.mxu0 %v11735_v17  ;;  %v7639_v0 = vpop.f32.mrf.mxu0 }
 0x527   : > { %8176 = vmatprep.mubr.f32.mxu1 %v11737_v48  ;;  %v7716_v61 = vpop.f32.mrf.mxu1 }
 0x528   : > { %v7641_v18 = vpop.f32.mrf.mxu0  ;;  %v7717_v44 = vadd.f32 %v7716_v61, %v7639_v0 }
 0x529   : > { %8100 = vmatmul.mubr.f32.gmra.mxu0 %v11744_v10  ;;  %v7718_v27 = vpop.f32.mrf.mxu1  ;;  %v7711_v10 = vadd.f32 %v7710_v24, %v7633_v5 }
 0x52a   : > { %8177 = vmatmul.mubr.f32.gmra.mxu1 %v11747_v12  ;;  %v7713_v12 = vadd.f32 %v7712_v21, %v7635_v41  ;;  %v7719_v34 = vadd.f32 %v7718_v27, %v7641_v18 }
 0x563   : > { %v7787_v51 = vpop.f32.mrf.mxu0 }
 0x564   : > { %v7864_v29 = vpop.f32.mrf.mxu1  ;;  %v7788_v57 = vadd.f32 %v7787_v51, %v7711_v10 }
 0x565   : > { %v7789_v4 = vpop.f32.mrf.mxu0 }
 0x566   : > { %v7866_v33 = vpop.f32.mrf.mxu1  ;;  %v7790_v28 = vadd.f32 %v7789_v4, %v7713_v12  ;;  %v7865_v15 = vadd.f32 %v7864_v29, %v7788_v57 }
 0x567   : > { %v7793_v63 = vpop.f32.mrf.mxu0 }
 0x568   : > { %v7870_v17 = vpop.f32.mrf.mxu1  ;;  %v7794_v35 = vadd.f32 %v7793_v63, %v7717_v44  ;;  %v7867_v30 = vadd.f32 %v7866_v33, %v7790_v28 }
 0x569   : > { %v7795_v23 = vpop.f32.mrf.mxu0 }
 0x56a   : > { %v7872_v48 = vpop.f32.mrf.mxu1  ;;  %v7796_v43 = vadd.f32 %v7795_v23, %v7719_v34  ;;  %v7871_v1 = vadd.f32 %v7870_v17, %v7794_v35 }
 0x56c   : > { %v7873_v20 = vadd.f32 %v7872_v48, %v7796_v43 }
 0x5a4   : > { %v7941_v60 = vpop.f32.mrf.mxu0 }
 0x5a5   : > { %v8018_v22 = vpop.f32.mrf.mxu1  ;;  %v7942_v40 = vadd.f32 %v7941_v60, %v7865_v15 }
 0x5a6   : > { %v7943_v11 = vpop.f32.mrf.mxu0 }
 0x5a7   : > { %v8020_v37 = vpop.f32.mrf.mxu1  ;;  %v7944_v39 = vadd.f32 %v7943_v11, %v7867_v30  ;;  %v8019_v59 = vadd.f32 %v8018_v22, %v7942_v40 }
 0x5a8   : > { %v7947_v38 = vpop.f32.mrf.mxu0 }
 0x5a9   : > { %v8024_v13 = vpop.f32.mrf.mxu1  ;;  %v7948_v47 = vadd.f32 %v7947_v38, %v7871_v1  ;;  %v8021_v53 = vadd.f32 %v8020_v37, %v7944_v39 }
 0x5aa   : > { %v7949_v42 = vpop.f32.mrf.mxu0 }
 0x5ab   : > { %v8026_v6 = vpop.f32.mrf.mxu1  ;;  %v7950_v45 = vadd.f32 %v7949_v42, %v7873_v20  ;;  %v8025_v2 = vadd.f32 %v8024_v13, %v7948_v47 }
 0x5ad   : > { %v8027_v9 = vadd.f32 %v8026_v6, %v7950_v45 }
 0x5e5   : > { %v8095_v62 = vpop.f32.mrf.mxu0 }
 0x5e6   : > { %v8096_v3 = vadd.f32 %v8095_v62, %v8019_v59  ;;  %v8172_v55 = vpop.f32.mrf.mxu1 }
 0x5e7   : > { %v8097_v19 = vpop.f32.mrf.mxu0 }
 0x5e8   : > { %v8173_v36 = vadd.f32 %v8172_v55, %v8096_v3  ;;  %v8098_v32 = vadd.f32 %v8097_v19, %v8021_v53  ;;  %v8174_v56 = vpop.f32.mrf.mxu1 }
 0x5e9   : > { %v8101_v54 = vpop.f32.mrf.mxu0 }
 0x5ea   : > { %v8189_v46 = vadd.f32 %v8173_v36, %v5709_v50  ;;  %v8175_v8 = vadd.f32 %v8174_v56, %v8098_v32  ;;  %v8102_v25 = vadd.f32 %v8101_v54, %v8025_v2  ;;  %v8178_v31 = vpop.f32.mrf.mxu1 }
 0x5eb   : > { %v8103_v7 = vpop.f32.mrf.mxu0 }
 0x5ec   : > { %8205 = vst [vmem:[%s12564_s6 + $0x30] sm:$0xff] %v8189_v46  ;;  %v8190_v16 = vadd.f32 %v8175_v8, %v5710_v52  ;;  %v8179_v49 = vadd.f32 %v8178_v31, %v8102_v25  ;;  %v8104_v26 = vadd.f32 %v8103_v7, %v8027_v9  ;;  %v8180_v5 = vpop.f32.mrf.mxu1 }
 0x5ee   : > { %8206 = vst [vmem:[%s12564_s6 + $0x38] sm:$0xff] %v8190_v16  ;;  %v8197_v24 = vadd.f32 %v8179_v49, %v5717_v14  ;;  %v8181_v41 = vadd.f32 %v8180_v5, %v8104_v26  ;;  %8218 = sbr.rel (%p8668_p4) target bundleno = 1580 (0x62c), region = 72 }
 0x5f0   : > { %8213 = vst [vmem:[%s12564_s6 + $0x70] sm:$0xff] %v8197_v24  ;;  %v8198_v21 = vadd.f32 %v8181_v41, %v5718_v58 }
 0x5f2   : > { %8214 = vst [vmem:[%s12564_s6 + $0x78] sm:$0xff] %v8198_v21 }
 0x5f3   : > { %v8219_v0 = vld [vmem:[%s12564_s6] sm:$0xff]  ;;  %v8293_v18 = vld [vmem:[#allocation9] sm:$0xff]  ;;  %v12635_v27 = vld [vmem:[#allocation15_spill] sm:$0xff] }
 0x5f4   : > { %v8235_v61 = vld [vmem:[#allocation7] sm:$0xff]  ;;  %v8298_v29 = vrot.slane %v8293_v18, %v12635_v27  ;;  %v8220_v4 = vld [vmem:[%s12564_s6 + $0x8] sm:$0xff]  ;;  %v8221_v23 = vld [vmem:[%s12564_s6 + $0x10] sm:$0xff] }
 0x5f5   : > { %v8240_v51 = vrot.slane %v8235_v61, %v12635_v27  ;;  %v12636_v33 = vld [vmem:[#allocation17_spill] sm:$0xff]  ;;  %v8222_v48 = vld [vmem:[%s12564_s6 + $0x18] sm:$0xff]  ;;  %v12638_v12 = vld [vmem:[#allocation18_spill] sm:$0xff] }
 0x5f6   : > { %v8244_v63 = vrot.slane %v8235_v61, %v12636_v33  ;;  %v8302_v17 = vrot.slane %v8293_v18, %v12636_v33  ;;  %v12637_v60 = vld [vmem:[#allocation16_spill] sm:$0xff]  ;;  %v8252_v57 = vrot.slane %v8235_v61, %v12638_v12  ;;  %v8310_v11 = vrot.slane %v8293_v18, %v12638_v12  ;;  %v8223_v44 = vld [vmem:[%s12564_s6 + $0x20] sm:$0xff]  ;;  %v12639_v34 = vld [vmem:[#allocation22_spill] sm:$0xff] }
 0x5f7   : > { %v8248_v10 = vrot.slane %v8235_v61, %v12637_v60  ;;  %v8306_v22 = vrot.slane %v8293_v18, %v12637_v60  ;;  %v8277_v28 = vmul.f32 %v8240_v51, %v8219_v0  ;;  %v8256_v15 = vrot.slane %v8235_v61, %v12639_v34  ;;  %v8224_v38 = vld [vmem:[%s12564_s6 + $0x28] sm:$0xff]  ;;  %v12640_v40 = vld [vmem:[#allocation19_spill] sm:$0xff]  ;;  %v12641_v47 = vld [vmem:[#allocation21_spill] sm:$0xff] }
 0x5f8   : > { %v8278_v37 = vmul.f32 %v8244_v63, %v8220_v4  ;;  %v8314_v35 = vrot.slane %v8293_v18, %v12639_v34  ;;  %v8280_v43 = vmul.f32 %v8252_v57, %v8222_v48  ;;  %v8260_v13 = vrot.slane %v8235_v61, %v12640_v40  ;;  %v8225_v39 = vld [vmem:[%s12564_s6 + $0x30] sm:$0xff]  ;;  %v8226_v36 = vld [vmem:[%s12564_s6 + $0x38] sm:$0xff]  ;;  %v8227_v32 = vld [vmem:[%s12564_s6 + $0x40] sm:$0xff] }
 0x5f9   : > { %v8279_v30 = vmul.f32 %v8248_v10, %v8221_v23  ;;  %v12454_v1 = vrot.slane %v8293_v18, %v12640_v40  ;;  %v8335_v42 = vadd.f32 %v8298_v29, %v8277_v28  ;;  %v8281_v59 = vmul.f32 %v8256_v15, %v8223_v44  ;;  %v12642_v9 = vld [vmem:[#allocation20_spill] sm:$0xff]  ;;  %v8228_v8 = vld [vmem:[%s12564_s6 + $0x48] sm:$0xff]  ;;  %v8229_v25 = vld [vmem:[%s12564_s6 + $0x50] sm:$0xff] }
 0x5fa   : > { %v8336_v20 = vadd.f32 %v8302_v17, %v8278_v37  ;;  %v8264_v6 = vrot.slane %v8235_v61, %v12641_v47  ;;  %v8338_v53 = vadd.f32 %v8310_v11, %v8280_v43  ;;  %v8282_v45 = vmul.f32 %v8260_v13, %v8224_v38  ;;  %v8230_v16 = vld [vmem:[%s12564_s6 + $0x58] sm:$0xff]  ;;  %v8231_v5 = vld [vmem:[%s12564_s6 + $0x60] sm:$0xff]  ;;  %v8233_v23 = vld [vmem:[%s12564_s6 + $0x70] sm:$0xff] }
 0x5fb   : > { %v8337_v62 = vadd.f32 %v8306_v22, %v8279_v30  ;;  %v8322_v3 = vrot.slane %v8293_v18, %v12641_v47  ;;  %v8669_v55 = vmul.f32 -1.442695, %v8335_v42  ;;  %v8339_v19 = vadd.f32 %v8314_v35, %v8281_v59 }
 0x5fc   : > { %v8670_v50 = vmul.f32 -1.442695, %v8336_v20  ;;  %v8283_v2 = vmul.f32 %v8264_v6, %v8225_v39  ;;  %v8672_v52 = vmul.f32 -1.442695, %v8338_v53  ;;  %v8340_v54 = vadd.f32 %v12454_v1, %v8282_v45 }
 0x5fd   : > { %v8671_v56 = vmul.f32 -1.442695, %v8337_v62  ;;  %v8268_v46 = vrot.slane %v8235_v61, %v12642_v9  ;;  %10833 = vpow2.f32 %v8669_v55  ;;  %v8673_v31 = vmul.f32 -1.442695, %v8339_v19 }
 0x5fe   : > { %v8341_v14 = vadd.f32 %v8322_v3, %v8283_v2  ;;  %v8326_v7 = vrot.slane %v8293_v18, %v12642_v9  ;;  %10835 = vpow2.f32 %v8670_v50  ;;  %v8674_v49 = vmul.f32 -1.442695, %v8340_v54 }
 0x5ff   : > { %v8284_v26 = vmul.f32 %v8268_v46, %v8226_v36  ;;  %v8285_v58 = vmul.f32 %v8240_v51, %v8227_v32  ;;  %10837 = vpow2.f32 %v8671_v56  ;;  %v8286_v41 = vmul.f32 %v8244_v63, %v8228_v8  ;;  %v8232_v51 = vld [vmem:[%s12564_s6 + $0x68] sm:$0xff] }
 0x600   : > { %v8675_v24 = vmul.f32 -1.442695, %v8341_v14  ;;  %v8287_v21 = vmul.f32 %v8248_v10, %v8229_v25  ;;  %10839 = vpow2.f32 %v8672_v52  ;;  %v8288_v18 = vmul.f32 %v8252_v57, %v8230_v16 }
 0x601   : > { %v8342_v0 = vadd.f32 %v8326_v7, %v8284_v26  ;;  %v8343_v61 = vadd.f32 %v8298_v29, %v8285_v58  ;;  %10841 = vpow2.f32 %v8673_v31  ;;  %v8344_v27 = vadd.f32 %v8302_v17, %v8286_v41  ;;  %v8234_v29 = vld [vmem:[%s12564_s6 + $0x78] sm:$0xff] }
 0x602   : > { %v8345_v4 = vadd.f32 %v8306_v22, %v8287_v21  ;;  %v8289_v33 = vmul.f32 %v8256_v15, %v8231_v5  ;;  %10843 = vpow2.f32 %v8674_v49  ;;  %v8346_v60 = vadd.f32 %v8310_v11, %v8288_v18 }
 0x603   : > { %v8676_v48 = vmul.f32 -1.442695, %v8342_v0  ;;  %v8677_v63 = vmul.f32 -1.442695, %v8343_v61  ;;  %10845 = vpow2.f32 %v8675_v24  ;;  %v8678_v17 = vmul.f32 -1.442695, %v8344_v27 }
 0x604   : > { %v8679_v10 = vmul.f32 -1.442695, %v8345_v4  ;;  %v8347_v22 = vadd.f32 %v8314_v35, %v8289_v33  ;;  %v8680_v12 = vmul.f32 -1.442695, %v8346_v60  ;;  %v8290_v57 = vmul.f32 %v8260_v13, %v8232_v51 }
 0x605   : > { %10847 = vpow2.f32 %v8676_v48  ;;  %v8291_v44 = vmul.f32 %v8264_v6, %v8233_v23  ;;  %v8292_v37 = vmul.f32 %v8268_v46, %v8234_v29 }
 0x606   : > { %10849 = vpow2.f32 %v8677_v63  ;;  %v8681_v28 = vmul.f32 -1.442695, %v8347_v22  ;;  %v8348_v34 = vadd.f32 %v12454_v1, %v8290_v57 }
 0x607   : > { %10851 = vpow2.f32 %v8678_v17  ;;  %v8349_v15 = vadd.f32 %v8322_v3, %v8291_v44  ;;  %v8350_v11 = vadd.f32 %v8326_v7, %v8292_v37 }
 0x608   : > { %10853 = vpow2.f32 %v8679_v10  ;;  %v8682_v38 = vmul.f32 -1.442695, %v8348_v34 }
 0x609   : > { %10855 = vpow2.f32 %v8680_v12  ;;  %v8683_v30 = vmul.f32 -1.442695, %v8349_v15  ;;  %v8684_v43 = vmul.f32 -1.442695, %v8350_v11 }
 0x60a   : > { %10857 = vpow2.f32 %v8681_v28  ;;  %v10834_v40 = vpop.eup %10833 }
 0x60b   : > { %10859 = vpow2.f32 %v8682_v38  ;;  %v10836_v35 = vpop.eup %10835  ;;  %v8399_v39 = vadd.f32 1.0, %v10834_v40 }
 0x60c   : > { %10861 = vpow2.f32 %v8683_v30  ;;  %v10838_v13 = vpop.eup %10837  ;;  %v8400_v42 = vadd.f32 1.0, %v10836_v35 }
 0x60d   : > { %10863 = vpow2.f32 %v8684_v43  ;;  %v10840_v20 = vpop.eup %10839  ;;  %v8401_v59 = vadd.f32 1.0, %v10838_v13 }
 0x60e   : > { %10865 = vrcp.f32 %v8399_v39  ;;  %v10842_v1 = vpop.eup %10841  ;;  %v8402_v47 = vadd.f32 1.0, %v10840_v20 }
 0x60f   : > { %10867 = vrcp.f32 %v8400_v42  ;;  %v10844_v6 = vpop.eup %10843  ;;  %v8403_v62 = vadd.f32 1.0, %v10842_v1 }
 0x610   : > { %10869 = vrcp.f32 %v8401_v59  ;;  %v10846_v53 = vpop.eup %10845  ;;  %v8404_v45 = vadd.f32 1.0, %v10844_v6 }
 0x611   : > { %10871 = vrcp.f32 %v8402_v47  ;;  %v8405_v55 = vadd.f32 1.0, %v10846_v53 }
 0x612   : > { %v10848_v3 = vpop.eup %10847  ;;  %10873 = vrcp.f32 %v8403_v62 }
 0x613   : > { %v10850_v50 = vpop.eup %10849  ;;  %10875 = vrcp.f32 %v8404_v45  ;;  %v8406_v19 = vadd.f32 1.0, %v10848_v3 }
 0x614   : > { %v10852_v2 = vpop.eup %10851  ;;  %10877 = vrcp.f32 %v8405_v55  ;;  %v8407_v36 = vadd.f32 1.0, %v10850_v50 }
 0x615   : > { %v10854_v32 = vpop.eup %10853  ;;  %10879 = vrcp.f32 %v8406_v19  ;;  %v8408_v56 = vadd.f32 1.0, %v10852_v2 }
 0x616   : > { %v10856_v52 = vpop.eup %10855  ;;  %10881 = vrcp.f32 %v8407_v36  ;;  %v8409_v54 = vadd.f32 1.0, %v10854_v32 }
 0x617   : > { %v10858_v9 = vpop.eup %10857  ;;  %10883 = vrcp.f32 %v8408_v56  ;;  %v8410_v46 = vadd.f32 1.0, %v10856_v52 }
 0x618   : > { %v10860_v8 = vpop.eup %10859  ;;  %10885 = vrcp.f32 %v8409_v54  ;;  %v8411_v25 = vadd.f32 1.0, %v10858_v9 }
 0x619   : > { %v10862_v31 = vpop.eup %10861  ;;  %10887 = vrcp.f32 %v8410_v46  ;;  %v8412_v14 = vadd.f32 1.0, %v10860_v8 }
 0x61a   : > { %v10864_v7 = vpop.eup %10863  ;;  %10889 = vrcp.f32 %v8411_v25  ;;  %v8413_v16 = vadd.f32 1.0, %v10862_v31 }
 0x61b   : > { %v10866_v49 = vpop.eup %10865  ;;  %10891 = vrcp.f32 %v8412_v14  ;;  %v8414_v26 = vadd.f32 1.0, %v10864_v7 }
 0x61c   : > { %v10868_v58 = vpop.eup %10867  ;;  %8447 = vst [vmem:[%s12564_s6] sm:$0xff] %v10866_v49  ;;  %10893 = vrcp.f32 %v8413_v16 }
 0x61d   : > { %v10870_v5 = vpop.eup %10869  ;;  %8448 = vst [vmem:[%s12564_s6 + $0x8] sm:$0xff] %v10868_v58  ;;  %10895 = vrcp.f32 %v8414_v26 }
 0x61e   : > { %v10872_v24 = vpop.eup %10871  ;;  %8449 = vst [vmem:[%s12564_s6 + $0x10] sm:$0xff] %v10870_v5 }
 0x61f   : > { %v10874_v41 = vpop.eup %10873  ;;  %8450 = vst [vmem:[%s12564_s6 + $0x18] sm:$0xff] %v10872_v24 }
 0x620   : > { %v10876_v21 = vpop.eup %10875  ;;  %8451 = vst [vmem:[%s12564_s6 + $0x20] sm:$0xff] %v10874_v41 }
 0x621   : > { %v10878_v0 = vpop.eup %10877  ;;  %8452 = vst [vmem:[%s12564_s6 + $0x28] sm:$0xff] %v10876_v21 }
 0x622   : > { %v10880_v61 = vpop.eup %10879  ;;  %8453 = vst [vmem:[%s12564_s6 + $0x30] sm:$0xff] %v10878_v0 }
 0x623   : > { %v10882_v18 = vpop.eup %10881  ;;  %8454 = vst [vmem:[%s12564_s6 + $0x38] sm:$0xff] %v10880_v61 }
 0x624   : > { %v10884_v27 = vpop.eup %10883  ;;  %8455 = vst [vmem:[%s12564_s6 + $0x40] sm:$0xff] %v10882_v18 }
 0x625   : > { %v10886_v4 = vpop.eup %10885  ;;  %8456 = vst [vmem:[%s12564_s6 + $0x48] sm:$0xff] %v10884_v27 }
 0x626   : > { %v10888_v33 = vpop.eup %10887  ;;  %8457 = vst [vmem:[%s12564_s6 + $0x50] sm:$0xff] %v10886_v4 }
 0x627   : > { %v10890_v51 = vpop.eup %10889  ;;  %8458 = vst [vmem:[%s12564_s6 + $0x58] sm:$0xff] %v10888_v33 }
 0x628   : > { %v10892_v23 = vpop.eup %10891  ;;  %8459 = vst [vmem:[%s12564_s6 + $0x60] sm:$0xff] %v10890_v51 }
 0x629   : > { %v10894_v48 = vpop.eup %10893  ;;  %8460 = vst [vmem:[%s12564_s6 + $0x68] sm:$0xff] %v10892_v23 }
 0x62a   : > { %v10896_v63 = vpop.eup %10895  ;;  %8461 = vst [vmem:[%s12564_s6 + $0x70] sm:$0xff] %v10894_v48 }
 0x62b   : > { %8462 = vst [vmem:[%s12564_s6 + $0x78] sm:$0xff] %v10896_v63 }
 0x62c PF: > { %s23_s26 = sadd.s32 1, %s11091_s26   ;;  %s12643_s29 = sld [smem:[#allocation14_spill]] }
 0x62d   : > { %p20_p13 = scmp.ge.s32.totalorder %s23_s26, 4   ;;  %s12644_s15 = sld [smem:[#allocation13_spill]] }
 0x62e   : > { %s12645_s21 = smov %s11075_s22  ;;  %s12646_s22 = smov %s11079_s23 }
 0x62f   : > { %s12648_s24 = smov %s11087_s25  ;;  %22 = sbr.rel (!%p20_p13) target bundleno = 12 (0xc), region = 126 }
 0x632   : > { %s12647_s23 = smov %s12643_s29 }
 0x633   : > { %s12649_s25 = smov %s12644_s15 }
 0x634   :  { %8485 = vsyncpa [#allocation3], 1 }
 0x635   :  { %8487 = vsyncpa [#allocation3 + $0x1], 1 }
 0x636   :  { %8488 = vsyncpa [#allocation5], 1 }
 0x637   :  { %8490 = vsyncpa [#allocation5 + $0x1], 1 }
 0x638   :  { %8491 = vsyncpa [#allocation8], 1 }

</bundles_post_ra>
